<compile_context>
chip_gen: v6e
topology: v6e:2x2x1
jax: 0.10.0
libtpu: 0.0.40
codegen_flags: <defaults>
</compile_context>

<pallas_src>
import functools

import jax
import jax.numpy as jnp
from jax.experimental import pallas as pl
from jax.experimental.pallas import tpu as pltpu

IN_DIM = 784       # 28 * 28
DOWN_DIM = 196     # 14 * 14 (logical hidden width)
HPAD = 256         # lane-padded hidden width (2 x 128)
H3 = 512
H4 = 384
OUT_DIM = 10
OUT_PAD = 128      # lane-padded logits width (columns 10..127 are dead)
BN_EPS = 1e-5
_NEG_BIG = -1e30   # bias pad so dead logit lanes vanish under softmax


# ----------------------------------------------------------------------------
# Fused kernel: phase 0 = fc1 + ReLU + BN stats,  phase 1 = BN affine + MLP
# ----------------------------------------------------------------------------
def _make_fused_kernel(total_batch, batch_tile, keep_x):
    inv_n = 1.0 / float(total_batch)

    def kernel(x_ref, w1_ref, b1_ref, gamma_ref, beta_ref,
               w3_ref, w3p_ref, b3_ref, w4_ref, b4_ref, w5_ref, b5_ref,
               out_ref, *scratch):
        if keep_x:
            x_keep, h_keep, sum_ref, sq_ref = scratch
        else:
            h_keep, sum_ref, sq_ref = scratch

        phase = pl.program_id(0)
        tile = pl.program_id(1)
        off = pl.multiple_of(tile * batch_tile, batch_tile)

        @pl.when(phase == 0)
        def _phase0():
            @pl.when(tile == 0)
            def _init():
                sum_ref[...] = jnp.zeros_like(sum_ref)
                sq_ref[...] = jnp.zeros_like(sq_ref)

            x = x_ref[...]
            if keep_x:
                x_keep[pl.ds(off, batch_tile), :] = x
            h = jnp.dot(x, w1_ref[...], preferred_element_type=jnp.float32)
            h = jnp.maximum(h + b1_ref[...], 0.0)                  # (Bt, HPAD)
            h_keep[pl.ds(off, batch_tile), :] = h
            # Single-pass BN batch stats (training-mode BatchNorm1d).
            sum_ref[...] += jnp.sum(h, axis=0, keepdims=True)
            sq_ref[...] += jnp.sum(h * h, axis=0, keepdims=True)

        @pl.when(phase == 1)
        def _phase1():
            @pl.when(tile == 0)
            def _fold():
                mean = sum_ref[...] * inv_n
                var = sq_ref[...] * inv_n - mean * mean            # biased var
                a = gamma_ref[...] * jax.lax.rsqrt(var + BN_EPS)
                c = beta_ref[...] - mean * a
                sum_ref[...] = a            # reuse stat buffers as BN affine
                sq_ref[...] = c

            if keep_x:
                x = x_keep[pl.ds(off, batch_tile), :]
            else:
                x = x_ref[...]
            h = h_keep[pl.ds(off, batch_tile), :]
            d = h * sum_ref[...] + sq_ref[...]                     # BN output

            # (upsample2x(d) + x) @ W3  ==  x @ W3 + d @ (S @ W3);  S folded.
            h3 = jnp.dot(x, w3_ref[...], preferred_element_type=jnp.float32)
            h3 = h3 + jnp.dot(d, w3p_ref[...],
                              preferred_element_type=jnp.float32)
            h3 = jnp.maximum(h3 + b3_ref[...], 0.0)                # (Bt, 512)

            h4 = jnp.dot(h3, w4_ref[...], preferred_element_type=jnp.float32)
            h4 = jnp.maximum(h4 + b4_ref[...], 0.0)                # (Bt, 384)

            logits = jnp.dot(h4, w5_ref[...],
                             preferred_element_type=jnp.float32) + b5_ref[...]
            m = jnp.max(logits, axis=1, keepdims=True)
            e = jnp.exp(logits - m)                                # pad lanes -> 0
            denom = jnp.sum(e, axis=1, keepdims=True)
            inv = pl.reciprocal(denom, approx=True)                # EUP slot
            inv = inv * (2.0 - denom * inv)                        # Newton step
            out_ref[...] = e * inv

    return kernel


# ----------------------------------------------------------------------------
# Specs / planning helpers
# ----------------------------------------------------------------------------
def _weight_spec(shape):
    """Constant-index (resident) block; single-buffered when supported."""
    index_map = lambda p, i: (0,) * len(shape)
    try:
        return pl.BlockSpec(shape, index_map, pipeline_mode=pl.Buffered(1))
    except (TypeError, AttributeError):
        # Older JAX without pipeline_mode / Buffered: default double buffering.
        return pl.BlockSpec(shape, index_map)


def _pick_batch_tile(batch):
    # Per-grid-step overhead dominates tiny tiles; cap at 512 so per-tile
    # intermediates + double-buffered x/out fit v7x's 64 MiB VMEM per core.
    for tile in (512, 256, 128, 64, 32, 16, 8):
        if batch % tile == 0:
            return tile
    raise ValueError("batch must be a multiple of 8 (f32 sublane tiling)")


def _plan_vmem(batch, batch_tile):
    """Decide whether x can stay VMEM-resident and pick vmem_limit_bytes."""
    weight_bytes = 4 * (IN_DIM * HPAD + 3 * HPAD + IN_DIM * H3 + HPAD * H3
                        + H3 + H3 * H4 + H4 + H4 * OUT_PAD + OUT_PAD)
    # Budget weights at 2x in case single-buffering (pl.Buffered(1)) is
    # unavailable and the default double-buffering applies.
    tile_bytes = 4 * 2 * batch_tile * (IN_DIM + OUT_PAD)          # in/out tiles
    inter_bytes = 4 * batch_tile * (HPAD + H3 + H4 + OUT_PAD)     # temporaries
    h_bytes = 4 * batch * HPAD
    x_bytes = 4 * batch * 896                                     # padded cols
    base = 2 * weight_bytes + tile_bytes + inter_bytes + h_bytes + (6 << 20)
    if base > (56 << 20):
        # TODO(synk): fall back to a two-pass (h spilled to HBM) variant for
        # very large batches instead of refusing.
        raise ValueError("batch too large for the fused single-kernel variant")
    keep_x = (base + x_bytes) <= (56 << 20)   # v7x: 64 MiB VMEM per TensorCore
    limit = base + (x_bytes if keep_x else 0) + (2 << 20)
    limit = max(32 << 20, min(int(limit), 60 << 20))
    return keep_x, limit


# ----------------------------------------------------------------------------
# Parameters
# ----------------------------------------------------------------------------
def make_upsample_matrix():
    """S[j, p] = 1 if flattened 28x28 pixel p maps back to 14x14 pixel j."""
    p = jnp.arange(IN_DIM)
    r, c = p // 28, p % 28
    src = (r // 2) * 14 + (c // 2)                                 # (784,)
    return (src[None, :] == jnp.arange(DOWN_DIM)[:, None]).astype(jnp.float32)


def init_params(key):
    ks = jax.random.split(key, 10)
    scale = 0.05
    return dict(
        w1=scale * jax.random.normal(ks[0], (IN_DIM, DOWN_DIM), jnp.float32),
        b1=scale * jax.random.normal(ks[1], (1, DOWN_DIM), jnp.float32),
        gamma=1.0 + scale * jax.random.normal(ks[2], (1, DOWN_DIM), jnp.float32),
        beta=scale * jax.random.normal(ks[3], (1, DOWN_DIM), jnp.float32),
        w3=scale * jax.random.normal(ks[4], (IN_DIM, H3), jnp.float32),
        b3=scale * jax.random.normal(ks[5], (1, H3), jnp.float32),
        w4=scale * jax.random.normal(ks[6], (H3, H4), jnp.float32),
        b4=scale * jax.random.normal(ks[7], (1, H4), jnp.float32),
        w5=scale * jax.random.normal(ks[8], (H4, OUT_DIM), jnp.float32),
        b5=scale * jax.random.normal(ks[9], (1, OUT_DIM), jnp.float32),
    )


def prepare_kernel_params(params):
    """Pad / fold logical params into the lane-aligned layout the kernel eats."""
    S = make_upsample_matrix()                      # (196, 784) 0/1 scatter
    w3p = S @ params["w3"]                          # fold upsample into fc3

    def pad_cols(a, n):
        return jnp.zeros((a.shape[0], n), a.dtype).at[:, :a.shape[1]].set(a)

    def pad_rows(a, n):
        return jnp.zeros((n, a.shape[1]), a.dtype).at[:a.shape[0], :].set(a)

    b5p = jnp.full((1, OUT_PAD), _NEG_BIG, jnp.float32)
    b5p = b5p.at[:, :OUT_DIM].set(params["b5"])
    return dict(
        w1p=pad_cols(params["w1"], HPAD),           # pad cols zero -> h pad == 0
        b1p=pad_cols(params["b1"], HPAD),
        gamma_p=pad_cols(params["gamma"], HPAD),    # pad gamma/beta zero -> d pad == 0
        beta_p=pad_cols(params["beta"], HPAD),
        w3=params["w3"],
        w3p=pad_rows(w3p, HPAD),                    # pad rows zero -> ignore d pad
        b3=params["b3"],
        w4=params["w4"], b4=params["b4"],
        w5p=pad_cols(params["w5"], OUT_PAD),
        b5p=b5p,
    )


# ----------------------------------------------------------------------------
# Forward pass
# ----------------------------------------------------------------------------
def upscale_nn_forward(x, kp, *, batch_tile=None):
    batch = x.shape[0]
    if batch % 8 != 0:
        raise ValueError("batch must be a multiple of 8 (f32 sublane tiling)")
    if batch_tile is None:
        batch_tile = _pick_batch_tile(batch)
    if batch % batch_tile != 0 or batch_tile % 8 != 0:
        raise ValueError("batch_tile must divide batch and be a multiple of 8")
    n_tiles = batch // batch_tile
    keep_x, vmem_limit = _plan_vmem(batch, batch_tile)

    kernel = _make_fused_kernel(batch, batch_tile, keep_x)

    last = n_tiles - 1
    if keep_x:
        # Phase 0 walks the x tiles; phase 1 re-uses the last fetched block
        # (never re-DMAs x) and reads the VMEM scratch instead.
        x_spec = pl.BlockSpec((batch_tile, IN_DIM),
                              lambda p, i: ((1 - p) * i + p * last, 0))
    else:
        x_spec = pl.BlockSpec((batch_tile, IN_DIM), lambda p, i: (i, 0))

    scratch = []
    if keep_x:
        scratch.append(pltpu.VMEM((batch, IN_DIM), jnp.float32))
    scratch += [pltpu.VMEM((batch, HPAD), jnp.float32),   # h (fc1 output)
                pltpu.VMEM((1, HPAD), jnp.float32),       # sum(h)  -> BN scale a
                pltpu.VMEM((1, HPAD), jnp.float32)]       # sum(h^2)-> BN shift c

    flops = 2 * batch * (IN_DIM * HPAD + IN_DIM * H3 + HPAD * H3
                         + H3 * H4 + H4 * OUT_PAD)
    bytes_accessed = 4 * (batch * IN_DIM * (1 if keep_x else 2)
                          + batch * OUT_PAD
                          + IN_DIM * (HPAD + H3) + HPAD * H3 + H3 * H4
                          + H4 * OUT_PAD + 4 * HPAD + H3 + H4 + OUT_PAD)

    out_pad = pl.pallas_call(
        kernel,
        out_shape=jax.ShapeDtypeStruct((batch, OUT_PAD), jnp.float32),
        grid=(2, n_tiles),
        in_specs=[
            x_spec,
            _weight_spec((IN_DIM, HPAD)),      # w1p
            _weight_spec((1, HPAD)),           # b1p
            _weight_spec((1, HPAD)),           # gamma_p
            _weight_spec((1, HPAD)),           # beta_p
            _weight_spec((IN_DIM, H3)),        # w3
            _weight_spec((HPAD, H3)),          # w3p (upsample folded)
            _weight_spec((1, H3)),             # b3
            _weight_spec((H3, H4)),            # w4
            _weight_spec((1, H4)),             # b4
            _weight_spec((H4, OUT_PAD)),       # w5p
            _weight_spec((1, OUT_PAD)),        # b5p
        ],
        # Phase 0 keeps output block 0 resident (never written); phase 1
        # writes each tile, so only phase-1 data reaches HBM.
        out_specs=pl.BlockSpec((batch_tile, OUT_PAD), lambda p, i: (p * i, 0)),
        scratch_shapes=scratch,
        compiler_params=pltpu.CompilerParams(
            dimension_semantics=("arbitrary", "arbitrary"),
            vmem_limit_bytes=vmem_limit),
        cost_estimate=pl.CostEstimate(
            flops=flops,
            transcendentals=batch * (OUT_PAD + 1),
            bytes_accessed=bytes_accessed),
    )(x, kp["w1p"], kp["b1p"], kp["gamma_p"], kp["beta_p"],
      kp["w3"], kp["w3p"], kp["b3"], kp["w4"], kp["b4"], kp["w5p"], kp["b5p"])

    return out_pad[:, :OUT_DIM]


# ----------------------------------------------------------------------------
# Pure-JAX reference (matches the PyTorch module semantics, training-mode BN)
# ----------------------------------------------------------------------------
def reference_forward(x, params):
    h = jnp.maximum(x @ params["w1"] + params["b1"], 0.0)
    mean = jnp.mean(h, axis=0, keepdims=True)
    var = jnp.mean((h - mean) ** 2, axis=0, keepdims=True)
    d = (h - mean) / jnp.sqrt(var + BN_EPS) * params["gamma"] + params["beta"]
    batch = x.shape[0]
    d_img = d.reshape(batch, 14, 14)
    up = jnp.repeat(jnp.repeat(d_img, 2, axis=1), 2, axis=2)       # (B, 28, 28)
    x1 = (up + x.reshape(batch, 28, 28)).reshape(batch, IN_DIM)
    h3 = jnp.maximum(x1 @ params["w3"] + params["b3"], 0.0)
    h4 = jnp.maximum(h3 @ params["w4"] + params["b4"], 0.0)
    logits = h4 @ params["w5"] + params["b5"]
    return jax.nn.softmax(logits, axis=1)


if __name__ == "__main__":
    key = jax.random.PRNGKey(0)
    k_x, k_p = jax.random.split(key)
    B = 128                                     # two 64-row batch tiles
    x = jax.random.normal(k_x, (B, IN_DIM), jnp.float32)
    params = init_params(k_p)
    kparams = prepare_kernel_params(params)

    fwd = jax.jit(functools.partial(upscale_nn_forward, batch_tile=64))
    out = jax.block_until_ready(fwd(x, kparams))

    ref = reference_forward(x, params)
    assert out.shape == (B, OUT_DIM)
    assert bool(jnp.all(jnp.isfinite(out)))
    assert bool(jnp.allclose(jnp.sum(out, axis=1), 1.0, atol=1e-5))
    # Summation order differs from the reference (folded upsample matrix,
    # single-pass BN variance), so allow a slightly loose f32 tolerance.
    assert bool(jnp.allclose(out, ref, atol=5e-4, rtol=1e-3))

    print("KERNEL_OK")
</pallas_src>

<mosaic_0001>
module attributes {stable_mosaic.version = 11 : i64} {
  func.func @kernel(%arg0: i32, %arg1: i32, %arg2: memref<64x784xf32, #tpu.memory_space<vmem>>, %arg3: memref<784x256xf32, #tpu.memory_space<vmem>>, %arg4: memref<1x256xf32, #tpu.memory_space<vmem>>, %arg5: memref<1x256xf32, #tpu.memory_space<vmem>>, %arg6: memref<1x256xf32, #tpu.memory_space<vmem>>, %arg7: memref<784x512xf32, #tpu.memory_space<vmem>>, %arg8: memref<256x512xf32, #tpu.memory_space<vmem>>, %arg9: memref<1x512xf32, #tpu.memory_space<vmem>>, %arg10: memref<512x384xf32, #tpu.memory_space<vmem>>, %arg11: memref<1x384xf32, #tpu.memory_space<vmem>>, %arg12: memref<384x128xf32, #tpu.memory_space<vmem>>, %arg13: memref<1x128xf32, #tpu.memory_space<vmem>>, %arg14: memref<64x128xf32, #tpu.memory_space<vmem>>, %arg15: memref<128x784xf32, #tpu.memory_space<vmem>>, %arg16: memref<128x256xf32, #tpu.memory_space<vmem>>, %arg17: memref<1x256xf32, #tpu.memory_space<vmem>>, %arg18: memref<1x256xf32, #tpu.memory_space<vmem>>) attributes {dimension_semantics = [#tpu.dimension_semantics<arbitrary>, #tpu.dimension_semantics<arbitrary>], iteration_bounds = array<i64: 2, 2>, scalar_prefetch = 0 : i64, scratch_operands = 4 : i64, tpu.core_type = #tpu.core_type<tc>, window_params = [{transform_indices = @transform_0, window_bounds = array<i64: 64, 784>}, {pipeline_mode = #tpu.pipeline_mode<synchronous>, transform_indices = @transform_1, window_bounds = array<i64: 784, 256>}, {pipeline_mode = #tpu.pipeline_mode<synchronous>, transform_indices = @transform_2, window_bounds = array<i64: 1, 256>}, {pipeline_mode = #tpu.pipeline_mode<synchronous>, transform_indices = @transform_3, window_bounds = array<i64: 1, 256>}, {pipeline_mode = #tpu.pipeline_mode<synchronous>, transform_indices = @transform_4, window_bounds = array<i64: 1, 256>}, {pipeline_mode = #tpu.pipeline_mode<synchronous>, transform_indices = @transform_5, window_bounds = array<i64: 784, 512>}, {pipeline_mode = #tpu.pipeline_mode<synchronous>, transform_indices = @transform_6, window_bounds = array<i64: 256, 512>}, {pipeline_mode = #tpu.pipeline_mode<synchronous>, transform_indices = @transform_7, window_bounds = array<i64: 1, 512>}, {pipeline_mode = #tpu.pipeline_mode<synchronous>, transform_indices = @transform_8, window_bounds = array<i64: 512, 384>}, {pipeline_mode = #tpu.pipeline_mode<synchronous>, transform_indices = @transform_9, window_bounds = array<i64: 1, 384>}, {pipeline_mode = #tpu.pipeline_mode<synchronous>, transform_indices = @transform_10, window_bounds = array<i64: 384, 128>}, {pipeline_mode = #tpu.pipeline_mode<synchronous>, transform_indices = @transform_11, window_bounds = array<i64: 1, 128>}, {transform_indices = @transform_12, window_bounds = array<i64: 64, 128>}]} {
    %c64_i32 = arith.constant 64 : i32
    %0 = arith.muli %arg1, %c64_i32 : i32
    %1 = tpu.assume_multiple %0, 64 : i32
    %c0_i32 = arith.constant 0 : i32
    %2 = arith.cmpi eq, %arg0, %c0_i32 : i32
    %3 = arith.extui %2 : i1 to i32
    %c0_i32_0 = arith.constant 0 : i32
    %4 = arith.cmpi ne, %3, %c0_i32_0 : i32
    scf.if %4 {
      %c0_i32_2 = arith.constant 0 : i32
      %8 = arith.cmpi eq, %arg1, %c0_i32_2 : i32
      %9 = arith.extui %8 : i1 to i32
      %c0_i32_3 = arith.constant 0 : i32
      %10 = arith.cmpi ne, %9, %c0_i32_3 : i32
      scf.if %10 {
        %cst_22 = arith.constant 0.000000e+00 : f32
        %34 = vector.broadcast %cst_22 : f32 to vector<1x256xf32>
        %c0_23 = arith.constant 0 : index
        %c0_24 = arith.constant 0 : index
        %35 = vector.load %arg17[%c0_23, %c0_24] : memref<1x256xf32, #tpu.memory_space<vmem>>, vector<1x256xf32>
        tpu.vector_store %arg17[%c0_23, %c0_24], %34 {strides = array<i32>} : memref<1x256xf32, #tpu.memory_space<vmem>>, vector<1x256xf32>,
        %cst_25 = arith.constant 0.000000e+00 : f32
        %36 = vector.broadcast %cst_25 : f32 to vector<1x256xf32>
        %c0_26 = arith.constant 0 : index
        %c0_27 = arith.constant 0 : index
        %37 = vector.load %arg18[%c0_26, %c0_27] : memref<1x256xf32, #tpu.memory_space<vmem>>, vector<1x256xf32>
        tpu.vector_store %arg18[%c0_26, %c0_27], %36 {strides = array<i32>} : memref<1x256xf32, #tpu.memory_space<vmem>>, vector<1x256xf32>,
      } else {
      }
      %c0 = arith.constant 0 : index
      %c0_4 = arith.constant 0 : index
      %11 = vector.load %arg2[%c0, %c0_4] : memref<64x784xf32, #tpu.memory_space<vmem>>, vector<64x784xf32>
      %12 = arith.index_cast %1 : i32 to index
      %c0_5 = arith.constant 0 : index
      %13 = vector.load %arg15[%12, %c0_5] : memref<128x784xf32, #tpu.memory_space<vmem>>, vector<64x784xf32>
      tpu.vector_store %arg15[%12, %c0_5], %11 {strides = array<i32>} : memref<128x784xf32, #tpu.memory_space<vmem>>, vector<64x784xf32>,
      %c0_6 = arith.constant 0 : index
      %c0_7 = arith.constant 0 : index
      %14 = vector.load %arg3[%c0_6, %c0_7] : memref<784x256xf32, #tpu.memory_space<vmem>>, vector<784x256xf32>
      %cst = arith.constant dense<0.000000e+00> : vector<64x256xf32>
      %15 = tpu.matmul %11, %14, %cst {dimension_numbers = #tpu.dot_dimension_numbers<[1], [0], [0], [1], [0, 0, 1, 1], [], []>} : vector<64x784xf32>, vector<784x256xf32>, vector<64x256xf32> -> vector<64x256xf32>
      %c0_8 = arith.constant 0 : index
      %c0_9 = arith.constant 0 : index
      %16 = vector.load %arg4[%c0_8, %c0_9] : memref<1x256xf32, #tpu.memory_space<vmem>>, vector<1x256xf32>
      %17 = vector.broadcast %16 : vector<1x256xf32> to vector<64x256xf32>
      %18 = arith.addf %15, %17 : vector<64x256xf32>
      %cst_10 = arith.constant 0.000000e+00 : f32
      %19 = vector.broadcast %cst_10 : f32 to vector<64x256xf32>
      %20 = arith.maximumf %18, %19 : vector<64x256xf32>
      %21 = arith.index_cast %1 : i32 to index
      %c0_11 = arith.constant 0 : index
      %22 = vector.load %arg16[%21, %c0_11] : memref<128x256xf32, #tpu.memory_space<vmem>>, vector<64x256xf32>
      tpu.vector_store %arg16[%21, %c0_11], %20 {strides = array<i32>} : memref<128x256xf32, #tpu.memory_space<vmem>>, vector<64x256xf32>,
      %c0_12 = arith.constant 0 : index
      %c0_13 = arith.constant 0 : index
      %23 = vector.load %arg17[%c0_12, %c0_13] : memref<1x256xf32, #tpu.memory_space<vmem>>, vector<1x256xf32>
      %cst_14 = arith.constant dense<0.000000e+00> : vector<256xf32>
      %24 = vector.multi_reduction <add>, %20, %cst_14 [0] : vector<64x256xf32> to vector<256xf32>
      %25 = vector.shape_cast %24 : vector<256xf32> to vector<1x256xf32>
      %26 = arith.addf %23, %25 : vector<1x256xf32>
      %c0_15 = arith.constant 0 : index
      %c0_16 = arith.constant 0 : index
      %27 = vector.load %arg17[%c0_15, %c0_16] : memref<1x256xf32, #tpu.memory_space<vmem>>, vector<1x256xf32>
      tpu.vector_store %arg17[%c0_15, %c0_16], %26 {strides = array<i32>} : memref<1x256xf32, #tpu.memory_space<vmem>>, vector<1x256xf32>,
      %c0_17 = arith.constant 0 : index
      %c0_18 = arith.constant 0 : index
      %28 = vector.load %arg18[%c0_17, %c0_18] : memref<1x256xf32, #tpu.memory_space<vmem>>, vector<1x256xf32>
      %29 = arith.mulf %20, %20 : vector<64x256xf32>
      %cst_19 = arith.constant dense<0.000000e+00> : vector<256xf32>
      %30 = vector.multi_reduction <add>, %29, %cst_19 [0] : vector<64x256xf32> to vector<256xf32>
      %31 = vector.shape_cast %30 : vector<256xf32> to vector<1x256xf32>
      %32 = arith.addf %28, %31 : vector<1x256xf32>
      %c0_20 = arith.constant 0 : index
      %c0_21 = arith.constant 0 : index
      %33 = vector.load %arg18[%c0_20, %c0_21] : memref<1x256xf32, #tpu.memory_space<vmem>>, vector<1x256xf32>
      tpu.vector_store %arg18[%c0_20, %c0_21], %32 {strides = array<i32>} : memref<1x256xf32, #tpu.memory_space<vmem>>, vector<1x256xf32>,
    } else {
    }
    %c1_i32 = arith.constant 1 : i32
    %5 = arith.cmpi eq, %arg0, %c1_i32 : i32
    %6 = arith.extui %5 : i1 to i32
    %c0_i32_1 = arith.constant 0 : i32
    %7 = arith.cmpi ne, %6, %c0_i32_1 : i32
    scf.if %7 {
      %c0_i32_2 = arith.constant 0 : i32
      %8 = arith.cmpi eq, %arg1, %c0_i32_2 : i32
      %9 = arith.extui %8 : i1 to i32
      %c0_i32_3 = arith.constant 0 : i32
      %10 = arith.cmpi ne, %9, %c0_i32_3 : i32
      scf.if %10 {
        %c0_33 = arith.constant 0 : index
        %c0_34 = arith.constant 0 : index
        %58 = vector.load %arg17[%c0_33, %c0_34] : memref<1x256xf32, #tpu.memory_space<vmem>>, vector<1x256xf32>
        %cst_35 = arith.constant 7.812500e-03 : f32
        %59 = vector.broadcast %cst_35 : f32 to vector<1x256xf32>
        %60 = arith.mulf %58, %59 : vector<1x256xf32>
        %c0_36 = arith.constant 0 : index
        %c0_37 = arith.constant 0 : index
        %61 = vector.load %arg18[%c0_36, %c0_37] : memref<1x256xf32, #tpu.memory_space<vmem>>, vector<1x256xf32>
        %cst_38 = arith.constant 7.812500e-03 : f32
        %62 = vector.broadcast %cst_38 : f32 to vector<1x256xf32>
        %63 = arith.mulf %61, %62 : vector<1x256xf32>
        %64 = arith.mulf %60, %60 : vector<1x256xf32>
        %65 = arith.subf %63, %64 : vector<1x256xf32>
        %c0_39 = arith.constant 0 : index
        %c0_40 = arith.constant 0 : index
        %66 = vector.load %arg5[%c0_39, %c0_40] : memref<1x256xf32, #tpu.memory_space<vmem>>, vector<1x256xf32>
        %cst_41 = arith.constant 9.99999974E-6 : f32
        %67 = vector.broadcast %cst_41 : f32 to vector<1x256xf32>
        %68 = arith.addf %65, %67 : vector<1x256xf32>
        %69 = math.rsqrt %68 : vector<1x256xf32>
        %70 = arith.mulf %66, %69 : vector<1x256xf32>
        %c0_42 = arith.constant 0 : index
        %c0_43 = arith.constant 0 : index
        %71 = vector.load %arg6[%c0_42, %c0_43] : memref<1x256xf32, #tpu.memory_space<vmem>>, vector<1x256xf32>
        %72 = arith.mulf %60, %70 : vector<1x256xf32>
        %73 = arith.subf %71, %72 : vector<1x256xf32>
        %c0_44 = arith.constant 0 : index
        %c0_45 = arith.constant 0 : index
        %74 = vector.load %arg17[%c0_44, %c0_45] : memref<1x256xf32, #tpu.memory_space<vmem>>, vector<1x256xf32>
        tpu.vector_store %arg17[%c0_44, %c0_45], %70 {strides = array<i32>} : memref<1x256xf32, #tpu.memory_space<vmem>>, vector<1x256xf32>,
        %c0_46 = arith.constant 0 : index
        %c0_47 = arith.constant 0 : index
        %75 = vector.load %arg18[%c0_46, %c0_47] : memref<1x256xf32, #tpu.memory_space<vmem>>, vector<1x256xf32>
        tpu.vector_store %arg18[%c0_46, %c0_47], %73 {strides = array<i32>} : memref<1x256xf32, #tpu.memory_space<vmem>>, vector<1x256xf32>,
      } else {
      }
      %11 = arith.index_cast %1 : i32 to index
      %c0 = arith.constant 0 : index
      %12 = vector.load %arg15[%11, %c0] : memref<128x784xf32, #tpu.memory_space<vmem>>, vector<64x784xf32>
      %13 = arith.index_cast %1 : i32 to index
      %c0_4 = arith.constant 0 : index
      %14 = vector.load %arg16[%13, %c0_4] : memref<128x256xf32, #tpu.memory_space<vmem>>, vector<64x256xf32>
      %c0_5 = arith.constant 0 : index
      %c0_6 = arith.constant 0 : index
      %15 = vector.load %arg17[%c0_5, %c0_6] : memref<1x256xf32, #tpu.memory_space<vmem>>, vector<1x256xf32>
      %16 = vector.broadcast %15 : vector<1x256xf32> to vector<64x256xf32>
      %17 = arith.mulf %14, %16 : vector<64x256xf32>
      %c0_7 = arith.constant 0 : index
      %c0_8 = arith.constant 0 : index
      %18 = vector.load %arg18[%c0_7, %c0_8] : memref<1x256xf32, #tpu.memory_space<vmem>>, vector<1x256xf32>
      %19 = vector.broadcast %18 : vector<1x256xf32> to vector<64x256xf32>
      %20 = arith.addf %17, %19 : vector<64x256xf32>
      %c0_9 = arith.constant 0 : index
      %c0_10 = arith.constant 0 : index
      %21 = vector.load %arg7[%c0_9, %c0_10] : memref<784x512xf32, #tpu.memory_space<vmem>>, vector<784x512xf32>
      %cst = arith.constant dense<0.000000e+00> : vector<64x512xf32>
      %22 = tpu.matmul %12, %21, %cst {dimension_numbers = #tpu.dot_dimension_numbers<[1], [0], [0], [1], [0, 0, 1, 1], [], []>} : vector<64x784xf32>, vector<784x512xf32>, vector<64x512xf32> -> vector<64x512xf32>
      %c0_11 = arith.constant 0 : index
      %c0_12 = arith.constant 0 : index
      %23 = vector.load %arg8[%c0_11, %c0_12] : memref<256x512xf32, #tpu.memory_space<vmem>>, vector<256x512xf32>
      %cst_13 = arith.constant dense<0.000000e+00> : vector<64x512xf32>
      %24 = tpu.matmul %20, %23, %cst_13 {dimension_numbers = #tpu.dot_dimension_numbers<[1], [0], [0], [1], [0, 0, 1, 1], [], []>} : vector<64x256xf32>, vector<256x512xf32>, vector<64x512xf32> -> vector<64x512xf32>
      %25 = arith.addf %22, %24 : vector<64x512xf32>
      %c0_14 = arith.constant 0 : index
      %c0_15 = arith.constant 0 : index
      %26 = vector.load %arg9[%c0_14, %c0_15] : memref<1x512xf32, #tpu.memory_space<vmem>>, vector<1x512xf32>
      %27 = vector.broadcast %26 : vector<1x512xf32> to vector<64x512xf32>
      %28 = arith.addf %25, %27 : vector<64x512xf32>
      %cst_16 = arith.constant 0.000000e+00 : f32
      %29 = vector.broadcast %cst_16 : f32 to vector<64x512xf32>
      %30 = arith.maximumf %28, %29 : vector<64x512xf32>
      %c0_17 = arith.constant 0 : index
      %c0_18 = arith.constant 0 : index
      %31 = vector.load %arg10[%c0_17, %c0_18] : memref<512x384xf32, #tpu.memory_space<vmem>>, vector<512x384xf32>
      %cst_19 = arith.constant dense<0.000000e+00> : vector<64x384xf32>
      %32 = tpu.matmul %30, %31, %cst_19 {dimension_numbers = #tpu.dot_dimension_numbers<[1], [0], [0], [1], [0, 0, 1, 1], [], []>} : vector<64x512xf32>, vector<512x384xf32>, vector<64x384xf32> -> vector<64x384xf32>
      %c0_20 = arith.constant 0 : index
      %c0_21 = arith.constant 0 : index
      %33 = vector.load %arg11[%c0_20, %c0_21] : memref<1x384xf32, #tpu.memory_space<vmem>>, vector<1x384xf32>
      %34 = vector.broadcast %33 : vector<1x384xf32> to vector<64x384xf32>
      %35 = arith.addf %32, %34 : vector<64x384xf32>
      %cst_22 = arith.constant 0.000000e+00 : f32
      %36 = vector.broadcast %cst_22 : f32 to vector<64x384xf32>
      %37 = arith.maximumf %35, %36 : vector<64x384xf32>
      %c0_23 = arith.constant 0 : index
      %c0_24 = arith.constant 0 : index
      %38 = vector.load %arg12[%c0_23, %c0_24] : memref<384x128xf32, #tpu.memory_space<vmem>>, vector<384x128xf32>
      %cst_25 = arith.constant dense<0.000000e+00> : vector<64x128xf32>
      %39 = tpu.matmul %37, %38, %cst_25 {dimension_numbers = #tpu.dot_dimension_numbers<[1], [0], [0], [1], [0, 0, 1, 1], [], []>} : vector<64x384xf32>, vector<384x128xf32>, vector<64x128xf32> -> vector<64x128xf32>
      %c0_26 = arith.constant 0 : index
      %c0_27 = arith.constant 0 : index
      %40 = vector.load %arg13[%c0_26, %c0_27] : memref<1x128xf32, #tpu.memory_space<vmem>>, vector<1x128xf32>
      %41 = vector.broadcast %40 : vector<1x128xf32> to vector<64x128xf32>
      %42 = arith.addf %39, %41 : vector<64x128xf32>
      %cst_28 = arith.constant dense<0xFF800000> : vector<64xf32>
      %43 = vector.multi_reduction <maximumf>, %42, %cst_28 [1] : vector<64x128xf32> to vector<64xf32>
      %44 = vector.shape_cast %43 : vector<64xf32> to vector<64x1xf32>
      %45 = vector.broadcast %44 : vector<64x1xf32> to vector<64x128xf32>
      %46 = arith.subf %42, %45 : vector<64x128xf32>
      %47 = math.exp %46 : vector<64x128xf32>
      %cst_29 = arith.constant dense<0.000000e+00> : vector<64xf32>
      %48 = vector.multi_reduction <add>, %47, %cst_29 [1] : vector<64x128xf32> to vector<64xf32>
      %49 = vector.shape_cast %48 : vector<64xf32> to vector<64x1xf32>
      %50 = tpu.reciprocal %49 {approx = true} : vector<64x1xf32> -> vector<64x1xf32>
      %51 = arith.mulf %49, %50 : vector<64x1xf32>
      %cst_30 = arith.constant 2.000000e+00 : f32
      %52 = vector.broadcast %cst_30 : f32 to vector<64x1xf32>
      %53 = arith.subf %52, %51 : vector<64x1xf32>
      %54 = arith.mulf %50, %53 : vector<64x1xf32>
      %55 = vector.broadcast %54 : vector<64x1xf32> to vector<64x128xf32>
      %56 = arith.mulf %47, %55 : vector<64x128xf32>
      %c0_31 = arith.constant 0 : index
      %c0_32 = arith.constant 0 : index
      %57 = vector.load %arg14[%c0_31, %c0_32] : memref<64x128xf32, #tpu.memory_space<vmem>>, vector<64x128xf32>
      tpu.vector_store %arg14[%c0_31, %c0_32], %56 {strides = array<i32>} : memref<64x128xf32, #tpu.memory_space<vmem>>, vector<64x128xf32>,
    } else {
    }
    return
  }
  func.func @transform_0(%arg0: i32, %arg1: i32) -> (i32, i32) {
    %c1_i32 = arith.constant 1 : i32
    %0 = arith.subi %c1_i32, %arg0 : i32
    %1 = arith.muli %0, %arg1 : i32
    %c1_i32_0 = arith.constant 1 : i32
    %2 = arith.muli %arg0, %c1_i32_0 : i32
    %3 = arith.addi %1, %2 : i32
    %c0_i32 = arith.constant 0 : i32
    %c0_i32_1 = arith.constant 0 : i32
    return %3, %c0_i32 : i32, i32
  }
  func.func @transform_1(%arg0: i32, %arg1: i32) -> (i32, i32) {
    %c0_i32 = arith.constant 0 : i32
    %c0_i32_0 = arith.constant 0 : i32
    %c0_i32_1 = arith.constant 0 : i32
    return %c0_i32, %c0_i32_0 : i32, i32
  }
  func.func @transform_2(%arg0: i32, %arg1: i32) -> (i32, i32) {
    %c0_i32 = arith.constant 0 : i32
    %c0_i32_0 = arith.constant 0 : i32
    %c0_i32_1 = arith.constant 0 : i32
    return %c0_i32, %c0_i32_0 : i32, i32
  }
  func.func @transform_3(%arg0: i32, %arg1: i32) -> (i32, i32) {
    %c0_i32 = arith.constant 0 : i32
    %c0_i32_0 = arith.constant 0 : i32
    %c0_i32_1 = arith.constant 0 : i32
    return %c0_i32, %c0_i32_0 : i32, i32
  }
  func.func @transform_4(%arg0: i32, %arg1: i32) -> (i32, i32) {
    %c0_i32 = arith.constant 0 : i32
    %c0_i32_0 = arith.constant 0 : i32
    %c0_i32_1 = arith.constant 0 : i32
    return %c0_i32, %c0_i32_0 : i32, i32
  }
  func.func @transform_5(%arg0: i32, %arg1: i32) -> (i32, i32) {
    %c0_i32 = arith.constant 0 : i32
    %c0_i32_0 = arith.constant 0 : i32
    %c0_i32_1 = arith.constant 0 : i32
    return %c0_i32, %c0_i32_0 : i32, i32
  }
  func.func @transform_6(%arg0: i32, %arg1: i32) -> (i32, i32) {
    %c0_i32 = arith.constant 0 : i32
    %c0_i32_0 = arith.constant 0 : i32
    %c0_i32_1 = arith.constant 0 : i32
    return %c0_i32, %c0_i32_0 : i32, i32
  }
  func.func @transform_7(%arg0: i32, %arg1: i32) -> (i32, i32) {
    %c0_i32 = arith.constant 0 : i32
    %c0_i32_0 = arith.constant 0 : i32
    %c0_i32_1 = arith.constant 0 : i32
    return %c0_i32, %c0_i32_0 : i32, i32
  }
  func.func @transform_8(%arg0: i32, %arg1: i32) -> (i32, i32) {
    %c0_i32 = arith.constant 0 : i32
    %c0_i32_0 = arith.constant 0 : i32
    %c0_i32_1 = arith.constant 0 : i32
    return %c0_i32, %c0_i32_0 : i32, i32
  }
  func.func @transform_9(%arg0: i32, %arg1: i32) -> (i32, i32) {
    %c0_i32 = arith.constant 0 : i32
    %c0_i32_0 = arith.constant 0 : i32
    %c0_i32_1 = arith.constant 0 : i32
    return %c0_i32, %c0_i32_0 : i32, i32
  }
  func.func @transform_10(%arg0: i32, %arg1: i32) -> (i32, i32) {
    %c0_i32 = arith.constant 0 : i32
    %c0_i32_0 = arith.constant 0 : i32
    %c0_i32_1 = arith.constant 0 : i32
    return %c0_i32, %c0_i32_0 : i32, i32
  }
  func.func @transform_11(%arg0: i32, %arg1: i32) -> (i32, i32) {
    %c0_i32 = arith.constant 0 : i32
    %c0_i32_0 = arith.constant 0 : i32
    %c0_i32_1 = arith.constant 0 : i32
    return %c0_i32, %c0_i32_0 : i32, i32
  }
  func.func @transform_12(%arg0: i32, %arg1: i32) -> (i32, i32) {
    %0 = arith.muli %arg0, %arg1 : i32
    %c0_i32 = arith.constant 0 : i32
    %c0_i32_0 = arith.constant 0 : i32
    return %0, %c0_i32 : i32, i32
  }
}

</mosaic_0001>

<bundles_post_ra>
// kernel: upscale_nn_forward.1
= control target key start
LH: loop header
LB: loop body
LE: loop exit
PB: predicated region body
PF: predicated region fallthrough
CT: control target
= control target key end

     0   :  { %s7826_s0 = inlined_call_operand.vmem [shape: f32[128,784], index: 0, kind: input, shape index: {}]   ;;  %s7827_s1 = inlined_call_operand.vmem [shape: f32[784,256], index: 1, kind: input, shape index: {}]   ;;  %s7828_s2 = inlined_call_operand.hbm [shape: f32[1,256], index: 2, kind: input, shape index: {}]   ;;  %s7829_s3 = inlined_call_operand.hbm [shape: f32[1,256], index: 3, kind: input, shape index: {}]   ;;  %s7830_s4 = inlined_call_operand.hbm [shape: f32[1,256], index: 4, kind: input, shape index: {}]   ;;  %s7831_s5 = inlined_call_operand.hbm [shape: f32[784,512], index: 5, kind: input, shape index: {}]   ;;  %s7832_s6 = inlined_call_operand.hbm [shape: f32[256,512], index: 6, kind: input, shape index: {}]   ;;  %s7833_s7 = inlined_call_operand.hbm [shape: f32[1,512], index: 7, kind: input, shape index: {}]   ;;  %s7834_s8 = inlined_call_operand.hbm [shape: f32[512,384], index: 8, kind: input, shape index: {}]   ;;  %s7835_s9 = inlined_call_operand.hbm [shape: f32[1,384], index: 9, kind: input, shape index: {}]   ;;  %s7836_s10 = inlined_call_operand.hbm [shape: f32[384,128], index: 10, kind: input, shape index: {}]   ;;  %s7837_s11 = inlined_call_operand.hbm [shape: f32[1,128], index: 11, kind: input, shape index: {}]   ;;  %s7838_s12 = inlined_call_operand.vmem [shape: f32[128,128], index: 12, kind: output, shape index: {}]  }
   0x1   :  { %7845 = sst [smem:[#allocation45_spill]] %s7828_s2 }
   0x2   :  { %7846 = sst [smem:[#allocation46_spill]] %s7829_s3 }
   0x3   :  { %7847 = sst [smem:[#allocation47_spill]] %s7830_s4 }
   0x4   :  { %7848 = sst [smem:[#allocation48_spill]] %s7831_s5 }
   0x5   :  { %17 = vsyncpa [#allocation7], 0 }
   0x6   :  { %18 = vsyncpa [#allocation9], 0 }
   0x7   :  { %19 = vsyncpa [#allocation12], 0 }
   0x8   :  { %20 = vsyncpa [#allocation15], 0 }
   0x9   :  { %21 = vsyncpa [#allocation18], 0 }
   0xa   :  { %22 = vsyncpa [#allocation21], 0  ;;  %s5617_s21 = smov 0   ;;  %s5619_s22 = smov 0  }
   0xb   :  { %s5621_s23 = smov 0   ;;  %s5623_s24 = smov 0  }
   0xc   :  { %s5625_s25 = smov 0  }
   0xd LB: > { %s5532_s26 = smov [#allocation8]   ;;  %s4697_s28 = sadd.s32 4294967295, %s5530_s25   ;;  %s5530_s25 = sphi %s5625_s25, %s28_s25   ;;  %s5526_s24 = sphi %s5623_s24, %s7897_s24   ;;  %s5522_s23 = sphi %s5621_s23, %s7896_s23   ;;  %s5518_s22 = sphi %s5619_s22, %s7895_s22   ;;  %s5514_s21 = sphi %s5617_s21, %s7894_s21  }
   0xe   : > { %s363_s27 = sshll.u32 %s5532_s26, 4  ;;  %p4699_p0 = scmp.ge.s32.totalorder %s5530_s25, 1  ;;  %s364_s27 = int_to_ptr.vmem [resolvable:$true] %s363_s27 }
   0xf   : > { %p336_p1 = scmp.lt.s32.totalorder %s5530_s25, 5  ;;  %p5645_p2 = scmp.eq.s32.totalorder %s4697_s28, 0 }
  0x10   : > { %s5533_s13 = smov [#allocation11]   ;;  %s5534_s16 = smov [#allocation14]  }
  0x11   : > { %s7849_s29 = scalar_select %p5645_p2, 1, 0 }
  0x12   : > { %p5649_p3 = pnand %p4699_p0, %p336_p1  ;;  %s384_s14 = sshll.u32 %s5533_s13, 4  ;;  %s5655_s14 = int_to_ptr.vmem [resolvable:$true] %s384_s14 }
  0x13   : > { %s411_s17 = sshll.u32 %s5534_s16, 4  ;;  %s5535_s18 = smov [#allocation17]   ;;  %s5663_s17 = int_to_ptr.vmem [resolvable:$true] %s411_s17 }
  0x14   : > { %p5045_p4 = pneg %p5649_p3  ;;  %s5665_s19 = sshll.u32 %s5535_s18, 4  ;;  %s436_s19 = int_to_ptr.vmem [resolvable:$true] %s5665_s19 }
  0x15   : > { %s5219_s26 = scalar_lea.vmem %s364_s27, 32  ;;  %p5227_p10 = scmp.lt.s32.totalorder %s364_s27, %s364_s27 }
  0x16   : > { %p5659_p5 = pnand %p5645_p2, %p5045_p4  ;;  %p5220_p7 = scmp.ne.s32.totalorder %s364_s27, %s5219_s26 }
  0x17   : > { %p5228_p11 = scmp.lt.s32.totalorder %s5219_s26, %s5219_s26 }
  0x18   : > { %p5669_p6 = pneg %p5659_p5 }
  0x19   : > { %p5229_p12 = por %p5228_p11, %p5227_p10 }
  0x1a   : > { %p5222_p8 = pnand %p5220_p7, %p5669_p6 }
  0x1c   : > { %p5223_p9 = pneg %p5222_p8 }
  0x1e   : > { %p5230_p13 = pnand %p5229_p12, %p5223_p9 }
  0x20   : > { %5233 = shalt.err (!%p5230_p13)
}
  0x21   : > { %s7853_s3 = sld [smem:[#allocation46_spill]]  ;;  %s5245_s16 = scalar_lea.vmem %s5655_s14, 50176 }
  0x22   : > { %p5246_p0 = scmp.ne.s32.totalorder %s5655_s14, %s5245_s16  ;;  %p5253_p7 = scmp.lt.s32.totalorder %s5655_s14, %s5655_s14 }
  0x23   : > { %p5254_p8 = scmp.lt.s32.totalorder %s5245_s16, %s5245_s16 }
  0x24   : > { %p5248_p1 = pnand %p5246_p0, %p5669_p6 }
  0x25   : > { %p5255_p9 = por %p5254_p8, %p5253_p7 }
  0x26   : > { %p5249_p4 = pneg %p5248_p1 }
  0x27   : > { %5051 = dma.hbm_to_vmem [thread:$0]  (!%p5659_p5), %s7853_s3, 32, %s364_s27, [#allocation9]  }
  0x28   : > { %p5256_p10 = pnand %p5255_p9, %p5249_p4 }
  0x2a   : > { %5259 = shalt.err (!%p5256_p10)
}
  0x2b   : > { %s7839_s18 = smov 512   ;;  %s7840_s26 = smov 32  }
  0x2c   : > { %s7854_s5 = sld [smem:[#allocation48_spill]]  ;;  %s5271_s13 = scalar_lea.vmem %s5663_s17, 64 }
  0x2d   : > { %p5272_p11 = scmp.ne.s32.totalorder %s5663_s17, %s5271_s13  ;;  %p5279_p0 = scmp.lt.s32.totalorder %s5663_s17, %s5663_s17 }
  0x2e   : > { %p5280_p1 = scmp.lt.s32.totalorder %s5271_s13, %s5271_s13 }
  0x2f   : > { %p5274_p12 = pnand %p5272_p11, %p5669_p6 }
  0x30   : > { %p5281_p4 = por %p5280_p1, %p5279_p0 }
  0x31   : > { %p5275_p13 = pneg %p5274_p12 }
  0x32   : > { %5057 = dma.hbm_to_vmem [thread:$0]  (!%p5659_p5), %s7854_s5, 50176, %s5655_s14, [#allocation12], %s7839_s18, %s7839_s18, %s7840_s26  }
  0x33   : > { %p5282_p7 = pnand %p5281_p4, %p5275_p13 }
  0x35   : > { %5285 = shalt.err (!%p5282_p7)
}
  0x36   : > { %5063 = dma.hbm_to_vmem [thread:$0]  (!%p5659_p5), %s7833_s7, 64, %s5663_s17, [#allocation15]  }
  0x37   : > { %s5297_s14 = scalar_lea.vmem %s436_s19, 48  ;;  %s5304_s27 = scalar_lea.vmem %s436_s19, 64 }
  0x38   : > { %p5298_p8 = scmp.ne.s32.totalorder %s436_s19, %s5297_s14  ;;  %p5305_p11 = scmp.lt.s32.totalorder %s436_s19, %s436_s19 }
  0x39   : > { %p5306_p12 = scmp.lt.s32.totalorder %s5304_s27, %s5297_s14 }
  0x3a   : > { %p5300_p9 = pnand %p5298_p8, %p5669_p6 }
  0x3b   : > { %p5307_p13 = por %p5306_p12, %p5305_p11 }
  0x3c   : > { %p5301_p10 = pneg %p5300_p9 }
  0x3e   : > { %p5308_p0 = pnand %p5307_p13, %p5301_p10 }
  0x40   : > { %5311 = shalt.err (!%p5308_p0)
}
  0x41   : > { %5069 = dma.hbm_to_vmem [thread:$0]  (!%p5659_p5), %s7835_s9, 48, %s436_s19, [#allocation18]  }
  0x42   : > { %s37_s3 = sadd.s32 1, %s5522_s23  ;;  %s40_s17 = sadd.s32 1, %s5526_s24 }
  0x43   : > { %p38_p1 = scmp.ge.s32.totalorder %s37_s3, 2  ;;  %s5538_s16 = smov [#allocation6]  }
  0x44   : > { %s352_s14 = sshll.u32 %s5538_s16, 4  ;;  %s5539_s27 = smov [#allocation10]   ;;  %s353_s14 = int_to_ptr.vmem [resolvable:$true] %s352_s14 }
  0x45   : > { %s7899_s3 = smov (%p38_p1, %s37_s3), 0  ;;  %s7901_s17 = smov (!%p38_p1, %s40_s17), %s5526_s24 }
  0x46   : > { %s374_s18 = sshll.u32 %s5539_s27, 4  ;;  %p42_p4 = scmp.ge.s32.totalorder %s7901_s17, 2  ;;  %s375_s18 = int_to_ptr.vmem [resolvable:$true] %s374_s18 }
  0x47   : > { %s5323_s26 = scalar_lea.vmem %s353_s14, 32  ;;  %p5331_p10 = scmp.lt.s32.totalorder %s353_s14, %s353_s14 }
  0x48   : > { %p5324_p7 = scmp.ne.s32.totalorder %s353_s14, %s5323_s26  ;;  %p5332_p11 = scmp.lt.s32.totalorder %s5323_s26, %s5323_s26 }
  0x4a   : > { %p5326_p8 = pnand %p5324_p7, %p5669_p6  ;;  %p5333_p12 = por %p5332_p11, %p5331_p10 }
  0x4c   : > { %p5327_p9 = pneg %p5326_p8 }
  0x4e   : > { %p5334_p13 = pnand %p5333_p12, %p5327_p9 }
  0x50   : > { %5337 = shalt.err (!%p5334_p13)
}
  0x51   : > { %s7855_s2 = sld [smem:[#allocation45_spill]]  ;;  %s7903_s17 = smov (%p42_p4, %s7901_s17), 0 }
  0x52   : > { %s5349_s13 = scalar_lea.vmem %s375_s18, 32  ;;  %p5357_p8 = scmp.lt.s32.totalorder %s375_s18, %s375_s18 }
  0x53   : > { %p5350_p0 = scmp.ne.s32.totalorder %s375_s18, %s5349_s13  ;;  %p5358_p2 = scmp.lt.s32.totalorder %s5349_s13, %s5349_s13 }
  0x55   : > { %p5352_p1 = pnand %p5350_p0, %p5669_p6  ;;  %p5359_p10 = por %p5358_p2, %p5357_p8 }
  0x57   : > { %5048 = dma.hbm_to_vmem [thread:$0]  (!%p5659_p5), %s7855_s2, 32, %s353_s14, [#allocation7]  }
  0x58   : > { %p5353_p7 = pneg %p5352_p1 }
  0x5a   : > { %p5360_p9 = pnand %p5359_p10, %p5353_p7 }
  0x5c   : > { %5363 = shalt.err (!%p5360_p9)
}
  0x5d   : > { %s7856_s4 = sld [smem:[#allocation47_spill]]  ;;  %s5540_s14 = smov [#allocation13]  }
  0x5e   : > { %s397_s27 = sshll.u32 %s5540_s14, 4  ;;  %s5541_s19 = smov [#allocation16]   ;;  %s398_s27 = int_to_ptr.vmem [resolvable:$true] %s397_s27 }
  0x5f   : > { %s421_s28 = sshll.u32 %s5541_s19, 4  ;;  %s5375_s2 = scalar_lea.vmem %s398_s27, 16384  ;;  %s422_s28 = int_to_ptr.vmem [resolvable:$true] %s421_s28 }
  0x60   : > { %p5376_p4 = scmp.ne.s32.totalorder %s398_s27, %s5375_s2  ;;  %p5383_p2 = scmp.lt.s32.totalorder %s398_s27, %s398_s27 }
  0x61   : > { %p5384_p13 = scmp.lt.s32.totalorder %s5375_s2, %s5375_s2 }
  0x62   : > { %p5378_p11 = pnand %p5376_p4, %p5669_p6 }
  0x63   : > { %5054 = dma.hbm_to_vmem [thread:$0]  (!%p5659_p5), %s7856_s4, 32, %s375_s18, [#allocation9]  }
  0x64   : > { %p5379_p12 = pneg %p5378_p11  ;;  %p5385_p0 = por %p5384_p13, %p5383_p2 }
  0x66   : > { %p5386_p1 = pnand %p5385_p0, %p5379_p12 }
  0x68   : > { %5389 = shalt.err (!%p5386_p1)
}
  0x69   : > { %s7857_s13 = smov 32   ;;  %s7858_s26 = smov 512  }
  0x6a   : > { %5060 = dma.hbm_to_vmem [thread:$0]  (!%p5659_p5), %s7832_s6, 16384, %s398_s27, [#allocation12], %s7858_s26, %s7858_s26, %s7857_s13  }
  0x6b   : > { %s5401_s14 = scalar_lea.vmem %s422_s28, 24576  ;;  %p5409_p9 = scmp.lt.s32.totalorder %s422_s28, %s422_s28 }
  0x6c   : > { %p5402_p7 = scmp.ne.s32.totalorder %s422_s28, %s5401_s14  ;;  %p5410_p4 = scmp.lt.s32.totalorder %s5401_s14, %s5401_s14 }
  0x6e   : > { %p5404_p8 = pnand %p5402_p7, %p5669_p6  ;;  %p5411_p11 = por %p5410_p4, %p5409_p9 }
  0x70   : > { %p5405_p10 = pneg %p5404_p8 }
  0x72   : > { %p5412_p12 = pnand %p5411_p11, %p5405_p10 }
  0x74   : > { %5415 = shalt.err (!%p5412_p12)
}
  0x75   : > { %s5542_s2 = smov 384   ;;  %s5543_s19 = smov 24  }
  0x76   : > { %5066 = dma.hbm_to_vmem [thread:$0]  (!%p5659_p5), %s7834_s8, 24576, %s422_s28, [#allocation15], %s5542_s2, %s5542_s2, %s5543_s19  }
  0x77   : > { %s5544_s27 = smov [#allocation19]  }
  0x78   : > { %s445_s13 = sshll.u32 %s5544_s27, 4  ;;  %s446_s13 = int_to_ptr.vmem [resolvable:$true] %s445_s13 }
  0x79   : > { %s5427_s26 = scalar_lea.vmem %s446_s13, 6144  ;;  %p5435_p1 = scmp.lt.s32.totalorder %s446_s13, %s446_s13 }
  0x7a   : > { %p5428_p2 = scmp.ne.s32.totalorder %s446_s13, %s5427_s26  ;;  %p5436_p7 = scmp.lt.s32.totalorder %s5427_s26, %s5427_s26 }
  0x7c   : > { %p5430_p13 = pnand %p5428_p2, %p5669_p6  ;;  %p5437_p8 = por %p5436_p7, %p5435_p1 }
  0x7e   : > { %p5431_p0 = pneg %p5430_p13 }
  0x80   : > { %p5438_p10 = pnand %p5437_p8, %p5431_p0 }
  0x82   : > { %5441 = shalt.err (!%p5438_p10)
}
  0x83   : > { %s5545_s16 = smov 128   ;;  %s5546_s14 = smov 8  }
  0x84   : > { %5072 = dma.hbm_to_vmem [thread:$0]  (!%p5659_p5), %s7836_s10, 6144, %s446_s13, [#allocation18], %s5545_s16, %s5545_s16, %s5546_s14  }
  0x85   : > { %s5547_s2 = smov [#allocation20]  }
  0x86   : > { %s459_s19 = sshll.u32 %s5547_s2, 4  ;;  %s460_s19 = int_to_ptr.vmem [resolvable:$true] %s459_s19 }
  0x87   : > { %s5453_s18 = scalar_lea.vmem %s460_s19, 16  ;;  %s5460_s27 = scalar_lea.vmem %s460_s19, 32 }
  0x88   : > { %p5454_p9 = scmp.ne.s32.totalorder %s460_s19, %s5453_s18  ;;  %p5461_p12 = scmp.lt.s32.totalorder %s460_s19, %s460_s19 }
  0x89   : > { %p5462_p2 = scmp.lt.s32.totalorder %s5460_s27, %s5453_s18 }
  0x8a   : > { %p5456_p4 = pnand %p5454_p9, %p5669_p6 }
  0x8b   : > { %p5463_p13 = por %p5462_p2, %p5461_p12 }
  0x8c   : > { %p5457_p11 = pneg %p5456_p4 }
  0x8e   : > { %p5464_p0 = pnand %p5463_p13, %p5457_p11 }
  0x90   : > { %5467 = shalt.err (!%p5464_p0)
}
  0x91   : > { %5075 = dma.hbm_to_vmem [thread:$0]  (!%p5659_p5), %s7837_s11, 16, %s460_s19, [#allocation21]  }
  0x92   : > { %488 = sbr.rel (%p5649_p3) target bundleno = 1920 (0x780), region = 68  ;;  %p7859_p1 = scmp.ne.s32.totalorder (!%p5649_p3), %s7849_s29, 0 }
  0x97   : > { %5489 = dma.done.wait (%p7859_p1), [#allocation7], 32  }
  0x98   : > { %5491 = vsyncadd (%p7859_p1), [#allocation7], 4294967264 }
  0x99   : > { %5493 = dma.done.wait (%p7859_p1), [#allocation9], 64  }
  0x9a   : > { %5495 = vsyncadd (%p7859_p1), [#allocation9], 4294967232 }
  0x9b   : > { %5497 = dma.done.wait (%p7859_p1), [#allocation12], 66560  }
  0x9c   : > { %5499 = vsyncadd (%p7859_p1), [#allocation12], 4294900736 }
  0x9d   : > { %5501 = dma.done.wait (%p7859_p1), [#allocation15], 24640  }
  0x9e   : > { %5503 = vsyncadd (%p7859_p1), [#allocation15], 4294942656 }
  0x9f   : > { %5505 = dma.done.wait (%p7859_p1), [#allocation18], 6192  }
  0xa0   : > { %5507 = vsyncadd (%p7859_p1), [#allocation18], 4294961104 }
  0xa1   : > { %5509 = dma.done.wait (%p7859_p1), [#allocation21], 16  }
  0xa2   : > { %5511 = vsyncadd (%p7859_p1), [#allocation21], 4294967280  ;;  %s571_s5 = ssub.s32 1, %s5518_s22  ;;  %s584_s30 = smul.u32 %s5514_s21, %s5518_s22 }
  0xa3   : > { %s572_s15 = smul.u32 %s5514_s21, %s571_s5  ;;  %s4726_s20 = sshll.u32 %s5514_s21, 6 }
  0xa4   : > { %s4724_s13 = sshll.u32 %s584_s30, 3  ;;  %p4727_p6 = scmp.ne.s32.totalorder %s5518_s22, 0 }
  0xa5   : > { %s573_s16 = sadd.s32 %s5518_s22, %s572_s15  ;;  %p586_p3 = scmp.lt.s32.totalorder %s4724_s13, 15 }
  0xa6   : > { %s4722_s14 = sshll.u32 %s573_s16, 3  ;;  %p4728_p7 = scmp.ne.s32.totalorder (!%p4727_p6), %s5514_s21, 0 }
  0xa7   : > { %p575_p5 = scmp.lt.s32.totalorder %s4722_s14, 15  ;;  %s7905_s13 = smov (!%p586_p3, %s4724_s13), 15 }
  0xa8   : > { %s4725_s4 = sshll.u32 %s7905_s13, 3  ;;  %596 = sbr.rel (%p4727_p6) target bundleno = 566 (0x236), region = 112 }
  0xa9   : > { %s7907_s14 = smov (!%p575_p5, %s4722_s14), 15  ;;  %s5802_s19 = scalar_lea.vmem %s7838_s12, %s4725_s4 }
  0xaa   : > { %s5004_s29 = smul.u32 56, %s7907_s14 }
  0xac   : > { %s5807_s26 = scalar_lea.vmem %s7826_s0, %s5004_s29 }
  0xad   : > { %600 = sbr.rel (%p4728_p7) target bundleno = 182 (0xb6), region = 116 }
  0xb2   : > { %v601_v0 = vlaneseq  ;;  %v5548_v1 = vmov 0.0  }
  0xb4   : > { %vm603_vm0 = vcmp.lt.s32.totalorder %v601_v0, 256 }
  0xb5   : > { %605 = vst.msk [vmem:[#allocation4] sm:$0x3] %vm603_vm0, %v5548_v1  ;;  %606 = vst.msk [vmem:[#allocation5] sm:$0x3] %vm603_vm0, %v5548_v1 }
  0xb6 PF: > { %v756_v2 = vld [vmem:[%s7827_s1 + $0xf8] sm:$0xff]  ;;  %v755_v3 = vld [vmem:[%s7827_s1 + $0xf0] sm:$0xff]  ;;  %v754_v4 = vld [vmem:[%s7827_s1 + $0xe8] sm:$0xff]  ;;  %s6032_s15 = sshra.s32 %s4726_s20, 3  ;;  %vm674_vm1 = vcmask 130048  }
  0xb7   : > { %957 = vmatprep.subr.mxu0 %v756_v2  ;;  %v820_v5 = vld [vmem:[%s7827_s1 + $0x2f8] sm:$0xff]  ;;  %v753_v6 = vld [vmem:[%s7827_s1 + $0xe0] sm:$0xff]  ;;  %v819_v7 = vld [vmem:[%s7827_s1 + $0x2f0] sm:$0xff]  ;;  %s4764_s29 = smul.u32 56, %s6032_s15  ;;  %s4765_s16 = sshll.u32 %s6032_s15, 4 }
  0xb8   : > { %958 = vmatpush1.msra.mxu0 %v755_v3  ;;  %1070 = vmatprep.subr.mxu1 %v820_v5  ;;  %v752_v8 = vld [vmem:[%s7827_s1 + $0xd8] sm:$0xff]  ;;  %v818_v9 = vld [vmem:[%s7827_s1 + $0x2e8] sm:$0xff]  ;;  %v751_v10 = vld [vmem:[%s7827_s1 + $0xd0] sm:$0xff]  ;;  %s6824_s4 = scalar_lea.vmem [#allocation3], %s4765_s16 }
  0xb9   : > { %959 = vmatprep.subr.mxu0 %v754_v4  ;;  %1071 = vmatpush1.msra.mxu1 %v819_v7  ;;  %v817_v11 = vld [vmem:[%s7827_s1 + $0x2e0] sm:$0xff]  ;;  %v816_v12 = vld [vmem:[%s7827_s1 + $0x2d8] sm:$0xff]  ;;  %v750_v13 = vld [vmem:[%s7827_s1 + $0xc8] sm:$0xff]  ;;  %s6088_s14 = scalar_lea.vmem [#allocation2], %s4764_s29 }
  0xba   : > { %960 = vmatpush1.msra.mxu0 %v753_v6  ;;  %1072 = vmatprep.subr.mxu1 %v818_v9  ;;  %v815_v14 = vld [vmem:[%s7827_s1 + $0x2d0] sm:$0xff]  ;;  %v749_v15 = vld [vmem:[%s7827_s1 + $0xc0] sm:$0xff]  ;;  %v814_v16 = vld [vmem:[%s7827_s1 + $0x2c8] sm:$0xff] }
  0xbb   : > { %961 = vmatprep.subr.mxu0 %v752_v8  ;;  %1073 = vmatpush1.msra.mxu1 %v817_v11  ;;  %v748_v17 = vld [vmem:[%s7827_s1 + $0xb8] sm:$0xff]  ;;  %v813_v18 = vld [vmem:[%s7827_s1 + $0x2c0] sm:$0xff]  ;;  %v747_v19 = vld [vmem:[%s7827_s1 + $0xb0] sm:$0xff] }
  0xbc   : > { %962 = vmatpush1.msra.mxu0 %v751_v10  ;;  %1074 = vmatprep.subr.mxu1 %v816_v12  ;;  %v812_v20 = vld [vmem:[%s7827_s1 + $0x2b8] sm:$0xff]  ;;  %v746_v21 = vld [vmem:[%s7827_s1 + $0xa8] sm:$0xff]  ;;  %v811_v22 = vld [vmem:[%s7827_s1 + $0x2b0] sm:$0xff] }
  0xbd   : > { %963 = vmatprep.subr.mxu0 %v750_v13  ;;  %1075 = vmatpush1.msra.mxu1 %v815_v14  ;;  %v745_v23 = vld [vmem:[%s7827_s1 + $0xa0] sm:$0xff]  ;;  %v810_v24 = vld [vmem:[%s7827_s1 + $0x2a8] sm:$0xff]  ;;  %v744_v25 = vld [vmem:[%s7827_s1 + $0x98] sm:$0xff] }
  0xbe   : > { %964 = vmatpush1.msra.mxu0 %v749_v15  ;;  %1076 = vmatprep.subr.mxu1 %v814_v16  ;;  %v809_v26 = vld [vmem:[%s7827_s1 + $0x2a0] sm:$0xff]  ;;  %v743_v27 = vld [vmem:[%s7827_s1 + $0x90] sm:$0xff]  ;;  %v808_v28 = vld [vmem:[%s7827_s1 + $0x298] sm:$0xff] }
  0xbf   : > { %965 = vmatprep.subr.mxu0 %v748_v17  ;;  %1077 = vmatpush1.msra.mxu1 %v813_v18  ;;  %v742_v29 = vld [vmem:[%s7827_s1 + $0x88] sm:$0xff]  ;;  %v807_v30 = vld [vmem:[%s7827_s1 + $0x290] sm:$0xff]  ;;  %v741_v31 = vld [vmem:[%s7827_s1 + $0x80] sm:$0xff] }
  0xc0   : > { %966 = vmatpush1.msra.mxu0 %v747_v19  ;;  %1078 = vmatprep.subr.mxu1 %v812_v20  ;;  %v806_v32 = vld [vmem:[%s7827_s1 + $0x288] sm:$0xff]  ;;  %v740_v33 = vld [vmem:[%s7827_s1 + $0x78] sm:$0xff]  ;;  %v805_v34 = vld [vmem:[%s7827_s1 + $0x280] sm:$0xff] }
  0xc1   : > { %967 = vmatprep.subr.mxu0 %v746_v21  ;;  %1079 = vmatpush1.msra.mxu1 %v811_v22  ;;  %v739_v35 = vld [vmem:[%s7827_s1 + $0x70] sm:$0xff]  ;;  %v804_v36 = vld [vmem:[%s7827_s1 + $0x278] sm:$0xff]  ;;  %v738_v37 = vld [vmem:[%s7827_s1 + $0x68] sm:$0xff] }
  0xc2   : > { %968 = vmatpush1.msra.mxu0 %v745_v23  ;;  %1080 = vmatprep.subr.mxu1 %v810_v24  ;;  %v803_v38 = vld [vmem:[%s7827_s1 + $0x270] sm:$0xff]  ;;  %v737_v39 = vld [vmem:[%s7827_s1 + $0x60] sm:$0xff]  ;;  %v802_v40 = vld [vmem:[%s7827_s1 + $0x268] sm:$0xff] }
  0xc3   : > { %969 = vmatprep.subr.mxu0 %v744_v25  ;;  %1081 = vmatpush1.msra.mxu1 %v809_v26  ;;  %v736_v41 = vld [vmem:[%s7827_s1 + $0x58] sm:$0xff]  ;;  %v801_v42 = vld [vmem:[%s7827_s1 + $0x260] sm:$0xff]  ;;  %v735_v43 = vld [vmem:[%s7827_s1 + $0x50] sm:$0xff] }
  0xc4   : > { %970 = vmatpush1.msra.mxu0 %v743_v27  ;;  %1082 = vmatprep.subr.mxu1 %v808_v28  ;;  %v800_v44 = vld [vmem:[%s7827_s1 + $0x258] sm:$0xff]  ;;  %v734_v45 = vld [vmem:[%s7827_s1 + $0x48] sm:$0xff]  ;;  %v799_v46 = vld [vmem:[%s7827_s1 + $0x250] sm:$0xff] }
  0xc5   : > { %971 = vmatprep.subr.mxu0 %v742_v29  ;;  %1083 = vmatpush1.msra.mxu1 %v807_v30  ;;  %v733_v47 = vld [vmem:[%s7827_s1 + $0x40] sm:$0xff]  ;;  %v798_v48 = vld [vmem:[%s7827_s1 + $0x248] sm:$0xff]  ;;  %v732_v49 = vld [vmem:[%s7827_s1 + $0x38] sm:$0xff] }
  0xc6   : > { %972 = vmatpush1.msra.mxu0 %v741_v31  ;;  %1084 = vmatprep.subr.mxu1 %v806_v32  ;;  %v797_v50 = vld [vmem:[%s7827_s1 + $0x240] sm:$0xff]  ;;  %v731_v51 = vld [vmem:[%s7827_s1 + $0x30] sm:$0xff]  ;;  %v796_v52 = vld [vmem:[%s7827_s1 + $0x238] sm:$0xff] }
  0xc7   : > { %973 = vmatprep.subr.mxu0 %v740_v33  ;;  %1085 = vmatpush1.msra.mxu1 %v805_v34  ;;  %v730_v53 = vld [vmem:[%s7827_s1 + $0x28] sm:$0xff]  ;;  %v795_v54 = vld [vmem:[%s7827_s1 + $0x230] sm:$0xff]  ;;  %v729_v55 = vld [vmem:[%s7827_s1 + $0x20] sm:$0xff] }
  0xc8   : > { %974 = vmatpush1.msra.mxu0 %v739_v35  ;;  %1086 = vmatprep.subr.mxu1 %v804_v36  ;;  %v794_v56 = vld [vmem:[%s7827_s1 + $0x228] sm:$0xff]  ;;  %v728_v57 = vld [vmem:[%s7827_s1 + $0x18] sm:$0xff]  ;;  %v793_v58 = vld [vmem:[%s7827_s1 + $0x220] sm:$0xff] }
  0xc9   : > { %975 = vmatprep.subr.mxu0 %v738_v37  ;;  %1087 = vmatpush1.msra.mxu1 %v803_v38  ;;  %v727_v59 = vld [vmem:[%s7827_s1 + $0x10] sm:$0xff]  ;;  %v792_v60 = vld [vmem:[%s7827_s1 + $0x218] sm:$0xff]  ;;  %v726_v61 = vld [vmem:[%s7827_s1 + $0x8] sm:$0xff] }
  0xca   : > { %976 = vmatpush1.msra.mxu0 %v737_v39  ;;  %1088 = vmatprep.subr.mxu1 %v802_v40  ;;  %v791_v62 = vld [vmem:[%s7827_s1 + $0x210] sm:$0xff]  ;;  %v725_v63 = vld [vmem:[%s7827_s1] sm:$0xff]  ;;  %v790_v0 = vld [vmem:[%s7827_s1 + $0x208] sm:$0xff] }
  0xcb   : > { %977 = vmatprep.subr.mxu0 %v736_v41  ;;  %1089 = vmatpush1.msra.mxu1 %v801_v42  ;;  %v788_v1 = vld [vmem:[%s7827_s1 + $0x1f8] sm:$0xff]  ;;  %v789_v2 = vld [vmem:[%s7827_s1 + $0x200] sm:$0xff]  ;;  %v787_v3 = vld [vmem:[%s7827_s1 + $0x1f0] sm:$0xff] }
  0xcc   : > { %978 = vmatpush1.msra.mxu0 %v735_v43  ;;  %1090 = vmatprep.subr.mxu1 %v800_v44  ;;  %v852_v4 = vld [vmem:[%s7827_s1 + $0x3f8] sm:$0xff]  ;;  %v786_v5 = vld [vmem:[%s7827_s1 + $0x1e8] sm:$0xff]  ;;  %v851_v6 = vld [vmem:[%s7827_s1 + $0x3f0] sm:$0xff] }
  0xcd   : > { %979 = vmatprep.subr.mxu0 %v734_v45  ;;  %1091 = vmatpush1.msra.mxu1 %v799_v46  ;;  %v785_v7 = vld [vmem:[%s7827_s1 + $0x1e0] sm:$0xff]  ;;  %v850_v8 = vld [vmem:[%s7827_s1 + $0x3e8] sm:$0xff]  ;;  %v784_v9 = vld [vmem:[%s7827_s1 + $0x1d8] sm:$0xff] }
  0xce   : > { %980 = vmatpush1.msra.mxu0 %v733_v47  ;;  %1092 = vmatprep.subr.mxu1 %v798_v48  ;;  %v849_v10 = vld [vmem:[%s7827_s1 + $0x3e0] sm:$0xff]  ;;  %v783_v11 = vld [vmem:[%s7827_s1 + $0x1d0] sm:$0xff]  ;;  %v848_v12 = vld [vmem:[%s7827_s1 + $0x3d8] sm:$0xff] }
  0xcf   : > { %981 = vmatprep.subr.mxu0 %v732_v49  ;;  %1093 = vmatpush1.msra.mxu1 %v797_v50  ;;  %v782_v13 = vld [vmem:[%s7827_s1 + $0x1c8] sm:$0xff]  ;;  %v847_v14 = vld [vmem:[%s7827_s1 + $0x3d0] sm:$0xff]  ;;  %v781_v15 = vld [vmem:[%s7827_s1 + $0x1c0] sm:$0xff] }
  0xd0   : > { %982 = vmatpush1.msra.mxu0 %v731_v51  ;;  %1094 = vmatprep.subr.mxu1 %v796_v52  ;;  %v846_v16 = vld [vmem:[%s7827_s1 + $0x3c8] sm:$0xff]  ;;  %v780_v17 = vld [vmem:[%s7827_s1 + $0x1b8] sm:$0xff]  ;;  %v845_v18 = vld [vmem:[%s7827_s1 + $0x3c0] sm:$0xff] }
  0xd1   : > { %983 = vmatprep.subr.mxu0 %v730_v53  ;;  %1095 = vmatpush1.msra.mxu1 %v795_v54  ;;  %v779_v19 = vld [vmem:[%s7827_s1 + $0x1b0] sm:$0xff]  ;;  %v844_v20 = vld [vmem:[%s7827_s1 + $0x3b8] sm:$0xff]  ;;  %v778_v21 = vld [vmem:[%s7827_s1 + $0x1a8] sm:$0xff] }
  0xd2   : > { %984 = vmatpush1.msra.mxu0 %v729_v55  ;;  %1096 = vmatprep.subr.mxu1 %v794_v56  ;;  %v843_v22 = vld [vmem:[%s7827_s1 + $0x3b0] sm:$0xff]  ;;  %v777_v23 = vld [vmem:[%s7827_s1 + $0x1a0] sm:$0xff]  ;;  %v842_v24 = vld [vmem:[%s7827_s1 + $0x3a8] sm:$0xff] }
  0xd3   : > { %985 = vmatprep.subr.mxu0 %v728_v57  ;;  %1097 = vmatpush1.msra.mxu1 %v793_v58  ;;  %v6078_v25 = vld [vmem:[%s5807_s26 + $0x8] sm:$0xff]  ;;  %v776_v26 = vld [vmem:[%s7827_s1 + $0x198] sm:$0xff]  ;;  %v841_v27 = vld [vmem:[%s7827_s1 + $0x3a0] sm:$0xff] }
  0xd4   : > { %986 = vmatpush1.msra.mxu0 %v727_v59  ;;  %1098 = vmatprep.subr.mxu1 %v792_v60  ;;  %669 = vst [vmem:[%s6088_s14 + $0x8] sm:$0xff] %v6078_v25  ;;  %v6093_v28 = vld [vmem:[%s5807_s26] sm:$0xff]  ;;  %v775_v29 = vld [vmem:[%s7827_s1 + $0x190] sm:$0xff]  ;;  %v840_v30 = vld [vmem:[%s7827_s1 + $0x398] sm:$0xff] }
  0xd5   : > { %987 = vmatprep.subr.mxu0 %v726_v61  ;;  %1099 = vmatpush1.msra.mxu1 %v791_v62  ;;  %668 = vst [vmem:[%s6088_s14] sm:$0xff] %v6093_v28  ;;  %v6104_v31 = vld [vmem:[%s5807_s26 + $0x18] sm:$0xff]  ;;  %v774_v32 = vld [vmem:[%s7827_s1 + $0x188] sm:$0xff]  ;;  %v839_v33 = vld [vmem:[%s7827_s1 + $0x390] sm:$0xff] }
  0xd6   : > { %988 = vmatpush1.msra.mxu0 %v725_v63  ;;  %1100 = vmatprep.subr.mxu1 %v790_v0  ;;  %671 = vst [vmem:[%s6088_s14 + $0x18] sm:$0xff] %v6104_v31  ;;  %v6115_v34 = vld [vmem:[%s5807_s26 + $0x10] sm:$0xff]  ;;  %v773_v35 = vld [vmem:[%s7827_s1 + $0x180] sm:$0xff]  ;;  %v838_v36 = vld [vmem:[%s7827_s1 + $0x388] sm:$0xff] }
  0xd7   : > { %989 = vmatprep.subr.mxu0 %v788_v1  ;;  %1101 = vmatpush1.msra.mxu1 %v789_v2  ;;  %670 = vst [vmem:[%s6088_s14 + $0x10] sm:$0xff] %v6115_v34  ;;  %v772_v37 = vld [vmem:[%s7827_s1 + $0x178] sm:$0xff]  ;;  %v837_v38 = vld [vmem:[%s7827_s1 + $0x380] sm:$0xff]  ;;  %v771_v39 = vld [vmem:[%s7827_s1 + $0x170] sm:$0xff] }
  0xd8   : > { %990 = vmatpush2.msra.mxu0 %v787_v3  ;;  %1102 = vmatprep.subr.mxu1 %v852_v4  ;;  %v836_v40 = vld [vmem:[%s7827_s1 + $0x378] sm:$0xff]  ;;  %v770_v41 = vld [vmem:[%s7827_s1 + $0x168] sm:$0xff]  ;;  %v835_v42 = vld [vmem:[%s7827_s1 + $0x370] sm:$0xff] }
  0xd9   : > { %991 = vmatprep.subr.mxu0 %v786_v5  ;;  %1103 = vmatpush2.msra.mxu1 %v851_v6  ;;  %v769_v43 = vld [vmem:[%s7827_s1 + $0x160] sm:$0xff]  ;;  %v834_v44 = vld [vmem:[%s7827_s1 + $0x368] sm:$0xff]  ;;  %v768_v45 = vld [vmem:[%s7827_s1 + $0x158] sm:$0xff] }
  0xda   : > { %992 = vmatpush2.msra.mxu0 %v785_v7  ;;  %1104 = vmatprep.subr.mxu1 %v850_v8  ;;  %v833_v46 = vld [vmem:[%s7827_s1 + $0x360] sm:$0xff]  ;;  %v767_v47 = vld [vmem:[%s7827_s1 + $0x150] sm:$0xff]  ;;  %v832_v48 = vld [vmem:[%s7827_s1 + $0x358] sm:$0xff] }
  0xdb   : > { %993 = vmatprep.subr.mxu0 %v784_v9  ;;  %1105 = vmatpush2.msra.mxu1 %v849_v10  ;;  %v766_v49 = vld [vmem:[%s7827_s1 + $0x148] sm:$0xff]  ;;  %v831_v50 = vld [vmem:[%s7827_s1 + $0x350] sm:$0xff]  ;;  %v765_v51 = vld [vmem:[%s7827_s1 + $0x140] sm:$0xff] }
  0xdc   : > { %994 = vmatpush2.msra.mxu0 %v783_v11  ;;  %1106 = vmatprep.subr.mxu1 %v848_v12  ;;  %v764_v52 = vld [vmem:[%s7827_s1 + $0x138] sm:$0xff]  ;;  %v830_v53 = vld [vmem:[%s7827_s1 + $0x348] sm:$0xff]  ;;  %v763_v54 = vld [vmem:[%s7827_s1 + $0x130] sm:$0xff] }
  0xdd   : > { %995 = vmatprep.subr.mxu0 %v782_v13  ;;  %1107 = vmatpush2.msra.mxu1 %v847_v14  ;;  %v829_v55 = vld [vmem:[%s7827_s1 + $0x340] sm:$0xff]  ;;  %v762_v56 = vld [vmem:[%s7827_s1 + $0x128] sm:$0xff]  ;;  %v828_v57 = vld [vmem:[%s7827_s1 + $0x338] sm:$0xff] }
  0xde   : > { %996 = vmatpush2.msra.mxu0 %v781_v15  ;;  %1108 = vmatprep.subr.mxu1 %v846_v16  ;;  %v761_v58 = vld [vmem:[%s7827_s1 + $0x120] sm:$0xff]  ;;  %v827_v60 = vld [vmem:[%s7827_s1 + $0x330] sm:$0xff]  ;;  %v760_v61 = vld [vmem:[%s7827_s1 + $0x118] sm:$0xff] }
  0xdf   : > { %997 = vmatprep.subr.mxu0 %v780_v17  ;;  %1109 = vmatpush2.msra.mxu1 %v845_v18  ;;  %v6192_v59 = vld [vmem:[%s5807_s26 + $0x40] sm:$0xff]  ;;  %v6203_v62 = vld [vmem:[%s5807_s26 + $0x38] sm:$0xff]  ;;  %v826_v63 = vld [vmem:[%s7827_s1 + $0x328] sm:$0xff] }
  0xe0   : > { %998 = vmatpush2.msra.mxu0 %v779_v19  ;;  %1110 = vmatprep.subr.mxu1 %v844_v20  ;;  %677 = vst [vmem:[%s6088_s14 + $0x40] sm:$0xff] %v6192_v59  ;;  %676 = vst [vmem:[%s6088_s14 + $0x38] sm:$0xff] %v6203_v62  ;;  %v6211_v0 = vld [vmem:[%s5807_s26 + $0x50] sm:$0xff]  ;;  %v6214_v1 = vld [vmem:[%s5807_s26 + $0x48] sm:$0xff] }
  0xe1   : > { %999 = vmatprep.subr.mxu0 %v778_v21  ;;  %1111 = vmatpush2.msra.mxu1 %v843_v22  ;;  %v759_v2 = vld [vmem:[%s7827_s1 + $0x110] sm:$0xff]  ;;  %v825_v3 = vld [vmem:[%s7827_s1 + $0x320] sm:$0xff]  ;;  %679 = vst [vmem:[%s6088_s14 + $0x50] sm:$0xff] %v6211_v0  ;;  %678 = vst [vmem:[%s6088_s14 + $0x48] sm:$0xff] %v6214_v1 }
  0xe2   : > { %1000 = vmatpush2.msra.mxu0 %v777_v23  ;;  %1112 = vmatprep.subr.mxu1 %v842_v24  ;;  %v6227_v4 = vld [vmem:[%s5807_s26 + $0x78] sm:$0xff]  ;;  %v6235_v6 = vld [vmem:[%s5807_s26 + $0x70] sm:$0xff]  ;;  %v6238_v7 = vld [vmem:[%s5807_s26 + $0x88] sm:$0xff] }
  0xe3   : > { %1001 = vmatprep.subr.mxu0 %v776_v26  ;;  %1113 = vmatpush2.msra.mxu1 %v841_v27  ;;  %v824_v5 = vld [vmem:[%s7827_s1 + $0x318] sm:$0xff]  ;;  %684 = vst [vmem:[%s6088_s14 + $0x78] sm:$0xff] %v6227_v4  ;;  %v758_v8 = vld [vmem:[%s7827_s1 + $0x108] sm:$0xff]  ;;  %v757_v9 = vld [vmem:[%s7827_s1 + $0x100] sm:$0xff] }
  0xe4   : > { %1002 = vmatpush2.msra.mxu0 %v775_v29  ;;  %1114 = vmatprep.subr.mxu1 %v840_v30  ;;  %683 = vst [vmem:[%s6088_s14 + $0x70] sm:$0xff] %v6235_v6  ;;  %686 = vst [vmem:[%s6088_s14 + $0x88] sm:$0xff] %v6238_v7  ;;  %v6251_v10 = vld [vmem:[%s5807_s26 + $0x80] sm:$0xff]  ;;  %v823_v11 = vld [vmem:[%s7827_s1 + $0x310] sm:$0xff] }
  0xe5   : > { %1003 = vmatprep.subr.mxu0 %v774_v32  ;;  %1115 = vmatpush2.msra.mxu1 %v839_v33  ;;  %685 = vst [vmem:[%s6088_s14 + $0x80] sm:$0xff] %v6251_v10  ;;  %v6259_v12 = vld [vmem:[%s5807_s26 + $0xb0] sm:$0xff]  ;;  %v6262_v13 = vld [vmem:[%s5807_s26 + $0xa8] sm:$0xff]  ;;  %v884_v15 = vld [vmem:[%s7827_s1 + $0x4f8] sm:$0xff] }
  0xe6   : > { %1004 = vmatpush2.msra.mxu0 %v773_v35  ;;  %1116 = vmatprep.subr.mxu1 %v838_v36  ;;  %v822_v14 = vld [vmem:[%s7827_s1 + $0x308] sm:$0xff]  ;;  %691 = vst [vmem:[%s6088_s14 + $0xb0] sm:$0xff] %v6259_v12  ;;  %690 = vst [vmem:[%s6088_s14 + $0xa8] sm:$0xff] %v6262_v13  ;;  %v6275_v16 = vld [vmem:[%s5807_s26 + $0xc0] sm:$0xff] }
  0xe7   : > { %1005 = vmatprep.subr.mxu0 %v772_v37  ;;  %1117 = vmatpush2.msra.mxu1 %v837_v38  ;;  %v821_v17 = vld [vmem:[%s7827_s1 + $0x300] sm:$0xff]  ;;  %693 = vst [vmem:[%s6088_s14 + $0xc0] sm:$0xff] %v6275_v16  ;;  %v6284_v18 = vld [vmem:[%s5807_s26 + $0xb8] sm:$0xff]  ;;  %v6287_v19 = vld [vmem:[%s5807_s26 + $0xe8] sm:$0xff] }
  0xe8   : > { %1006 = vmatpush2.msra.mxu0 %v771_v39  ;;  %1118 = vmatprep.subr.mxu1 %v836_v40  ;;  %v883_v20 = vld [vmem:[%s7827_s1 + $0x4f0] sm:$0xff]  ;;  %692 = vst [vmem:[%s6088_s14 + $0xb8] sm:$0xff] %v6284_v18  ;;  %698 = vst [vmem:[%s6088_s14 + $0xe8] sm:$0xff] %v6287_v19  ;;  %v6297_v21 = vld [vmem:[%s5807_s26 + $0xe0] sm:$0xff] }
  0xe9   : > { %1007 = vmatprep.subr.mxu0 %v770_v41  ;;  %1119 = vmatpush2.msra.mxu1 %v835_v42  ;;  %v882_v22 = vld [vmem:[%s7827_s1 + $0x4e8] sm:$0xff]  ;;  %697 = vst [vmem:[%s6088_s14 + $0xe0] sm:$0xff] %v6297_v21  ;;  %v6306_v23 = vld [vmem:[%s5807_s26 + $0xf8] sm:$0xff]  ;;  %v6309_v24 = vld [vmem:[%s5807_s26 + $0xf0] sm:$0xff] }
  0xea   : > { %1008 = vmatpush2.msra.mxu0 %v769_v43  ;;  %1120 = vmatprep.subr.mxu1 %v834_v44  ;;  %700 = vst [vmem:[%s6088_s14 + $0xf8] sm:$0xff] %v6306_v23  ;;  %699 = vst [vmem:[%s6088_s14 + $0xf0] sm:$0xff] %v6309_v24  ;;  %v6319_v26 = vld [vmem:[%s5807_s26 + $0x120] sm:$0xff]  ;;  %v880_v27 = vld [vmem:[%s7827_s1 + $0x4d8] sm:$0xff] }
  0xeb   : > { %1009 = vmatprep.subr.mxu0 %v768_v45  ;;  %1121 = vmatpush2.msra.mxu1 %v833_v46  ;;  %705 = vst [vmem:[%s6088_s14 + $0x120] sm:$0xff] %v6319_v26  ;;  %v6331_v29 = vld [vmem:[%s5807_s26 + $0x118] sm:$0xff]  ;;  %v879_v30 = vld [vmem:[%s7827_s1 + $0x4d0] sm:$0xff]  ;;  %v878_v33 = vld [vmem:[%s7827_s1 + $0x4c8] sm:$0xff] }
  0xec   : > { %1010 = vmatpush2.msra.mxu0 %v767_v47  ;;  %1122 = vmatprep.subr.mxu1 %v832_v48  ;;  %704 = vst [vmem:[%s6088_s14 + $0x118] sm:$0xff] %v6331_v29  ;;  %v6343_v32 = vld [vmem:[%s5807_s26 + $0x130] sm:$0xff]  ;;  %v6355_v35 = vld [vmem:[%s5807_s26 + $0x158] sm:$0xff]  ;;  %v877_v36 = vld [vmem:[%s7827_s1 + $0x4c0] sm:$0xff] }
  0xed   : > { %1011 = vmatprep.subr.mxu0 %v766_v49  ;;  %1123 = vmatpush2.msra.mxu1 %v831_v50  ;;  %707 = vst [vmem:[%s6088_s14 + $0x130] sm:$0xff] %v6343_v32  ;;  %712 = vst [vmem:[%s6088_s14 + $0x158] sm:$0xff] %v6355_v35  ;;  %v6365_v37 = vld [vmem:[%s5807_s26 + $0x150] sm:$0xff]  ;;  %v876_v38 = vld [vmem:[%s7827_s1 + $0x4b8] sm:$0xff] }
  0xee   : > { %1012 = vmatpush2.msra.mxu0 %v765_v51  ;;  %1124 = vmatprep.subr.mxu1 %v830_v53  ;;  %711 = vst [vmem:[%s6088_s14 + $0x150] sm:$0xff] %v6365_v37  ;;  %v6373_v39 = vld [vmem:[%s5807_s26 + $0x168] sm:$0xff]  ;;  %v6376_v40 = vld [vmem:[%s5807_s26 + $0x160] sm:$0xff]  ;;  %v875_v41 = vld [vmem:[%s7827_s1 + $0x4b0] sm:$0xff] }
  0xef   : > { %1013 = vmatprep.subr.mxu0 %v764_v52  ;;  %1125 = vmatpush2.msra.mxu1 %v829_v55  ;;  %714 = vst [vmem:[%s6088_s14 + $0x168] sm:$0xff] %v6373_v39  ;;  %713 = vst [vmem:[%s6088_s14 + $0x160] sm:$0xff] %v6376_v40  ;;  %v6387_v42 = vld [vmem:[%s5807_s26 + $0x190] sm:$0xff]  ;;  %v874_v43 = vld [vmem:[%s7827_s1 + $0x4a8] sm:$0xff] }
  0xf0   : > { %1014 = vmatpush2.msra.mxu0 %v763_v54  ;;  %1126 = vmatprep.subr.mxu1 %v828_v57  ;;  %719 = vst [vmem:[%s6088_s14 + $0x190] sm:$0xff] %v6387_v42  ;;  %v6396_v44 = vld [vmem:[%s5807_s26 + $0x188] sm:$0xff]  ;;  %v6399_v45 = vld [vmem:[%s5807_s26 + $0x1a0] sm:$0xff]  ;;  %v6410_v47 = vld [vmem:[%s5807_s26 + $0x198] sm:$0xff] }
  0xf1   : > { %1015 = vmatprep.subr.mxu0 %v762_v56  ;;  %1127 = vmatpush2.msra.mxu1 %v827_v60  ;;  %v873_v46 = vld [vmem:[%s7827_s1 + $0x4a0] sm:$0xff]  ;;  %718 = vst [vmem:[%s6088_s14 + $0x188] sm:$0xff] %v6396_v44  ;;  %721 = vst [vmem:[%s6088_s14 + $0x1a0] sm:$0xff] %v6399_v45  ;;  %v872_v48 = vld [vmem:[%s7827_s1 + $0x498] sm:$0xff] }
  0xf2   : > { %1016 = vmatpush2.msra.mxu0 %v761_v58  ;;  %1128 = vmatprep.subr.mxu1 %v826_v63  ;;  %v871_v49 = vld [vmem:[%s7827_s1 + $0x490] sm:$0xff]  ;;  %v870_v50 = vld [vmem:[%s7827_s1 + $0x488] sm:$0xff]  ;;  %720 = vst [vmem:[%s6088_s14 + $0x198] sm:$0xff] %v6410_v47  ;;  %v869_v51 = vld [vmem:[%s7827_s1 + $0x480] sm:$0xff] }
  0xf3   : > { %1017 = vmatprep.subr.mxu0 %v760_v61  ;;  %1129 = vmatpush2.msra.mxu1 %v825_v3  ;;  %v6429_v52 = vld [vmem:[%s5807_s26 + $0x28] sm:$0xff]  ;;  %v6432_v53 = vld [vmem:[%s5807_s26 + $0x20] sm:$0xff]  ;;  %v6435_v54 = vld [vmem:[%s5807_s26 + $0x30] sm:$0xff] }
  0xf4   : > { %1018 = vmatpush2.msra.mxu0 %v759_v2  ;;  %1130 = vmatprep.subr.mxu1 %v824_v5  ;;  %v868_v55 = vld [vmem:[%s7827_s1 + $0x478] sm:$0xff]  ;;  %673 = vst [vmem:[%s6088_s14 + $0x28] sm:$0xff] %v6429_v52  ;;  %672 = vst [vmem:[%s6088_s14 + $0x20] sm:$0xff] %v6432_v53  ;;  %v6449_v56 = vld [vmem:[%s5807_s26 + $0x60] sm:$0xff] }
  0xf5   : > { %1019 = vmatprep.subr.mxu0 %v758_v8  ;;  %1021 = vmatprep.mubr.f32.mxu0 %v6078_v25  ;;  %v881_v25 = vld [vmem:[%s7827_s1 + $0x4e0] sm:$0xff]  ;;  %675 = vst.msk [vmem:[%s6088_s14 + $0x30] sm:$0xff] %vm674_vm1, %v6435_v54  ;;  %v6452_v57 = vld [vmem:[%s5807_s26 + $0x58] sm:$0xff]  ;;  %v6455_v58 = vld [vmem:[%s5807_s26 + $0x68] sm:$0xff] }
  0xf6   : > { %1020 = vmatpush2.msra.mxu0 %v757_v9  ;;  %1131 = vmatpush2.msra.mxu1 %v823_v11  ;;  %681 = vst [vmem:[%s6088_s14 + $0x60] sm:$0xff] %v6449_v56  ;;  %680 = vst [vmem:[%s6088_s14 + $0x58] sm:$0xff] %v6452_v57  ;;  %v6469_v60 = vld [vmem:[%s5807_s26 + $0x98] sm:$0xff]  ;;  %v6472_v61 = vld [vmem:[%s5807_s26 + $0x90] sm:$0xff] }
  0xf7   : > { %1022 = vmatmul.mubr.f32.vlgmr.msra.gmra.mxu0 %v6093_v28  ;;  %1132 = vmatprep.subr.mxu1 %v822_v14  ;;  %v920_v28 = vld [vmem:[%s7827_s1 + $0x618] sm:$0xff]  ;;  %682 = vst.msk [vmem:[%s6088_s14 + $0x68] sm:$0xff] %vm674_vm1, %v6455_v58  ;;  %v866_v63 = vld [vmem:[%s7827_s1 + $0x468] sm:$0xff]  ;;  %688 = vst [vmem:[%s6088_s14 + $0x98] sm:$0xff] %v6469_v60 }
  0xf8   : > { %1183 = vmatprep.subr.mxu0 %v884_v15  ;;  %1133 = vmatpush2.msra.mxu1 %v821_v17  ;;  %687 = vst [vmem:[%s6088_s14 + $0x90] sm:$0xff] %v6472_v61  ;;  %v6495_v2 = vld [vmem:[%s5807_s26 + $0xd8] sm:$0xff]  ;;  %v865_v3 = vld [vmem:[%s7827_s1 + $0x460] sm:$0xff]  ;;  %v6563_v14 = vld [vmem:[%s5807_s26 + $0x1b0] sm:$0xff] }
  0xf9   : > { %1134 = vmatprep.mubr.f32.mxu1 %v6104_v31  ;;  %1184 = vmatpush1.msra.mxu0 %v883_v20  ;;  %v919_v31 = vld [vmem:[%s7827_s1 + $0x610] sm:$0xff]  ;;  %696 = vst.msk [vmem:[%s6088_s14 + $0xd8] sm:$0xff] %vm674_vm1, %v6495_v2  ;;  %v6512_v5 = vld [vmem:[%s5807_s26 + $0x100] sm:$0xff]  ;;  %v6532_v9 = vld [vmem:[%s5807_s26 + $0x138] sm:$0xff] }
  0xfa   : > { %1135 = vmatmul.mubr.f32.vlgmr.msra.gmra.mxu1 %v6115_v34  ;;  %1185 = vmatprep.subr.mxu0 %v882_v22  ;;  %v6352_v34 = vld [vmem:[%s5807_s26 + $0x128] sm:$0xff]  ;;  %701 = vst [vmem:[%s6088_s14 + $0x100] sm:$0xff] %v6512_v5  ;;  %v6529_v8 = vld [vmem:[%s5807_s26 + $0x140] sm:$0xff]  ;;  %708 = vst [vmem:[%s6088_s14 + $0x138] sm:$0xff] %v6532_v9 }
  0xfb   : > { %1186 = vmatpush1.msra.mxu0 %v881_v25  ;;  %1027 = vmatprep.mubr.f32.mxu0 %v6192_v59  ;;  %706 = vst [vmem:[%s6088_s14 + $0x128] sm:$0xff] %v6352_v34  ;;  %v867_v59 = vld [vmem:[%s7827_s1 + $0x470] sm:$0xff]  ;;  %709 = vst [vmem:[%s6088_s14 + $0x140] sm:$0xff] %v6529_v8  ;;  %v6546_v11 = vld [vmem:[%s5807_s26 + $0x178] sm:$0xff] }
  0xfc   : > { %1187 = vmatprep.subr.mxu0 %v880_v27  ;;  %1324 = vmatprep.subr.mxu1 %v920_v28  ;;  %716 = vst [vmem:[%s6088_s14 + $0x178] sm:$0xff] %v6546_v11  ;;  %v6566_v15 = vld [vmem:[%s5807_s26 + $0x1a8] sm:$0xff]  ;;  %v863_v17 = vld [vmem:[%s7827_s1 + $0x450] sm:$0xff]  ;;  %723 = vst [vmem:[%s6088_s14 + $0x1b0] sm:$0xff] %v6563_v14 }
  0xfd   : > { %1188 = vmatpush1.msra.mxu0 %v879_v30  ;;  %1325 = vmatpush1.msra.mxu1 %v919_v31  ;;  %722 = vst [vmem:[%s6088_s14 + $0x1a8] sm:$0xff] %v6566_v15  ;;  %v861_v20 = vld [vmem:[%s7827_s1 + $0x440] sm:$0xff]  ;;  %v860_v22 = vld [vmem:[%s7827_s1 + $0x438] sm:$0xff]  ;;  %v855_v27 = vld [vmem:[%s7827_s1 + $0x410] sm:$0xff] }
  0xfe   : > { %1189 = vmatprep.subr.mxu0 %v878_v33  ;;  %1028 = vmatmul.mubr.f32.gmra.mxu0 %v6203_v62  ;;  %v6475_v62 = vld [vmem:[%s5807_s26 + $0xa0] sm:$0xff]  ;;  %v854_v28 = vld [vmem:[%s7827_s1 + $0x408] sm:$0xff]  ;;  %v916_v30 = vld [vmem:[%s7827_s1 + $0x5f8] sm:$0xff] }
  0xff   : > { %1190 = vmatpush1.msra.mxu0 %v877_v36  ;;  %1140 = vmatprep.mubr.f32.mxu1 %v6211_v0  ;;  %689 = vst.msk [vmem:[%s6088_s14 + $0xa0] sm:$0xff] %vm674_vm1, %v6475_v62  ;;  %v6489_v0 = vld [vmem:[%s5807_s26 + $0xd0] sm:$0xff]  ;;  %v857_v25 = vld [vmem:[%s7827_s1 + $0x420] sm:$0xff]  ;;  %v910_v36 = vld [vmem:[%s7827_s1 + $0x5c8] sm:$0xff] }
 0x100   : > { %1191 = vmatprep.subr.mxu0 %v876_v38  ;;  %1141 = vmatmul.mubr.f32.gmra.mxu1 %v6214_v1  ;;  %v6492_v1 = vld [vmem:[%s5807_s26 + $0xc8] sm:$0xff]  ;;  %695 = vst [vmem:[%s6088_s14 + $0xd0] sm:$0xff] %v6489_v0  ;;  %v915_v31 = vld [vmem:[%s7827_s1 + $0x5f0] sm:$0xff]  ;;  %v913_v33 = vld [vmem:[%s7827_s1 + $0x5e0] sm:$0xff]  ;;  %v5549_v38 = vmov 0.0  }
 0x101   : > { %1192 = vmatpush1.msra.mxu0 %v875_v41  ;;  %1033 = vmatprep.mubr.f32.mxu0 %v6227_v4  ;;  %694 = vst [vmem:[%s6088_s14 + $0xc8] sm:$0xff] %v6492_v1  ;;  %v6509_v4 = vld [vmem:[%s5807_s26 + $0x108] sm:$0xff] }
 0x102   : > { %1193 = vmatprep.subr.mxu0 %v874_v43  ;;  %1034 = vmatmul.mubr.f32.gmra.mxu0 %v6235_v6  ;;  %v6515_v6 = vld [vmem:[%s5807_s26 + $0x110] sm:$0xff]  ;;  %702 = vst [vmem:[%s6088_s14 + $0x108] sm:$0xff] %v6509_v4  ;;  %v906_v41 = vld [vmem:[%s7827_s1 + $0x5a8] sm:$0xff]  ;;  %v904_v43 = vld [vmem:[%s7827_s1 + $0x598] sm:$0xff] }
 0x103   : > { %1194 = vmatpush1.msra.mxu0 %v873_v46  ;;  %1146 = vmatprep.mubr.f32.mxu1 %v6238_v7  ;;  %v864_v7 = vld [vmem:[%s7827_s1 + $0x458] sm:$0xff]  ;;  %703 = vst.msk [vmem:[%s6088_s14 + $0x110] sm:$0xff] %vm674_vm1, %v6515_v6  ;;  %v901_v46 = vld [vmem:[%s7827_s1 + $0x580] sm:$0xff] }
 0x104   : > { %1195 = vmatprep.subr.mxu0 %v872_v48  ;;  %1147 = vmatmul.mubr.f32.gmra.mxu1 %v6251_v10  ;;  %v6535_v10 = vld [vmem:[%s5807_s26 + $0x148] sm:$0xff]  ;;  %v899_v48 = vld [vmem:[%s7827_s1 + $0x570] sm:$0xff] }
 0x105   : > { %1196 = vmatpush1.msra.mxu0 %v871_v49  ;;  %1039 = vmatprep.mubr.f32.mxu0 %v6259_v12  ;;  %710 = vst.msk [vmem:[%s6088_s14 + $0x148] sm:$0xff] %vm674_vm1, %v6535_v10  ;;  %v6549_v12 = vld [vmem:[%s5807_s26 + $0x170] sm:$0xff]  ;;  %v898_v49 = vld [vmem:[%s7827_s1 + $0x568] sm:$0xff] }
 0x106   : > { %1197 = vmatprep.subr.mxu0 %v870_v50  ;;  %1040 = vmatmul.mubr.f32.gmra.mxu0 %v6262_v13  ;;  %v6552_v13 = vld [vmem:[%s5807_s26 + $0x180] sm:$0xff]  ;;  %715 = vst [vmem:[%s6088_s14 + $0x170] sm:$0xff] %v6549_v12 }
 0x107   : > { %1198 = vmatpush1.msra.mxu0 %v869_v51  ;;  %1152 = vmatprep.mubr.f32.mxu1 %v6275_v16  ;;  %717 = vst.msk [vmem:[%s6088_s14 + $0x180] sm:$0xff] %vm674_vm1, %v6552_v13  ;;  %v6569_v16 = vld [vmem:[%s5807_s26 + $0x1b8] sm:$0xff]  ;;  %v897_v50 = vld [vmem:[%s7827_s1 + $0x560] sm:$0xff] }
 0x108   : > { %1199 = vmatprep.subr.mxu0 %v868_v55  ;;  %1153 = vmatmul.mubr.f32.gmra.mxu1 %v6284_v18  ;;  %724 = vst.msk [vmem:[%s6088_s14 + $0x1b8] sm:$0xff] %vm674_vm1, %v6569_v16  ;;  %v862_v18 = vld [vmem:[%s7827_s1 + $0x448] sm:$0xff]  ;;  %v896_v51 = vld [vmem:[%s7827_s1 + $0x558] sm:$0xff]  ;;  %v893_v55 = vld [vmem:[%s7827_s1 + $0x540] sm:$0xff] }
 0x109   : > { %1200 = vmatpush1.msra.mxu0 %v867_v59  ;;  %1045 = vmatprep.mubr.f32.mxu0 %v6287_v19  ;;  %v918_v19 = vld [vmem:[%s7827_s1 + $0x608] sm:$0xff]  ;;  %v891_v59 = vld [vmem:[%s7827_s1 + $0x530] sm:$0xff] }
 0x10a   : > { %1201 = vmatprep.subr.mxu0 %v866_v63  ;;  %1046 = vmatmul.mubr.f32.gmra.mxu0 %v6297_v21  ;;  %v917_v21 = vld [vmem:[%s7827_s1 + $0x600] sm:$0xff] }
 0x10b   : > { %1202 = vmatpush1.msra.mxu0 %v865_v3  ;;  %1158 = vmatprep.mubr.f32.mxu1 %v6306_v23  ;;  %v859_v23 = vld [vmem:[%s7827_s1 + $0x430] sm:$0xff]  ;;  %v889_v63 = vld [vmem:[%s7827_s1 + $0x520] sm:$0xff] }
 0x10c   : > { %1203 = vmatprep.subr.mxu0 %v864_v7  ;;  %1159 = vmatmul.mubr.f32.gmra.mxu1 %v6309_v24  ;;  %v858_v24 = vld [vmem:[%s7827_s1 + $0x428] sm:$0xff]  ;;  %v887_v3 = vld [vmem:[%s7827_s1 + $0x510] sm:$0xff]  ;;  %v885_v7 = vld [vmem:[%s7827_s1 + $0x500] sm:$0xff] }
 0x10d   : > { %1204 = vmatpush1.msra.mxu0 %v863_v17  ;;  %1051 = vmatprep.mubr.f32.mxu0 %v6319_v26  ;;  %v856_v26 = vld [vmem:[%s7827_s1 + $0x418] sm:$0xff] }
 0x10e   : > { %1205 = vmatprep.subr.mxu0 %v862_v18  ;;  %1326 = vmatprep.subr.mxu1 %v918_v19 }
 0x10f   : > { %1206 = vmatpush1.msra.mxu0 %v861_v20  ;;  %1327 = vmatpush1.msra.mxu1 %v917_v21 }
 0x110   : > { %1207 = vmatprep.subr.mxu0 %v860_v22  ;;  %1052 = vmatmul.mubr.f32.gmra.mxu0 %v6331_v29  ;;  %v853_v29 = vld [vmem:[%s7827_s1 + $0x400] sm:$0xff] }
 0x111   : > { %1208 = vmatpush1.msra.mxu0 %v859_v23  ;;  %1164 = vmatprep.mubr.f32.mxu1 %v6343_v32  ;;  %v914_v32 = vld [vmem:[%s7827_s1 + $0x5e8] sm:$0xff] }
 0x112   : > { %1209 = vmatprep.subr.mxu0 %v858_v24  ;;  %1165 = vmatmul.mubr.f32.gmra.mxu1 %v6352_v34  ;;  %v912_v34 = vld [vmem:[%s7827_s1 + $0x5d8] sm:$0xff] }
 0x113   : > { %1210 = vmatpush1.msra.mxu0 %v857_v25  ;;  %1057 = vmatprep.mubr.f32.mxu0 %v6355_v35  ;;  %v911_v35 = vld [vmem:[%s7827_s1 + $0x5d0] sm:$0xff] }
 0x114   : > { %1211 = vmatprep.subr.mxu0 %v856_v26  ;;  %1058 = vmatmul.mubr.f32.gmra.mxu0 %v6365_v37  ;;  %v909_v37 = vld [vmem:[%s7827_s1 + $0x5c0] sm:$0xff] }
 0x115   : > { %1212 = vmatpush1.msra.mxu0 %v855_v27  ;;  %1170 = vmatprep.mubr.f32.mxu1 %v6373_v39  ;;  %v908_v39 = vld [vmem:[%s7827_s1 + $0x5b8] sm:$0xff] }
 0x116   : > { %1213 = vmatprep.subr.mxu0 %v854_v28  ;;  %1171 = vmatmul.mubr.f32.gmra.mxu1 %v6376_v40  ;;  %v907_v40 = vld [vmem:[%s7827_s1 + $0x5b0] sm:$0xff]  ;;  %v923_v28 = vlaneseq }
 0x117   : > { %1214 = vmatpush1.msra.mxu0 %v853_v29  ;;  %1063 = vmatprep.mubr.f32.mxu0 %v6387_v42  ;;  %v905_v42 = vld [vmem:[%s7827_s1 + $0x5a0] sm:$0xff] }
 0x118   : > { %1215 = vmatprep.subr.mxu0 %v916_v30  ;;  %1064 = vmatmul.mubr.f32.gmra.mxu0 %v6396_v44  ;;  %v903_v44 = vld [vmem:[%s7827_s1 + $0x590] sm:$0xff]  ;;  %vm1492_vm2 = vcmp.lt.s32.totalorder %v923_v28, 256 }
 0x119   : > { %1216 = vmatpush2.msra.mxu0 %v915_v31  ;;  %1176 = vmatprep.mubr.f32.mxu1 %v6399_v45  ;;  %v902_v45 = vld [vmem:[%s7827_s1 + $0x588] sm:$0xff]  ;;  %v6799_v31 = vshrl.u32 %v923_v28, 7 }
 0x11a   : > { %1217 = vmatprep.subr.mxu0 %v914_v32  ;;  %1177 = vmatmul.mubr.f32.gmra.mxu1 %v6410_v47  ;;  %v900_v47 = vld [vmem:[%s7827_s1 + $0x578] sm:$0xff] }
 0x11b   : > { %1218 = vmatpush2.msra.mxu0 %v913_v33  ;;  %1247 = vmatprep.mubr.f32.mxu0 %v6429_v52  ;;  %v895_v52 = vld [vmem:[%s7827_s1 + $0x550] sm:$0xff] }
 0x11c   : > { %1219 = vmatprep.subr.mxu0 %v912_v34  ;;  %1360 = vmatprep.mubr.f32.mxu1 %v5549_v38  ;;  %v925_v34 = vsub.s32 0, %v6799_v31 }
 0x11d   : > { %1220 = vmatpush2.msra.mxu0 %v911_v35  ;;  %v921_v35 = vld [vmem:[#allocation6] sm:$0x3] }
 0x11e   : > { %1221 = vmatprep.subr.mxu0 %v910_v36  ;;  %4730 = vmatmul.mubr.msk.f32.vlgmr.msra.gmra.mxu1 %vm674_vm1, %v6435_v54  ;;  %v894_v54 = vld [vmem:[%s7827_s1 + $0x548] sm:$0xff]  ;;  %v929_v36 = vsub.s32 1, %v6799_v31 }
 0x11f   : > { %1222 = vmatpush2.msra.mxu0 %v909_v37  ;;  %1366 = vmatprep.mubr.f32.mxu1 %v5549_v38 }
 0x120   : > { %1223 = vmatprep.subr.mxu0 %v908_v39  ;;  %v6807_v39 = vrot.slane %v921_v35, %v925_v34 }
 0x121   : > { %1224 = vmatpush2.msra.mxu0 %v907_v40  ;;  %v6809_v40 = vrot.slane %v921_v35, %v929_v36 }
 0x122   : > { %1225 = vmatprep.subr.mxu0 %v906_v41  ;;  %4731 = vmatmul.mubr.msk.f32.gmra.mxu1 %vm674_vm1, %v6455_v58  ;;  %v892_v58 = vld [vmem:[%s7827_s1 + $0x538] sm:$0xff] }
 0x123   : > { %1226 = vmatpush2.msra.mxu0 %v905_v42  ;;  %1372 = vmatprep.mubr.f32.mxu1 %v5549_v38 }
 0x124   : > { %1227 = vmatprep.subr.mxu0 %v904_v43 }
 0x125   : > { %1228 = vmatpush2.msra.mxu0 %v903_v44 }
 0x126   : > { %1229 = vmatprep.subr.mxu0 %v902_v45  ;;  %4732 = vmatmul.mubr.msk.f32.gmra.mxu1 %vm674_vm1, %v6475_v62  ;;  %v890_v62 = vld [vmem:[%s7827_s1 + $0x528] sm:$0xff] }
 0x127   : > { %1230 = vmatpush2.msra.mxu0 %v901_v46  ;;  %1378 = vmatprep.mubr.f32.mxu1 %v5549_v38 }
 0x128   : > { %1231 = vmatprep.subr.mxu0 %v900_v47 }
 0x129   : > { %1232 = vmatpush2.msra.mxu0 %v899_v48 }
 0x12a   : > { %1233 = vmatprep.subr.mxu0 %v898_v49  ;;  %4733 = vmatmul.mubr.msk.f32.gmra.mxu1 %vm674_vm1, %v6495_v2  ;;  %v888_v2 = vld [vmem:[%s7827_s1 + $0x518] sm:$0xff] }
 0x12b   : > { %1234 = vmatpush2.msra.mxu0 %v897_v50  ;;  %1384 = vmatprep.mubr.f32.mxu1 %v5549_v38 }
 0x12c   : > { %1235 = vmatprep.subr.mxu0 %v896_v51 }
 0x12d   : > { %1236 = vmatpush2.msra.mxu0 %v895_v52 }
 0x12e   : > { %1237 = vmatprep.subr.mxu0 %v894_v54  ;;  %4734 = vmatmul.mubr.msk.f32.gmra.mxu1 %vm674_vm1, %v6515_v6  ;;  %v886_v6 = vld [vmem:[%s7827_s1 + $0x508] sm:$0xff] }
 0x12f   : > { %1238 = vmatpush2.msra.mxu0 %v893_v55  ;;  %1390 = vmatprep.mubr.f32.mxu1 %v5549_v38 }
 0x130   : > { %1239 = vmatprep.subr.mxu0 %v892_v58 }
 0x131   : > { %1240 = vmatpush2.msra.mxu0 %v891_v59 }
 0x132   : > { %1241 = vmatprep.subr.mxu0 %v890_v62  ;;  %4735 = vmatmul.mubr.msk.f32.gmra.mxu1 %vm674_vm1, %v6535_v10 }
 0x133   : > { %1242 = vmatpush2.msra.mxu0 %v889_v63  ;;  %1396 = vmatprep.mubr.f32.mxu1 %v5549_v38 }
 0x134   : > { %1243 = vmatprep.subr.mxu0 %v888_v2 }
 0x135   : > { %1244 = vmatpush2.msra.mxu0 %v887_v3 }
 0x136   : > { %1245 = vmatprep.subr.mxu0 %v886_v6  ;;  %4736 = vmatmul.mubr.msk.f32.gmra.mxu1 %vm674_vm1, %v6552_v13 }
 0x137   : > { %1246 = vmatpush2.msra.mxu0 %v885_v7  ;;  %1402 = vmatprep.mubr.f32.mxu1 %v5549_v38 }
 0x138   : > { %1248 = vmatmul.mubr.f32.vlgmr.msra.gmra.mxu0 %v6432_v53 }
 0x139   : > { %1253 = vmatprep.mubr.f32.mxu0 %v6449_v56 }
 0x13a   : > { %4737 = vmatmul.mubr.msk.f32.gmra.mxu1 %vm674_vm1, %v6569_v16 }
 0x13c   : > { %1254 = vmatmul.mubr.f32.gmra.mxu0 %v6452_v57 }
 0x13d   : > { %1259 = vmatprep.mubr.f32.mxu0 %v6469_v60 }
 0x140   : > { %1260 = vmatmul.mubr.f32.gmra.mxu0 %v6472_v61 }
 0x141   : > { %1265 = vmatprep.mubr.f32.mxu0 %v6489_v0 }
 0x144   : > { %1266 = vmatmul.mubr.f32.gmra.mxu0 %v6492_v1 }
 0x145   : > { %1271 = vmatprep.mubr.f32.mxu0 %v6509_v4 }
 0x148   : > { %1272 = vmatmul.mubr.f32.gmra.mxu0 %v6512_v5 }
 0x149   : > { %1277 = vmatprep.mubr.f32.mxu0 %v6529_v8 }
 0x14c   : > { %1278 = vmatmul.mubr.f32.gmra.mxu0 %v6532_v9 }
 0x14d   : > { %1283 = vmatprep.mubr.f32.mxu0 %v6546_v11 }
 0x150   : > { %1284 = vmatmul.mubr.f32.gmra.mxu0 %v6549_v12 }
 0x151   : > { %1289 = vmatprep.mubr.f32.mxu0 %v6563_v14 }
 0x154   : > { %1290 = vmatmul.mubr.f32.gmra.mxu0 %v6566_v15 }
 0x1b7   : > { %v1023_v56 = vpop.f32.mrf.mxu0 }
 0x1b8   : > { %v1024_v43 = vadd.f32 %v1023_v56, %v6807_v39 }
 0x1b9   : > { %v1025_v60 = vpop.f32.mrf.mxu0 }
 0x1ba   : > { %v1136_v53 = vpop.f32.mrf.mxu1  ;;  %v1026_v44 = vadd.f32 %v1025_v60, %v6809_v40 }
 0x1bb   : > { %v1137_v47 = vadd.f32 %v1136_v53, %v1024_v43 }
 0x1bc   : > { %v1138_v57 = vpop.f32.mrf.mxu1 }
 0x1bd   : > { %v1139_v50 = vadd.f32 %v1138_v57, %v1026_v44 }
 0x1be   : > { %v1029_v0 = vpop.f32.mrf.mxu0 }
 0x1bf   : > { %v1030_v48 = vadd.f32 %v1029_v0, %v6807_v39 }
 0x1c0   : > { %v1142_v61 = vpop.f32.mrf.mxu1  ;;  %v1031_v5 = vpop.f32.mrf.mxu0 }
 0x1c1   : > { %v1032_v51 = vadd.f32 %v1031_v5, %v6809_v40  ;;  %v1143_v58 = vadd.f32 %v1142_v61, %v1030_v48 }
 0x1c2   : > { %v1144_v1 = vpop.f32.mrf.mxu1  ;;  %v1035_v10 = vpop.f32.mrf.mxu0 }
 0x1c3   : > { %v1036_v59 = vadd.f32 %v1035_v10, %v6807_v39  ;;  %v1145_v3 = vadd.f32 %v1144_v1, %v1032_v51 }
 0x1c4   : > { %v1148_v4 = vpop.f32.mrf.mxu1  ;;  %v1037_v13 = vpop.f32.mrf.mxu0 }
 0x1c5   : > { %v1038_v57 = vadd.f32 %v1037_v13, %v6809_v40  ;;  %v1149_v0 = vadd.f32 %v1148_v4, %v1036_v59 }
 0x1c6   : > { %v6768_v8 = vpop.f32.mrf.mxu1  ;;  %v1041_v15 = vpop.f32.mrf.mxu0 }
 0x1c7   : > { %v1042_v10 = vadd.f32 %v1041_v15, %v6807_v39  ;;  %v1151_v36 = vadd.f32 %v6768_v8, %v1038_v57 }
 0x1c8   : > { %v6770_v9 = vpop.f32.mrf.mxu1  ;;  %v1043_v18 = vpop.f32.mrf.mxu0 }
 0x1ca   : > { %v6772_v11 = vpop.f32.mrf.mxu1  ;;  %v6786_v21 = vpop.f32.mrf.mxu0 }
 0x1cb   : > { %v1048_v44 = vadd.f32 %v6786_v21, %v6807_v39 }
 0x1cc   : > { %v6774_v12 = vpop.f32.mrf.mxu1  ;;  %v6792_v24 = vpop.f32.mrf.mxu0 }
 0x1ce   : > { %v6776_v14 = vpop.f32.mrf.mxu1 }
 0x1d0   : > { %v6794_v27 = vpop.f32.mrf.mxu0 }
 0x1d2   : > { %v6778_v16 = vpop.f32.mrf.mxu1  ;;  %v6796_v30 = vpop.f32.mrf.mxu0 }
 0x1d4   : > { %v6780_v17 = vpop.f32.mrf.mxu1  ;;  %v6801_v33 = vpop.f32.mrf.mxu0 }
 0x1d6   : > { %v6782_v19 = vpop.f32.mrf.mxu1  ;;  %v6805_v38 = vpop.f32.mrf.mxu0 }
 0x1d8   : > { %v6784_v20 = vpop.f32.mrf.mxu1  ;;  %v6811_v42 = vpop.f32.mrf.mxu0 }
 0x1da   : > { %v6788_v22 = vpop.f32.mrf.mxu1  ;;  %v6815_v46 = vpop.f32.mrf.mxu0 }
 0x1dc   : > { %v6790_v23 = vpop.f32.mrf.mxu1 }
 0x1de   : > { %v1362_v25 = vpop.f32.mrf.mxu1 }
 0x1e0   : > { %v1364_v26 = vpop.f32.mrf.mxu1 }
 0x1e2   : > { %v1368_v29 = vpop.f32.mrf.mxu1 }
 0x1e4   : > { %v1370_v32 = vpop.f32.mrf.mxu1 }
 0x1e6   : > { %v1374_v37 = vpop.f32.mrf.mxu1 }
 0x1e8   : > { %v1376_v41 = vpop.f32.mrf.mxu1 }
 0x1ea   : > { %v1380_v45 = vpop.f32.mrf.mxu1 }
 0x1ec   : > { %v1382_v54 = vpop.f32.mrf.mxu1 }
 0x1ee   : > { %v1386_v56 = vpop.f32.mrf.mxu1 }
 0x1f0   : > { %v1388_v35 = vpop.f32.mrf.mxu1 }
 0x1f8   : > { %v1249_v49 = vpop.f32.mrf.mxu0 }
 0x1f9   : > { %v1250_v52 = vadd.f32 %v1249_v49, %v1137_v47 }
 0x1fa   : > { %v1251_v55 = vpop.f32.mrf.mxu0 }
 0x1fb   : > { %v1363_v62 = vadd.f32 %v1362_v25, %v1250_v52  ;;  %v1252_v63 = vadd.f32 %v1251_v55, %v1139_v50  ;;  %v1392_v50 = vpop.f32.mrf.mxu1  ;;  %v1161_v55 = vadd.f32 %v6774_v12, %v1048_v44 }
 0x1fc   : > { %v1255_v2 = vpop.f32.mrf.mxu0 }
 0x1fd   : > { %v6821_v6 = vmax.f32 %v1363_v62, 0.0  ;;  %v1365_v7 = vadd.f32 %v1364_v26, %v1252_v63  ;;  %v1256_v53 = vadd.f32 %v1255_v2, %v1143_v58  ;;  %v1044_v26 = vadd.f32 %v1043_v18, %v6809_v40 }
 0x1fe   : > { %v1257_v60 = vpop.f32.mrf.mxu0  ;;  %v1155_v18 = vadd.f32 %v6770_v9, %v1042_v10  ;;  %v1054_v9 = vadd.f32 %v6794_v27, %v6807_v39  ;;  %v1062_v58 = vadd.f32 %v6805_v38, %v6809_v40  ;;  %v1394_v27 = vpop.f32.mrf.mxu1 }
 0x1ff   : > { %1428 = vst [vmem:[%s6824_s4] sm:$0xff] %v6821_v6  ;;  %v6828_v61 = vmax.f32 %v1365_v7, 0.0  ;;  %v1369_v5 = vadd.f32 %v1368_v29, %v1256_v53  ;;  %v1258_v1 = vadd.f32 %v1257_v60, %v1145_v3  ;;  %v1157_v49 = vadd.f32 %v6772_v11, %v1044_v26 }
 0x200   : > { %v1261_v25 = vpop.f32.mrf.mxu0  ;;  %v1068_v3 = vadd.f32 %v6815_v46, %v6809_v40 }
 0x201   : > { %1429 = vst [vmem:[%s6824_s4 + $0x8] sm:$0xff] %v6828_v61  ;;  %v1411_v4 = vmax.f32 %v1369_v5, 0.0  ;;  %v1371_v13 = vadd.f32 %v1370_v32, %v1258_v1  ;;  %v1262_v34 = vadd.f32 %v1261_v25, %v1149_v0  ;;  %v1050_v32 = vadd.f32 %v6792_v24, %v6809_v40 }
 0x202   : > { %v1263_v43 = vpop.f32.mrf.mxu0  ;;  %v1060_v24 = vadd.f32 %v6801_v33, %v6807_v39  ;;  %v1175_v0 = vadd.f32 %v6784_v20, %v1062_v58  ;;  %v1497_v10 = vmul.f32 %v6828_v61, %v6828_v61 }
 0x203   : > { %1430 = vst [vmem:[%s6824_s4 + $0x10] sm:$0xff] %v1411_v4  ;;  %v6838_v29 = vmax.f32 %v1371_v13, 0.0  ;;  %v1375_v15 = vadd.f32 %v1374_v37, %v1262_v34  ;;  %v1264_v47 = vadd.f32 %v1263_v43, %v1151_v36  ;;  %v1056_v37 = vadd.f32 %v6796_v30, %v6809_v40 }
 0x204   : > { %v1267_v48 = vpop.f32.mrf.mxu0  ;;  %v1163_v12 = vadd.f32 %v6776_v14, %v1050_v32  ;;  %v1066_v30 = vadd.f32 %v6811_v42, %v6807_v39  ;;  %v1498_v38 = vmul.f32 %v1411_v4, %v1411_v4  ;;  %v1167_v14 = vadd.f32 %v6778_v16, %v1054_v9 }
 0x205   : > { %1431 = vst [vmem:[%s6824_s4 + $0x18] sm:$0xff] %v6838_v29  ;;  %v1413_v8 = vmax.f32 %v1375_v15, 0.0  ;;  %v1377_v51 = vadd.f32 %v1376_v41, %v1264_v47  ;;  %v1268_v21 = vadd.f32 %v1267_v48, %v1155_v18  ;;  %v1173_v60 = vadd.f32 %v6782_v19, %v1060_v24 }
 0x206   : > { %v1269_v52 = vpop.f32.mrf.mxu0  ;;  %v1496_v40 = vmul.f32 %v6821_v6, %v6821_v6  ;;  %v1179_v1 = vadd.f32 %v6788_v22, %v1066_v30  ;;  %v1181_v16 = vadd.f32 %v6790_v23, %v1068_v3  ;;  %v1499_v26 = vmul.f32 %v6838_v29, %v6838_v29 }
 0x207   : > { %1432 = vst [vmem:[%s6824_s4 + $0x20] sm:$0xff] %v1413_v8  ;;  %v1270_v11 = vadd.f32 %v1269_v52, %v1157_v49  ;;  %v1414_v41 = vmax.f32 %v1377_v51, 0.0  ;;  %v1381_v59 = vadd.f32 %v1380_v45, %v1268_v21  ;;  %v1500_v42 = vmul.f32 %v1413_v8, %v1413_v8 }
 0x208   : > { %v1273_v62 = vpop.f32.mrf.mxu0  ;;  %v1512_v25 = vadd.f32 %v1498_v38, %v1496_v40  ;;  %v1458_v23 = vadd.f32 %v6838_v29, %v6828_v61  ;;  %v1525_v51 = vadd.f32 %v1499_v26, %v1497_v10 }
 0x209   : > { %v1383_v63 = vadd.f32 %v1382_v54, %v1270_v11  ;;  %v1274_v2 = vadd.f32 %v1273_v62, %v1161_v55  ;;  %1433 = vst [vmem:[%s6824_s4 + $0x28] sm:$0xff] %v1414_v41  ;;  %v1415_v33 = vmax.f32 %v1381_v59, 0.0  ;;  %v1169_v54 = vadd.f32 %v6780_v17, %v1056_v37 }
 0x20a   : > { %v1275_v7 = vpop.f32.mrf.mxu0  ;;  %v1445_v17 = vadd.f32 %v1411_v4, %v6821_v6  ;;  %v1513_v6 = vadd.f32 %v1512_v25, %v1500_v42  ;;  %v1501_v4 = vmul.f32 %v1414_v41, %v1414_v41 }
 0x20b   : > { %v1416_v53 = vmax.f32 %v1383_v63, 0.0  ;;  %v1387_v45 = vadd.f32 %v1386_v56, %v1274_v2  ;;  %v1276_v57 = vadd.f32 %v1275_v7, %v1163_v12  ;;  %1434 = vst [vmem:[%s6824_s4 + $0x30] sm:$0xff] %v1415_v33  ;;  %v1398_v56 = vpop.f32.mrf.mxu1 }
 0x20c   : > { %v1279_v39 = vpop.f32.mrf.mxu0  ;;  %v1446_v34 = vadd.f32 %v1445_v17, %v1413_v8  ;;  %v1459_v8 = vadd.f32 %v1458_v23, %v1414_v41  ;;  %v1526_v62 = vadd.f32 %v1525_v51, %v1501_v4 }
 0x20d   : > { %1435 = vst [vmem:[%s6824_s4 + $0x38] sm:$0xff] %v1416_v53  ;;  %v1417_v46 = vmax.f32 %v1387_v45, 0.0  ;;  %v1389_v5 = vadd.f32 %v1388_v35, %v1276_v57  ;;  %v1280_v19 = vadd.f32 %v1279_v39, %v1167_v14  ;;  %v1502_v35 = vmul.f32 %v1415_v33, %v1415_v33  ;;  %v1400_v15 = vpop.f32.mrf.mxu1 }
 0x20e   : > { %v1281_v20 = vpop.f32.mrf.mxu0  ;;  %v1447_v18 = vadd.f32 %v1446_v34, %v1415_v33  ;;  %v1503_v55 = vmul.f32 %v1416_v53, %v1416_v53  ;;  %v1460_v12 = vadd.f32 %v1459_v8, %v1416_v53 }
 0x20f   : > { %1436 = vst [vmem:[%s6824_s4 + $0x40] sm:$0xff] %v1417_v46  ;;  %v1418_v13 = vmax.f32 %v1389_v5, 0.0  ;;  %v1393_v36 = vadd.f32 %v1392_v50, %v1280_v19  ;;  %v1282_v22 = vadd.f32 %v1281_v20, %v1169_v54  ;;  %v1504_v47 = vmul.f32 %v1417_v46, %v1417_v46  ;;  %v1404_v59 = vpop.f32.mrf.mxu1 }
 0x210   : > { %v1285_v43 = vpop.f32.mrf.mxu0  ;;  %v1514_v52 = vadd.f32 %v1513_v6, %v1502_v35  ;;  %v1448_v9 = vadd.f32 %v1447_v18, %v1417_v46  ;;  %v1527_v7 = vadd.f32 %v1526_v62, %v1503_v55  ;;  %v5550_v6 = vmov 1966171168  }
 0x211   : > { %1437 = vst [vmem:[%s6824_s4 + $0x48] sm:$0xff] %v1418_v13  ;;  %v1286_v44 = vadd.f32 %v1285_v43, %v1173_v60  ;;  %v1419_v48 = vmax.f32 %v1393_v36, 0.0  ;;  %v1395_v49 = vadd.f32 %v1394_v27, %v1282_v22  ;;  %v1505_v41 = vmul.f32 %v1418_v13, %v1418_v13  ;;  %v1406_v53 = vpop.f32.mrf.mxu1 }
 0x212   : > { %v1287_v32 = vpop.f32.mrf.mxu0  ;;  %v1515_v63 = vadd.f32 %v1514_v52, %v1504_v47  ;;  %v1461_v38 = vadd.f32 %v1460_v12, %v1418_v13  ;;  %v1475_v4 = vunpack.c.l.s4 %v5550_v6  ;;  %v1444_v12 = vld [vmem:[#allocation4] sm:$0x3] }
 0x213   : > { %v1399_v21 = vadd.f32 %v1398_v56, %v1286_v44  ;;  %v1288_v50 = vadd.f32 %v1287_v32, %v1175_v0  ;;  %1438 = vst [vmem:[%s6824_s4 + $0x50] sm:$0xff] %v1419_v48  ;;  %v1420_v61 = vmax.f32 %v1395_v49, 0.0  ;;  %v1506_v37 = vmul.f32 %v1419_v48, %v1419_v48 }
 0x214   : > { %v1291_v29 = vpop.f32.mrf.mxu0  ;;  %v1449_v27 = vadd.f32 %v1448_v9, %v1419_v48  ;;  %v1528_v0 = vadd.f32 %v1527_v7, %v1505_v41  ;;  %v1476_v8 = vunpack.c.0.s8 %v1475_v4 }
 0x215   : > { %v1421_v11 = vmax.f32 %v1399_v21, 0.0  ;;  %v1401_v24 = vadd.f32 %v1400_v15, %v1288_v50  ;;  %v1292_v58 = vadd.f32 %v1291_v29, %v1179_v1  ;;  %1439 = vst [vmem:[%s6824_s4 + $0x58] sm:$0xff] %v1420_v61  ;;  %v1507_v45 = vmul.f32 %v1420_v61, %v1420_v61 }
 0x216   : > { %v1293_v2 = vpop.f32.mrf.mxu0  ;;  %v1516_v14 = vadd.f32 %v1515_v63, %v1506_v37  ;;  %v1462_v39 = vadd.f32 %v1461_v38, %v1420_v61  ;;  %v1479_v29 = vsub.s32 %v1476_v8, %v6799_v31 }
 0x217   : > { %1440 = vst [vmem:[%s6824_s4 + $0x60] sm:$0xff] %v1421_v11  ;;  %v1508_v30 = vmul.f32 %v1421_v11, %v1421_v11  ;;  %v1422_v3 = vmax.f32 %v1401_v24, 0.0  ;;  %v1405_v33 = vadd.f32 %v1404_v59, %v1292_v58  ;;  %v1294_v57 = vadd.f32 %v1293_v2, %v1181_v16  ;;  %v1495_v2 = vld [vmem:[#allocation5] sm:$0x3] }
 0x218   : > { %v1450_v54 = vadd.f32 %v1449_v27, %v1421_v11  ;;  %v1529_v1 = vadd.f32 %v1528_v0, %v1507_v45 }
 0x219   : > { %1441 = vst [vmem:[%s6824_s4 + $0x68] sm:$0xff] %v1422_v3  ;;  %v1423_v60 = vmax.f32 %v1405_v33, 0.0  ;;  %v1509_v40 = vmul.f32 %v1422_v3, %v1422_v3  ;;  %v1407_v42 = vadd.f32 %v1406_v53, %v1294_v57  ;;  %v1517_v46 = vadd.f32 %v1516_v14, %v1508_v30 }
 0x21a   : > { %v1463_v17 = vadd.f32 %v1462_v39, %v1422_v3 }
 0x21b   : > { %1442 = vst [vmem:[%s6824_s4 + $0x70] sm:$0xff] %v1423_v60  ;;  %v1451_v5 = vadd.f32 %v1450_v54, %v1423_v60  ;;  %v1510_v56 = vmul.f32 %v1423_v60, %v1423_v60  ;;  %v1424_v19 = vmax.f32 %v1407_v42, 0.0  ;;  %v1530_v16 = vadd.f32 %v1529_v1, %v1509_v40 }
 0x21d   : > { %v1452_v20 = vrot.slane %v1451_v5, 4  ;;  %v1518_v10 = vadd.f32 %v1517_v46, %v1510_v56  ;;  %1443 = vst [vmem:[%s6824_s4 + $0x78] sm:$0xff] %v1424_v19  ;;  %v1464_v25 = vadd.f32 %v1463_v17, %v1424_v19  ;;  %v1511_v26 = vmul.f32 %v1424_v19, %v1424_v19 }
 0x21f   : > { %v1453_v13 = vadd.f32 %v1452_v20, %v1451_v5  ;;  %v1519_v34 = vrot.slane %v1518_v10, 4  ;;  %v1465_v35 = vrot.slane %v1464_v25, 4  ;;  %v1531_v36 = vadd.f32 %v1530_v16, %v1511_v26 }
 0x221   : > { %v1454_v22 = vrot.slane %v1453_v13, 2  ;;  %v1520_v43 = vadd.f32 %v1519_v34, %v1518_v10  ;;  %v1466_v23 = vadd.f32 %v1465_v35, %v1464_v25  ;;  %v1532_v44 = vrot.slane %v1531_v36, 4 }
 0x223   : > { %v1455_v15 = vadd.f32 %v1454_v22, %v1453_v13  ;;  %v1521_v18 = vrot.slane %v1520_v43, 2  ;;  %v1467_v47 = vrot.slane %v1466_v23, 2  ;;  %v1533_v48 = vadd.f32 %v1532_v44, %v1531_v36 }
 0x225   : > { %v1522_v49 = vadd.f32 %v1521_v18, %v1520_v43  ;;  %v1456_v32 = vrot.slane %v1455_v15, 1  ;;  %v1468_v51 = vadd.f32 %v1467_v47, %v1466_v23  ;;  %v1534_v21 = vrot.slane %v1533_v48, 2 }
 0x227   : > { %v1523_v50 = vrot.slane %v1522_v49, 1  ;;  %v1469_v52 = vrot.slane %v1468_v51, 1  ;;  %v1535_v55 = vadd.f32 %v1534_v21, %v1533_v48  ;;  %v1457_v9 = vadd.f32 %v1456_v32, %v1455_v15 }
 0x229   : > { %v1470_v61 = vadd.f32 %v1469_v52, %v1468_v51  ;;  %v1536_v37 = vrot.slane %v1535_v55, 1  ;;  %v1524_v11 = vadd.f32 %v1523_v50, %v1522_v49 }
 0x22b   : > { %v1473_v24 = vcombine.low %v1457_v9, %v1470_v61  ;;  %v1537_v58 = vadd.f32 %v1536_v37, %v1535_v55 }
 0x22d   : > { %v1480_v59 = vrot.slane %v1473_v24, %v1479_v29  ;;  %v1540_v62 = vcombine.low %v1524_v11, %v1537_v58 }
 0x22f   : > { %v1487_v63 = vrot.slane %v1480_v59, %v1479_v29  ;;  %v1547_v41 = vrot.slane %v1540_v62, %v1479_v29 }
 0x231   : > { %v1489_v27 = vadd.f32 %v1487_v63, %v1444_v12  ;;  %v1554_v30 = vrot.slane %v1547_v41, %v1479_v29 }
 0x233   : > { %1494 = vst.msk [vmem:[#allocation4] sm:$0x3] %vm1492_vm2, %v1489_v27  ;;  %v1556_v3 = vadd.f32 %v1554_v30, %v1495_v2 }
 0x235   : > { %1557 = vst.msk [vmem:[#allocation5] sm:$0x3] %vm1492_vm2, %v1556_v3 }
 0x236 PF: > { %p4740_p8 = scmp.ne.s32.totalorder %s5518_s22, 1 }
 0x238   : > { %1561 = sbr.rel (%p4740_p8) target bundleno = 1920 (0x780), region = 120 }
 0x23d   : > { %p4741_p10 = scmp.ne.s32.totalorder %s5514_s21, 0 }
 0x23f   : > { %1565 = sbr.rel (%p4741_p10) target bundleno = 610 (0x262), region = 124 }
 0x244   : > { %v1566_v31 = vld [vmem:[#allocation4] sm:$0x3]  ;;  %v1568_v33 = vld [vmem:[#allocation5] sm:$0x3]  ;;  %v1579_v14 = vlaneseq  ;;  %v1572_v54 = vld [vmem:[#allocation8] sm:$0x3] }
 0x245   : > { %v1567_v7 = vmul.f32 0.0078125, %v1566_v31  ;;  %v1569_v38 = vmul.f32 0.0078125, %v1568_v33  ;;  %v1576_v0 = vld [vmem:[#allocation10] sm:$0x3] }
 0x246   : > { %vm1581_vm3 = vcmp.lt.s32.totalorder %v1579_v14, 256 }
 0x247   : > { %v1570_v45 = vmul.f32 %v1567_v7, %v1567_v7 }
 0x249   : > { %v1571_v57 = vsub.f32 %v1569_v38, %v1570_v45 }
 0x24b   : > { %v1573_v28 = vadd.f32 1e-05, %v1571_v57 }
 0x24d   : > { %5156 = vrsqrt.f32 %v1573_v28 }
 0x25a   : > { %v5157_v60 = vpop.eup %5156 }
 0x25b   : > { %v1575_v53 = vmul.f32 %v5157_v60, %v1572_v54 }
 0x25d   : > { %v1577_v39 = vmul.f32 %v1575_v53, %v1567_v7  ;;  %1583 = vst.msk [vmem:[#allocation4] sm:$0x3] %vm1581_vm3, %v1575_v53 }
 0x25f   : > { %v1578_v40 = vsub.f32 %v1576_v0, %v1577_v39 }
 0x261   : > { %1584 = vst.msk [vmem:[#allocation5] sm:$0x3] %vm1581_vm3, %v1578_v40 }
 0x262 PF: > { %v2174_v42 = vld [vmem:[#allocation13 + $0x1e8] sm:$0xff]  ;;  %v2176_v46 = vld [vmem:[#allocation13 + $0x1f8] sm:$0xff]  ;;  %v2173_v5 = vld [vmem:[#allocation13 + $0x1e0] sm:$0xff]  ;;  %s6893_s22 = sshra.s32 %s4726_s20, 3  ;;  %vm2467_vm4 = vcmask 130048  }
 0x263   : > { %2241 = vmatprep.subr.mxu0 %v2174_v42  ;;  %2354 = vmatprep.subr.mxu1 %v2176_v46  ;;  %v2175_v56 = vld [vmem:[#allocation13 + $0x1f0] sm:$0xff]  ;;  %v2170_v1 = vld [vmem:[#allocation13 + $0x1c8] sm:$0xff]  ;;  %v2172_v17 = vld [vmem:[#allocation13 + $0x1d8] sm:$0xff]  ;;  %s4767_s15 = sshll.u32 %s6893_s22, 4  ;;  %s4766_s20 = smul.u32 56, %s6893_s22 }
 0x264   : > { %2242 = vmatpush1.msra.mxu0 %v2173_v5  ;;  %2355 = vmatpush1.msra.mxu1 %v2175_v56  ;;  %v2169_v19 = vld [vmem:[#allocation13 + $0x1c0] sm:$0xff]  ;;  %v2171_v20 = vld [vmem:[#allocation13 + $0x1d0] sm:$0xff]  ;;  %v2166_v10 = vld [vmem:[#allocation13 + $0x1a8] sm:$0xff]  ;;  %s6907_s21 = scalar_lea.vmem [#allocation3], %s4767_s15 }
 0x265   : > { %2243 = vmatprep.subr.mxu0 %v2170_v1  ;;  %2356 = vmatprep.subr.mxu1 %v2172_v17  ;;  %v2168_v16 = vld [vmem:[#allocation13 + $0x1b8] sm:$0xff]  ;;  %v2165_v25 = vld [vmem:[#allocation13 + $0x1a0] sm:$0xff]  ;;  %v2167_v26 = vld [vmem:[#allocation13 + $0x1b0] sm:$0xff]  ;;  %s6983_s28 = scalar_lea.vmem [#allocation2], %s4766_s20 }
 0x266   : > { %2244 = vmatpush1.msra.mxu0 %v2169_v19  ;;  %2357 = vmatpush1.msra.mxu1 %v2171_v20  ;;  %v2162_v13 = vld [vmem:[#allocation13 + $0x188] sm:$0xff]  ;;  %v2164_v34 = vld [vmem:[#allocation13 + $0x198] sm:$0xff]  ;;  %v2161_v35 = vld [vmem:[#allocation13 + $0x180] sm:$0xff] }
 0x267   : > { %2245 = vmatprep.subr.mxu0 %v2166_v10  ;;  %2358 = vmatprep.subr.mxu1 %v2168_v16  ;;  %v2163_v36 = vld [vmem:[#allocation13 + $0x190] sm:$0xff]  ;;  %v2158_v22 = vld [vmem:[#allocation13 + $0x168] sm:$0xff]  ;;  %v2160_v43 = vld [vmem:[#allocation13 + $0x178] sm:$0xff] }
 0x268   : > { %2246 = vmatpush1.msra.mxu0 %v2165_v25  ;;  %2359 = vmatpush1.msra.mxu1 %v2167_v26  ;;  %v2157_v23 = vld [vmem:[#allocation13 + $0x160] sm:$0xff]  ;;  %v2159_v6 = vld [vmem:[#allocation13 + $0x170] sm:$0xff]  ;;  %v2154_v4 = vld [vmem:[#allocation13 + $0x148] sm:$0xff] }
 0x269   : > { %2247 = vmatprep.subr.mxu0 %v2162_v13  ;;  %2360 = vmatprep.subr.mxu1 %v2164_v34  ;;  %v2156_v44 = vld [vmem:[#allocation13 + $0x158] sm:$0xff]  ;;  %v2153_v15 = vld [vmem:[#allocation13 + $0x140] sm:$0xff]  ;;  %v2155_v18 = vld [vmem:[#allocation13 + $0x150] sm:$0xff] }
 0x26a   : > { %2248 = vmatpush1.msra.mxu0 %v2161_v35  ;;  %2361 = vmatpush1.msra.mxu1 %v2163_v36  ;;  %v2150_v47 = vld [vmem:[#allocation13 + $0x128] sm:$0xff]  ;;  %v2152_v48 = vld [vmem:[#allocation13 + $0x138] sm:$0xff]  ;;  %v2149_v49 = vld [vmem:[#allocation13 + $0x120] sm:$0xff] }
 0x26b   : > { %2249 = vmatprep.subr.mxu0 %v2158_v22  ;;  %2362 = vmatprep.subr.mxu1 %v2160_v43  ;;  %v2151_v32 = vld [vmem:[#allocation13 + $0x130] sm:$0xff]  ;;  %v2146_v51 = vld [vmem:[#allocation13 + $0x108] sm:$0xff]  ;;  %v2148_v8 = vld [vmem:[#allocation13 + $0x118] sm:$0xff] }
 0x26c   : > { %2250 = vmatpush1.msra.mxu0 %v2157_v23  ;;  %2363 = vmatpush1.msra.mxu1 %v2159_v6  ;;  %v2145_v21 = vld [vmem:[#allocation13 + $0x100] sm:$0xff]  ;;  %v2147_v50 = vld [vmem:[#allocation13 + $0x110] sm:$0xff]  ;;  %v2142_v52 = vld [vmem:[#allocation13 + $0xe8] sm:$0xff] }
 0x26d   : > { %2251 = vmatprep.subr.mxu0 %v2154_v4  ;;  %2364 = vmatprep.subr.mxu1 %v2156_v44  ;;  %v2144_v55 = vld [vmem:[#allocation13 + $0xf8] sm:$0xff]  ;;  %v2141_v9 = vld [vmem:[#allocation13 + $0xe0] sm:$0xff]  ;;  %v2143_v61 = vld [vmem:[#allocation13 + $0xf0] sm:$0xff] }
 0x26e   : > { %2252 = vmatpush1.msra.mxu0 %v2153_v15  ;;  %2365 = vmatpush1.msra.mxu1 %v2155_v18  ;;  %v2138_v29 = vld [vmem:[#allocation13 + $0xc8] sm:$0xff]  ;;  %v2140_v37 = vld [vmem:[#allocation13 + $0xd8] sm:$0xff]  ;;  %v2137_v11 = vld [vmem:[#allocation13 + $0xc0] sm:$0xff]  ;;  %v1667_v15 = vlaneseq }
 0x26f   : > { %2253 = vmatprep.subr.mxu0 %v2150_v47  ;;  %2366 = vmatprep.subr.mxu1 %v2152_v48  ;;  %v2139_v24 = vld [vmem:[#allocation13 + $0xd0] sm:$0xff]  ;;  %v2134_v58 = vld [vmem:[#allocation13 + $0xa8] sm:$0xff]  ;;  %v2136_v59 = vld [vmem:[#allocation13 + $0xb8] sm:$0xff] }
 0x270   : > { %2254 = vmatpush1.msra.mxu0 %v2149_v49  ;;  %2367 = vmatpush1.msra.mxu1 %v2151_v32  ;;  %v2133_v62 = vld [vmem:[#allocation13 + $0xa0] sm:$0xff]  ;;  %v2135_v12 = vld [vmem:[#allocation13 + $0xb0] sm:$0xff]  ;;  %v2130_v63 = vld [vmem:[#allocation13 + $0x88] sm:$0xff] }
 0x271   : > { %2255 = vmatprep.subr.mxu0 %v2146_v51  ;;  %2368 = vmatprep.subr.mxu1 %v2148_v8  ;;  %v2132_v41 = vld [vmem:[#allocation13 + $0x98] sm:$0xff]  ;;  %v2129_v2 = vld [vmem:[#allocation13 + $0x80] sm:$0xff]  ;;  %v2131_v27 = vld [vmem:[#allocation13 + $0x90] sm:$0xff] }
 0x272   : > { %2256 = vmatpush1.msra.mxu0 %v2145_v21  ;;  %2369 = vmatpush1.msra.mxu1 %v2147_v50  ;;  %v2126_v30 = vld [vmem:[#allocation13 + $0x68] sm:$0xff]  ;;  %v2128_v3 = vld [vmem:[#allocation13 + $0x78] sm:$0xff]  ;;  %v2125_v31 = vld [vmem:[#allocation13 + $0x60] sm:$0xff]  ;;  %v6895_v50 = vshrl.u32 %v1667_v15, 7 }
 0x273   : > { %2257 = vmatprep.subr.mxu0 %v2142_v52  ;;  %2370 = vmatprep.subr.mxu1 %v2144_v55  ;;  %v2127_v33 = vld [vmem:[#allocation13 + $0x70] sm:$0xff]  ;;  %v2122_v7 = vld [vmem:[#allocation13 + $0x48] sm:$0xff]  ;;  %v2124_v38 = vld [vmem:[#allocation13 + $0x58] sm:$0xff] }
 0x274   : > { %2258 = vmatpush1.msra.mxu0 %v2141_v9  ;;  %2371 = vmatpush1.msra.mxu1 %v2143_v61  ;;  %v2121_v45 = vld [vmem:[#allocation13 + $0x40] sm:$0xff]  ;;  %v2123_v57 = vld [vmem:[#allocation13 + $0x50] sm:$0xff]  ;;  %v2118_v28 = vld [vmem:[#allocation13 + $0x28] sm:$0xff]  ;;  %7860 = vst [vmem:[#allocation28_spill] sm:$0xff] %v6895_v50 }
 0x275   : > { %2259 = vmatprep.subr.mxu0 %v2138_v29  ;;  %2372 = vmatprep.subr.mxu1 %v2140_v37  ;;  %v2120_v14 = vld [vmem:[#allocation13 + $0x38] sm:$0xff]  ;;  %v2117_v54 = vld [vmem:[#allocation13 + $0x20] sm:$0xff]  ;;  %v2119_v60 = vld [vmem:[#allocation13 + $0x30] sm:$0xff] }
 0x276   : > { %2260 = vmatpush1.msra.mxu0 %v2137_v11  ;;  %2373 = vmatpush1.msra.mxu1 %v2139_v24  ;;  %v2114_v53 = vld [vmem:[#allocation13 + $0x8] sm:$0xff]  ;;  %v2116_v0 = vld [vmem:[#allocation13 + $0x18] sm:$0xff]  ;;  %v2113_v39 = vld [vmem:[#allocation13] sm:$0xff] }
 0x277   : > { %2261 = vmatprep.subr.mxu0 %v2134_v58  ;;  %2374 = vmatprep.subr.mxu1 %v2136_v59  ;;  %v2115_v40 = vld [vmem:[#allocation13 + $0x10] sm:$0xff]  ;;  %v2238_v42 = vld [vmem:[#allocation13 + $0x3e8] sm:$0xff]  ;;  %v2240_v46 = vld [vmem:[#allocation13 + $0x3f8] sm:$0xff]  ;;  %v6899_v58 = vsub.s32 1, %v6895_v50 }
 0x278   : > { %2262 = vmatpush1.msra.mxu0 %v2133_v62  ;;  %2375 = vmatpush1.msra.mxu1 %v2135_v12  ;;  %v2237_v5 = vld [vmem:[#allocation13 + $0x3e0] sm:$0xff]  ;;  %v2239_v56 = vld [vmem:[#allocation13 + $0x3f0] sm:$0xff]  ;;  %v2234_v1 = vld [vmem:[#allocation13 + $0x3c8] sm:$0xff] }
 0x279   : > { %2263 = vmatprep.subr.mxu0 %v2130_v63  ;;  %2376 = vmatprep.subr.mxu1 %v2132_v41  ;;  %v2236_v17 = vld [vmem:[#allocation13 + $0x3d8] sm:$0xff]  ;;  %v2233_v19 = vld [vmem:[#allocation13 + $0x3c0] sm:$0xff]  ;;  %v2235_v20 = vld [vmem:[#allocation13 + $0x3d0] sm:$0xff] }
 0x27a   : > { %2264 = vmatpush1.msra.mxu0 %v2129_v2  ;;  %2377 = vmatpush1.msra.mxu1 %v2131_v27  ;;  %v2230_v10 = vld [vmem:[#allocation13 + $0x3a8] sm:$0xff]  ;;  %v2232_v16 = vld [vmem:[#allocation13 + $0x3b8] sm:$0xff]  ;;  %v2229_v25 = vld [vmem:[#allocation13 + $0x3a0] sm:$0xff]  ;;  %v6902_v2 = vsub.s32 0, %v6895_v50 }
 0x27b   : > { %2265 = vmatprep.subr.mxu0 %v2126_v30  ;;  %2378 = vmatprep.subr.mxu1 %v2128_v3  ;;  %v2231_v26 = vld [vmem:[#allocation13 + $0x3b0] sm:$0xff]  ;;  %v2226_v13 = vld [vmem:[#allocation13 + $0x388] sm:$0xff]  ;;  %v2228_v34 = vld [vmem:[#allocation13 + $0x398] sm:$0xff] }
 0x27c   : > { %2266 = vmatpush1.msra.mxu0 %v2125_v31  ;;  %2379 = vmatpush1.msra.mxu1 %v2127_v33  ;;  %v2225_v35 = vld [vmem:[#allocation13 + $0x380] sm:$0xff]  ;;  %v2227_v36 = vld [vmem:[#allocation13 + $0x390] sm:$0xff]  ;;  %v2222_v22 = vld [vmem:[#allocation13 + $0x368] sm:$0xff] }
 0x27d   : > { %2267 = vmatprep.subr.mxu0 %v2122_v7  ;;  %2380 = vmatprep.subr.mxu1 %v2124_v38  ;;  %v2224_v43 = vld [vmem:[#allocation13 + $0x378] sm:$0xff]  ;;  %v2221_v23 = vld [vmem:[#allocation13 + $0x360] sm:$0xff]  ;;  %v2223_v6 = vld [vmem:[#allocation13 + $0x370] sm:$0xff] }
 0x27e   : > { %2268 = vmatpush1.msra.mxu0 %v2121_v45  ;;  %2381 = vmatpush1.msra.mxu1 %v2123_v57  ;;  %v2218_v4 = vld [vmem:[#allocation13 + $0x348] sm:$0xff]  ;;  %v2220_v44 = vld [vmem:[#allocation13 + $0x358] sm:$0xff]  ;;  %v2217_v18 = vld [vmem:[#allocation13 + $0x340] sm:$0xff] }
 0x27f   : > { %2269 = vmatprep.subr.mxu0 %v2118_v28  ;;  %2382 = vmatprep.subr.mxu1 %v2120_v14  ;;  %v2219_v47 = vld [vmem:[#allocation13 + $0x350] sm:$0xff]  ;;  %v2214_v48 = vld [vmem:[#allocation13 + $0x328] sm:$0xff]  ;;  %v2216_v49 = vld [vmem:[#allocation13 + $0x338] sm:$0xff] }
 0x280   : > { %2270 = vmatpush1.msra.mxu0 %v2117_v54  ;;  %2383 = vmatpush1.msra.mxu1 %v2119_v60  ;;  %v2213_v32 = vld [vmem:[#allocation13 + $0x320] sm:$0xff]  ;;  %v2215_v51 = vld [vmem:[#allocation13 + $0x330] sm:$0xff]  ;;  %v2210_v8 = vld [vmem:[#allocation13 + $0x308] sm:$0xff] }
 0x281   : > { %2271 = vmatprep.subr.mxu0 %v2114_v53  ;;  %2384 = vmatprep.subr.mxu1 %v2116_v0  ;;  %v2212_v21 = vld [vmem:[#allocation13 + $0x318] sm:$0xff]  ;;  %v2209_v52 = vld [vmem:[#allocation13 + $0x300] sm:$0xff]  ;;  %v2211_v55 = vld [vmem:[#allocation13 + $0x310] sm:$0xff] }
 0x282   : > { %2272 = vmatpush1.msra.mxu0 %v2113_v39  ;;  %2385 = vmatpush1.msra.mxu1 %v2115_v40  ;;  %v2206_v9 = vld [vmem:[#allocation13 + $0x2e8] sm:$0xff]  ;;  %v2208_v61 = vld [vmem:[#allocation13 + $0x2f8] sm:$0xff]  ;;  %v2205_v29 = vld [vmem:[#allocation13 + $0x2e0] sm:$0xff] }
 0x283   : > { %2273 = vmatprep.subr.mxu0 %v2238_v42  ;;  %2386 = vmatprep.subr.mxu1 %v2240_v46  ;;  %v2207_v37 = vld [vmem:[#allocation13 + $0x2f0] sm:$0xff]  ;;  %v2202_v11 = vld [vmem:[#allocation13 + $0x2c8] sm:$0xff]  ;;  %v2204_v24 = vld [vmem:[#allocation13 + $0x2d8] sm:$0xff] }
 0x284   : > { %2274 = vmatpush2.msra.mxu0 %v2237_v5  ;;  %2387 = vmatpush2.msra.mxu1 %v2239_v56  ;;  %v2201_v59 = vld [vmem:[#allocation13 + $0x2c0] sm:$0xff]  ;;  %v2203_v62 = vld [vmem:[#allocation13 + $0x2d0] sm:$0xff]  ;;  %v2198_v63 = vld [vmem:[#allocation13 + $0x2a8] sm:$0xff] }
 0x285   : > { %2275 = vmatprep.subr.mxu0 %v2234_v1  ;;  %2388 = vmatprep.subr.mxu1 %v2236_v17  ;;  %v1665_v12 = vld [vmem:[#allocation4] sm:$0x3]  ;;  %v2200_v41 = vld [vmem:[#allocation13 + $0x2b8] sm:$0xff]  ;;  %v2197_v27 = vld [vmem:[#allocation13 + $0x2a0] sm:$0xff] }
 0x286   : > { %2276 = vmatpush2.msra.mxu0 %v2233_v19  ;;  %2389 = vmatpush2.msra.mxu1 %v2235_v20  ;;  %v2199_v30 = vld [vmem:[#allocation13 + $0x2b0] sm:$0xff]  ;;  %v2194_v3 = vld [vmem:[#allocation13 + $0x288] sm:$0xff]  ;;  %v2196_v31 = vld [vmem:[#allocation13 + $0x298] sm:$0xff]  ;;  %v6905_v7 = vrot.slane %v1665_v12, %v6899_v58  ;;  %v6911_v54 = vrot.slane %v1665_v12, %v6902_v2 }
 0x287   : > { %2277 = vmatprep.subr.mxu0 %v2230_v10  ;;  %2390 = vmatprep.subr.mxu1 %v2232_v16  ;;  %v2193_v33 = vld [vmem:[#allocation13 + $0x280] sm:$0xff]  ;;  %v2195_v38 = vld [vmem:[#allocation13 + $0x290] sm:$0xff]  ;;  %v1693_v57 = vld [vmem:[#allocation5] sm:$0x3] }
 0x288   : > { %2278 = vmatpush2.msra.mxu0 %v2229_v25  ;;  %2391 = vmatpush2.msra.mxu1 %v2231_v26  ;;  %v1650_v45 = vld [vmem:[%s6907_s21 + $0x8] sm:$0xff]  ;;  %v2190_v28 = vld [vmem:[#allocation13 + $0x268] sm:$0xff]  ;;  %v2191_v53 = vld [vmem:[#allocation13 + $0x270] sm:$0xff]  ;;  %v6916_v46 = vrot.slane %v1693_v57, %v6899_v58  ;;  %v6919_v19 = vrot.slane %v1693_v57, %v6902_v2 }
 0x289   : > { %2279 = vmatprep.subr.mxu0 %v2226_v13  ;;  %2392 = vmatprep.subr.mxu1 %v2228_v34  ;;  %v2192_v14 = vld [vmem:[#allocation13 + $0x278] sm:$0xff]  ;;  %v2189_v60 = vld [vmem:[#allocation13 + $0x260] sm:$0xff]  ;;  %v2186_v39 = vld [vmem:[#allocation13 + $0x248] sm:$0xff]  ;;  %v1678_v42 = vmul.f32 %v6905_v7, %v1650_v45 }
 0x28a   : > { %2280 = vmatpush2.msra.mxu0 %v2225_v35  ;;  %2393 = vmatpush2.msra.mxu1 %v2227_v36  ;;  %v1649_v0 = vld [vmem:[%s6907_s21] sm:$0xff]  ;;  %v2185_v5 = vld [vmem:[#allocation13 + $0x240] sm:$0xff]  ;;  %v2182_v1 = vld [vmem:[#allocation13 + $0x228] sm:$0xff] }
 0x28b   : > { %2281 = vmatprep.subr.mxu0 %v2222_v22  ;;  %2394 = vmatprep.subr.mxu1 %v2224_v43  ;;  %v2188_v40 = vld [vmem:[#allocation13 + $0x258] sm:$0xff]  ;;  %v2187_v56 = vld [vmem:[#allocation13 + $0x250] sm:$0xff]  ;;  %v1677_v20 = vmul.f32 %v6911_v54, %v1649_v0  ;;  %v2181_v10 = vld [vmem:[#allocation13 + $0x220] sm:$0xff]  ;;  %v1706_v13 = vadd.f32 %v6916_v46, %v1678_v42 }
 0x28c   : > { %2282 = vmatpush2.msra.mxu0 %v2221_v23  ;;  %2395 = vmatpush2.msra.mxu1 %v2223_v6  ;;  %v2184_v17 = vld [vmem:[#allocation13 + $0x238] sm:$0xff]  ;;  %v2183_v16 = vld [vmem:[#allocation13 + $0x230] sm:$0xff]  ;;  %v2178_v25 = vld [vmem:[#allocation13 + $0x208] sm:$0xff] }
 0x28d   : > { %2283 = vmatprep.subr.mxu0 %v2218_v4  ;;  %2396 = vmatprep.subr.mxu1 %v2220_v44  ;;  %v2180_v26 = vld [vmem:[#allocation13 + $0x218] sm:$0xff]  ;;  %v2177_v34 = vld [vmem:[#allocation13 + $0x200] sm:$0xff]  ;;  %v2179_v35 = vld [vmem:[#allocation13 + $0x210] sm:$0xff]  ;;  %v1705_v36 = vadd.f32 %v6919_v19, %v1677_v20 }
 0x28e   : > { %2284 = vmatpush2.msra.mxu0 %v2217_v18  ;;  %2397 = vmatpush2.msra.mxu1 %v2219_v47  ;;  %v1782_v22 = vld [vmem:[#allocation11 + $0x1e8] sm:$0xff]  ;;  %v1781_v23 = vld [vmem:[#allocation11 + $0x1e0] sm:$0xff] }
 0x28f   : > { %2285 = vmatprep.subr.mxu0 %v2214_v48  ;;  %2398 = vmatprep.subr.mxu1 %v2216_v49  ;;  %v1910_v43 = vld [vmem:[#allocation11 + $0x5e8] sm:$0xff]  ;;  %v1909_v6 = vld [vmem:[#allocation11 + $0x5e0] sm:$0xff] }
 0x290   : > { %2286 = vmatpush2.msra.mxu0 %v2213_v32  ;;  %2399 = vmatpush2.msra.mxu1 %v2215_v51  ;;  %v1778_v4 = vld [vmem:[#allocation11 + $0x1c8] sm:$0xff]  ;;  %v1777_v15 = vld [vmem:[#allocation11 + $0x1c0] sm:$0xff] }
 0x291   : > { %2287 = vmatprep.subr.mxu0 %v2210_v8  ;;  %2400 = vmatprep.subr.mxu1 %v2212_v21  ;;  %v1906_v44 = vld [vmem:[#allocation11 + $0x5c8] sm:$0xff]  ;;  %v1905_v18 = vld [vmem:[#allocation11 + $0x5c0] sm:$0xff] }
 0x292   : > { %2288 = vmatpush2.msra.mxu0 %v2209_v52  ;;  %2401 = vmatpush2.msra.mxu1 %v2211_v55  ;;  %v1774_v47 = vld [vmem:[#allocation11 + $0x1a8] sm:$0xff]  ;;  %v1773_v49 = vld [vmem:[#allocation11 + $0x1a0] sm:$0xff] }
 0x293   : > { %2289 = vmatprep.subr.mxu0 %v2206_v9  ;;  %2402 = vmatprep.subr.mxu1 %v2208_v61  ;;  %v1902_v48 = vld [vmem:[#allocation11 + $0x5a8] sm:$0xff]  ;;  %v1901_v32 = vld [vmem:[#allocation11 + $0x5a0] sm:$0xff] }
 0x294   : > { %2290 = vmatpush2.msra.mxu0 %v2205_v29  ;;  %2403 = vmatpush2.msra.mxu1 %v2207_v37  ;;  %v1770_v51 = vld [vmem:[#allocation11 + $0x188] sm:$0xff]  ;;  %v1769_v21 = vld [vmem:[#allocation11 + $0x180] sm:$0xff] }
 0x295   : > { %2291 = vmatprep.subr.mxu0 %v2202_v11  ;;  %2404 = vmatprep.subr.mxu1 %v2204_v24  ;;  %v1898_v8 = vld [vmem:[#allocation11 + $0x588] sm:$0xff]  ;;  %v1897_v52 = vld [vmem:[#allocation11 + $0x580] sm:$0xff] }
 0x296   : > { %2292 = vmatpush2.msra.mxu0 %v2201_v59  ;;  %2405 = vmatpush2.msra.mxu1 %v2203_v62  ;;  %v1766_v55 = vld [vmem:[#allocation11 + $0x168] sm:$0xff]  ;;  %v1765_v61 = vld [vmem:[#allocation11 + $0x160] sm:$0xff] }
 0x297   : > { %2293 = vmatprep.subr.mxu0 %v2198_v63  ;;  %2406 = vmatprep.subr.mxu1 %v2200_v41  ;;  %v1894_v9 = vld [vmem:[#allocation11 + $0x568] sm:$0xff]  ;;  %v1893_v29 = vld [vmem:[#allocation11 + $0x560] sm:$0xff] }
 0x298   : > { %2294 = vmatpush2.msra.mxu0 %v2197_v27  ;;  %2407 = vmatpush2.msra.mxu1 %v2199_v30  ;;  %v1762_v37 = vld [vmem:[#allocation11 + $0x148] sm:$0xff]  ;;  %v1761_v24 = vld [vmem:[#allocation11 + $0x140] sm:$0xff] }
 0x299   : > { %2295 = vmatprep.subr.mxu0 %v2194_v3  ;;  %2408 = vmatprep.subr.mxu1 %v2196_v31  ;;  %v1890_v11 = vld [vmem:[#allocation11 + $0x548] sm:$0xff]  ;;  %v1889_v59 = vld [vmem:[#allocation11 + $0x540] sm:$0xff] }
 0x29a   : > { %2296 = vmatpush2.msra.mxu0 %v2193_v33  ;;  %2409 = vmatpush2.msra.mxu1 %v2195_v38  ;;  %v1758_v62 = vld [vmem:[#allocation11 + $0x128] sm:$0xff]  ;;  %v1757_v63 = vld [vmem:[#allocation11 + $0x120] sm:$0xff] }
 0x29b   : > { %2297 = vmatprep.subr.mxu0 %v2190_v28  ;;  %2410 = vmatprep.subr.mxu1 %v2192_v14  ;;  %v1886_v12 = vld [vmem:[#allocation11 + $0x528] sm:$0xff]  ;;  %v1885_v41 = vld [vmem:[#allocation11 + $0x520] sm:$0xff] }
 0x29c   : > { %2298 = vmatpush2.msra.mxu0 %v2189_v60  ;;  %2411 = vmatpush2.msra.mxu1 %v2191_v53  ;;  %v1754_v27 = vld [vmem:[#allocation11 + $0x108] sm:$0xff]  ;;  %v1753_v3 = vld [vmem:[#allocation11 + $0x100] sm:$0xff] }
 0x29d   : > { %2299 = vmatprep.subr.mxu0 %v2186_v39  ;;  %2412 = vmatprep.subr.mxu1 %v2188_v40  ;;  %v1882_v30 = vld [vmem:[#allocation11 + $0x508] sm:$0xff]  ;;  %v1881_v31 = vld [vmem:[#allocation11 + $0x500] sm:$0xff] }
 0x29e   : > { %2300 = vmatpush2.msra.mxu0 %v2185_v5  ;;  %2413 = vmatpush2.msra.mxu1 %v2187_v56  ;;  %v1750_v33 = vld [vmem:[#allocation11 + $0xe8] sm:$0xff]  ;;  %v1749_v45 = vld [vmem:[#allocation11 + $0xe0] sm:$0xff]  ;;  %v1661_v5 = vld [vmem:[%s6907_s21 + $0x60] sm:$0xff] }
 0x29f   : > { %2301 = vmatprep.subr.mxu0 %v2182_v1  ;;  %2414 = vmatprep.subr.mxu1 %v2184_v17  ;;  %v1878_v38 = vld [vmem:[#allocation11 + $0x4e8] sm:$0xff]  ;;  %v1877_v57 = vld [vmem:[#allocation11 + $0x4e0] sm:$0xff]  ;;  %v1689_v17 = vmul.f32 %v6911_v54, %v1661_v5 }
 0x2a0   : > { %2302 = vmatpush2.msra.mxu0 %v2181_v10  ;;  %2415 = vmatpush2.msra.mxu1 %v2183_v16  ;;  %v1746_v28 = vld [vmem:[#allocation11 + $0xc8] sm:$0xff]  ;;  %v1745_v60 = vld [vmem:[#allocation11 + $0xc0] sm:$0xff] }
 0x2a1   : > { %2303 = vmatprep.subr.mxu0 %v2178_v25  ;;  %2416 = vmatprep.subr.mxu1 %v2180_v26  ;;  %v1874_v14 = vld [vmem:[#allocation11 + $0x4c8] sm:$0xff]  ;;  %v1873_v53 = vld [vmem:[#allocation11 + $0x4c0] sm:$0xff] }
 0x2a2   : > { %2304 = vmatpush2.msra.mxu0 %v2177_v34  ;;  %2305 = vmatprep.mubr.f32.mxu0 %v1706_v13  ;;  %v1662_v0 = vld [vmem:[%s6907_s21 + $0x68] sm:$0xff]  ;;  %v1742_v39 = vld [vmem:[#allocation11 + $0xa8] sm:$0xff]  ;;  %v6933_v34 = vadd.f32 %v6919_v19, %v1689_v17 }
 0x2a3   : > { %2417 = vmatpush2.msra.mxu1 %v2179_v35  ;;  %2418 = vmatprep.mubr.f32.mxu1 %v1706_v13  ;;  %v1870_v40 = vld [vmem:[#allocation11 + $0x4a8] sm:$0xff]  ;;  %v1690_v42 = vmul.f32 %v6905_v7, %v1662_v0  ;;  %v1741_v56 = vld [vmem:[#allocation11 + $0xa0] sm:$0xff] }
 0x2a4   : > { %2306 = vmatmul.mubr.f32.vlgmr.msra.gmra.mxu0 %v1705_v36  ;;  %2419 = vmatmul.mubr.f32.vlgmr.msra.gmra.mxu1 %v1705_v36  ;;  %v1869_v1 = vld [vmem:[#allocation11 + $0x4a0] sm:$0xff]  ;;  %v1738_v20 = vld [vmem:[#allocation11 + $0x88] sm:$0xff] }
 0x2a5   : > { %2492 = vmatprep.subr.mxu0 %v1782_v22  ;;  %2605 = vmatprep.subr.mxu1 %v1910_v43  ;;  %v1866_v10 = vld [vmem:[#allocation11 + $0x488] sm:$0xff]  ;;  %v6929_v16 = vadd.f32 %v6916_v46, %v1690_v42  ;;  %v1737_v26 = vld [vmem:[#allocation11 + $0x80] sm:$0xff] }
 0x2a6   : > { %2493 = vmatpush1.msra.mxu0 %v1781_v23  ;;  %2606 = vmatpush1.msra.mxu1 %v1909_v6  ;;  %v1664_v25 = vld [vmem:[%s6907_s21 + $0x78] sm:$0xff]  ;;  %v1865_v13 = vld [vmem:[#allocation11 + $0x480] sm:$0xff] }
 0x2a7   : > { %2494 = vmatprep.subr.mxu0 %v1778_v4  ;;  %2607 = vmatprep.subr.mxu1 %v1906_v44  ;;  %v1692_v35 = vmul.f32 %v6905_v7, %v1664_v25  ;;  %v1663_v36 = vld [vmem:[%s6907_s21 + $0x70] sm:$0xff] }
 0x2a8   : > { %2495 = vmatpush1.msra.mxu0 %v1777_v15  ;;  %2608 = vmatpush1.msra.mxu1 %v1905_v18  ;;  %v1734_v22 = vld [vmem:[#allocation11 + $0x68] sm:$0xff]  ;;  %v1691_v23 = vmul.f32 %v6911_v54, %v1663_v36  ;;  %v1733_v6 = vld [vmem:[#allocation11 + $0x60] sm:$0xff] }
 0x2a9   : > { %2496 = vmatprep.subr.mxu0 %v1774_v47  ;;  %2609 = vmatprep.subr.mxu1 %v1902_v48  ;;  %v1862_v43 = vld [vmem:[#allocation11 + $0x468] sm:$0xff]  ;;  %v1861_v4 = vld [vmem:[#allocation11 + $0x460] sm:$0xff]  ;;  %v6939_v44 = vadd.f32 %v6916_v46, %v1692_v35 }
 0x2aa   : > { %2497 = vmatpush1.msra.mxu0 %v1773_v49  ;;  %2610 = vmatpush1.msra.mxu1 %v1901_v32  ;;  %v1730_v15 = vld [vmem:[#allocation11 + $0x48] sm:$0xff]  ;;  %v6943_v48 = vadd.f32 %v6919_v19, %v1691_v23  ;;  %v1729_v49 = vld [vmem:[#allocation11 + $0x40] sm:$0xff] }
 0x2ab   : > { %2498 = vmatprep.subr.mxu0 %v1770_v51  ;;  %2611 = vmatprep.subr.mxu1 %v1898_v8  ;;  %v1858_v18 = vld [vmem:[#allocation11 + $0x448] sm:$0xff]  ;;  %v1857_v32 = vld [vmem:[#allocation11 + $0x440] sm:$0xff] }
 0x2ac   : > { %2499 = vmatpush1.msra.mxu0 %v1769_v21  ;;  %2612 = vmatpush1.msra.mxu1 %v1897_v52  ;;  %v1652_v47 = vld [vmem:[%s6907_s21 + $0x18] sm:$0xff]  ;;  %v1651_v21 = vld [vmem:[%s6907_s21 + $0x10] sm:$0xff]  ;;  %v1658_v35 = vld [vmem:[%s6907_s21 + $0x48] sm:$0xff] }
 0x2ad   : > { %2500 = vmatprep.subr.mxu0 %v1766_v55  ;;  %2613 = vmatprep.subr.mxu1 %v1894_v9  ;;  %v1726_v51 = vld [vmem:[#allocation11 + $0x28] sm:$0xff]  ;;  %v1725_v52 = vld [vmem:[#allocation11 + $0x20] sm:$0xff]  ;;  %v1680_v9 = vmul.f32 %v6905_v7, %v1652_v47 }
 0x2ae   : > { %2501 = vmatpush1.msra.mxu0 %v1765_v61  ;;  %2614 = vmatpush1.msra.mxu1 %v1893_v29  ;;  %v1854_v8 = vld [vmem:[#allocation11 + $0x428] sm:$0xff]  ;;  %v1853_v55 = vld [vmem:[#allocation11 + $0x420] sm:$0xff] }
 0x2af   : > { %2502 = vmatprep.subr.mxu0 %v1762_v37  ;;  %2615 = vmatprep.subr.mxu1 %v1890_v11  ;;  %v1722_v61 = vld [vmem:[#allocation11 + $0x8] sm:$0xff]  ;;  %v1721_v37 = vld [vmem:[#allocation11] sm:$0xff] }
 0x2b0   : > { %2503 = vmatpush1.msra.mxu0 %v1761_v24  ;;  %2616 = vmatpush1.msra.mxu1 %v1889_v59  ;;  %v1850_v29 = vld [vmem:[#allocation11 + $0x408] sm:$0xff]  ;;  %v1849_v11 = vld [vmem:[#allocation11 + $0x400] sm:$0xff]  ;;  %v1679_v24 = vmul.f32 %v6911_v54, %v1651_v21 }
 0x2b1   : > { %2504 = vmatprep.subr.mxu0 %v1758_v62  ;;  %2617 = vmatprep.subr.mxu1 %v1886_v12  ;;  %v1846_v59 = vld [vmem:[#allocation11 + $0x3e8] sm:$0xff]  ;;  %v1654_v12 = vld [vmem:[%s6907_s21 + $0x28] sm:$0xff] }
 0x2b2   : > { %2505 = vmatpush1.msra.mxu0 %v1757_v63  ;;  %2618 = vmatpush1.msra.mxu1 %v1885_v41  ;;  %v1974_v62 = vld [vmem:[#allocation11 + $0x7e8] sm:$0xff]  ;;  %v1845_v63 = vld [vmem:[#allocation11 + $0x3e0] sm:$0xff] }
 0x2b3   : > { %2506 = vmatprep.subr.mxu0 %v1754_v27  ;;  %2619 = vmatprep.subr.mxu1 %v1882_v30  ;;  %v1973_v41 = vld [vmem:[#allocation11 + $0x7e0] sm:$0xff]  ;;  %v1708_v27 = vadd.f32 %v6916_v46, %v1680_v9  ;;  %v1842_v30 = vld [vmem:[#allocation11 + $0x3c8] sm:$0xff] }
 0x2b4   : > { %2507 = vmatpush1.msra.mxu0 %v1753_v3  ;;  %2620 = vmatpush1.msra.mxu1 %v1881_v31  ;;  %v1653_v3 = vld [vmem:[%s6907_s21 + $0x20] sm:$0xff]  ;;  %v1970_v31 = vld [vmem:[#allocation11 + $0x7c8] sm:$0xff]  ;;  %v1837_v0 = vld [vmem:[#allocation11 + $0x3a0] sm:$0xff] }
 0x2b5   : > { %2508 = vmatprep.subr.mxu0 %v1750_v33  ;;  %2621 = vmatprep.subr.mxu1 %v1878_v38  ;;  %v1707_v33 = vadd.f32 %v6919_v19, %v1679_v24  ;;  %v1682_v38 = vmul.f32 %v6905_v7, %v1654_v12  ;;  %v1834_v42 = vld [vmem:[#allocation11 + $0x388] sm:$0xff]  ;;  %v1829_v36 = vld [vmem:[#allocation11 + $0x360] sm:$0xff] }
 0x2b6   : > { %2509 = vmatpush1.msra.mxu0 %v1749_v45  ;;  %2622 = vmatpush1.msra.mxu1 %v1877_v57  ;;  %v1841_v45 = vld [vmem:[#allocation11 + $0x3c0] sm:$0xff]  ;;  %v1826_v23 = vld [vmem:[#allocation11 + $0x348] sm:$0xff] }
 0x2b7   : > { %2510 = vmatprep.subr.mxu0 %v1746_v28  ;;  %2623 = vmatprep.subr.mxu1 %v1874_v14  ;;  %v1969_v57 = vld [vmem:[#allocation11 + $0x7c0] sm:$0xff]  ;;  %v1681_v28 = vmul.f32 %v6911_v54, %v1653_v3  ;;  %v1838_v14 = vld [vmem:[#allocation11 + $0x3a8] sm:$0xff] }
 0x2b8   : > { %2511 = vmatpush1.msra.mxu0 %v1745_v60  ;;  %2624 = vmatpush1.msra.mxu1 %v1873_v53  ;;  %v1966_v60 = vld [vmem:[#allocation11 + $0x7a8] sm:$0xff]  ;;  %v1825_v47 = vld [vmem:[#allocation11 + $0x340] sm:$0xff] }
 0x2b9   : > { %2512 = vmatprep.subr.mxu0 %v1742_v39  ;;  %2625 = vmatprep.subr.mxu1 %v1870_v40  ;;  %v1656_v53 = vld [vmem:[%s6907_s21 + $0x38] sm:$0xff]  ;;  %v1965_v39 = vld [vmem:[#allocation11 + $0x7a0] sm:$0xff]  ;;  %v1710_v40 = vadd.f32 %v6916_v46, %v1682_v38 }
 0x2ba   : > { %2513 = vmatpush1.msra.mxu0 %v1741_v56  ;;  %2626 = vmatpush1.msra.mxu1 %v1869_v1  ;;  %v1655_v5 = vld [vmem:[%s6907_s21 + $0x30] sm:$0xff]  ;;  %v1709_v1 = vadd.f32 %v6919_v19, %v1681_v28  ;;  %v1684_v17 = vmul.f32 %v6905_v7, %v1656_v53  ;;  %v1660_v21 = vld [vmem:[%s6907_s21 + $0x58] sm:$0xff] }
 0x2bb   : > { %2514 = vmatprep.subr.mxu0 %v1738_v20  ;;  %2627 = vmatprep.subr.mxu1 %v1866_v10  ;;  %v1962_v56 = vld [vmem:[#allocation11 + $0x788] sm:$0xff]  ;;  %v1833_v20 = vld [vmem:[#allocation11 + $0x380] sm:$0xff]  ;;  %v1683_v25 = vmul.f32 %v6911_v54, %v1655_v5  ;;  %v1688_v24 = vmul.f32 %v6905_v7, %v1660_v21 }
 0x2bc   : > { %2515 = vmatpush1.msra.mxu0 %v1737_v26  ;;  %2628 = vmatpush1.msra.mxu1 %v1865_v13  ;;  %v1961_v10 = vld [vmem:[#allocation11 + $0x780] sm:$0xff]  ;;  %v1830_v26 = vld [vmem:[#allocation11 + $0x368] sm:$0xff] }
 0x2bd   : > { %2516 = vmatprep.subr.mxu0 %v1734_v22  ;;  %2629 = vmatprep.subr.mxu1 %v1862_v43  ;;  %v1958_v13 = vld [vmem:[#allocation11 + $0x768] sm:$0xff]  ;;  %v1957_v22 = vld [vmem:[#allocation11 + $0x760] sm:$0xff]  ;;  %v1712_v43 = vadd.f32 %v6916_v46, %v1684_v17  ;;  %v1716_v3 = vadd.f32 %v6916_v46, %v1688_v24 }
 0x2be   : > { %2517 = vmatpush1.msra.mxu0 %v1733_v6  ;;  %2630 = vmatpush1.msra.mxu1 %v1861_v4  ;;  %v1657_v6 = vld [vmem:[%s6907_s21 + $0x40] sm:$0xff]  ;;  %v1954_v4 = vld [vmem:[#allocation11 + $0x748] sm:$0xff]  ;;  %v1937_v38 = vld [vmem:[#allocation11 + $0x6c0] sm:$0xff] }
 0x2bf   : > { %2518 = vmatprep.subr.mxu0 %v1730_v15  ;;  %2631 = vmatprep.subr.mxu1 %v1858_v18  ;;  %v1711_v15 = vadd.f32 %v6919_v19, %v1683_v25  ;;  %v1686_v18 = vmul.f32 %v6905_v7, %v1658_v35  ;;  %v1810_v7 = vld [vmem:[#allocation11 + $0x2c8] sm:$0xff]  ;;  %v1933_v28 = vld [vmem:[#allocation11 + $0x6a0] sm:$0xff] }
 0x2c0   : > { %2519 = vmatpush1.msra.mxu0 %v1729_v49  ;;  %2632 = vmatpush1.msra.mxu1 %v1857_v32  ;;  %v1953_v49 = vld [vmem:[#allocation11 + $0x740] sm:$0xff]  ;;  %v1685_v32 = vmul.f32 %v6911_v54, %v1657_v6  ;;  %v1794_v5 = vld [vmem:[#allocation11 + $0x248] sm:$0xff] }
 0x2c1   : > { %2520 = vmatprep.subr.mxu0 %v1726_v51  ;;  %2633 = vmatprep.subr.mxu1 %v1854_v8  ;;  %v1822_v51 = vld [vmem:[#allocation11 + $0x328] sm:$0xff]  ;;  %v1714_v9 = vadd.f32 %v6916_v46, %v1686_v18  ;;  %v1805_v46 = vld [vmem:[#allocation11 + $0x2a0] sm:$0xff]  ;;  %v6996_v18 = vld [vmem:[%s6983_s28 + $0x40] sm:$0xff] }
 0x2c2   : > { %2521 = vmatpush1.msra.mxu0 %v1725_v52  ;;  %2634 = vmatpush1.msra.mxu1 %v1853_v55  ;;  %v1950_v8 = vld [vmem:[#allocation11 + $0x728] sm:$0xff]  ;;  %v1821_v52 = vld [vmem:[#allocation11 + $0x320] sm:$0xff] }
 0x2c3   : > { %2522 = vmatprep.subr.mxu0 %v1722_v61  ;;  %2635 = vmatprep.subr.mxu1 %v1850_v29  ;;  %v1949_v55 = vld [vmem:[#allocation11 + $0x720] sm:$0xff]  ;;  %v1818_v61 = vld [vmem:[#allocation11 + $0x308] sm:$0xff] }
 0x2c4   : > { %2523 = vmatpush1.msra.mxu0 %v1721_v37  ;;  %2636 = vmatpush1.msra.mxu1 %v1849_v11  ;;  %v1659_v29 = vld [vmem:[%s6907_s21 + $0x50] sm:$0xff]  ;;  %v1713_v11 = vadd.f32 %v6919_v19, %v1685_v32  ;;  %v7000_v32 = vld [vmem:[%s6983_s28 + $0x38] sm:$0xff] }
 0x2c5   : > { %2524 = vmatprep.subr.mxu0 %v1846_v59  ;;  %2637 = vmatprep.subr.mxu1 %v1974_v62  ;;  %v1946_v37 = vld [vmem:[#allocation11 + $0x708] sm:$0xff]  ;;  %v1817_v59 = vld [vmem:[#allocation11 + $0x300] sm:$0xff]  ;;  %v1687_v12 = vmul.f32 %v6911_v54, %v1659_v29 }
 0x2c6   : > { %2525 = vmatpush2.msra.mxu0 %v1845_v63  ;;  %2638 = vmatpush2.msra.mxu1 %v1973_v41  ;;  %v1945_v62 = vld [vmem:[#allocation11 + $0x700] sm:$0xff]  ;;  %v1814_v63 = vld [vmem:[#allocation11 + $0x2e8] sm:$0xff] }
 0x2c7   : > { %2424 = vmatprep.mubr.f32.mxu1 %v1708_v27  ;;  %2526 = vmatprep.subr.mxu0 %v1842_v30  ;;  %v1942_v41 = vld [vmem:[#allocation11 + $0x6e8] sm:$0xff]  ;;  %v1941_v30 = vld [vmem:[#allocation11 + $0x6e0] sm:$0xff] }
 0x2c8   : > { %2639 = vmatprep.subr.mxu1 %v1970_v31  ;;  %2311 = vmatprep.mubr.f32.mxu0 %v1708_v27  ;;  %v1813_v27 = vld [vmem:[#allocation11 + $0x2e0] sm:$0xff]  ;;  %v1938_v31 = vld [vmem:[#allocation11 + $0x6c8] sm:$0xff] }
 0x2c9   : > { %2425 = vmatmul.mubr.f32.gmra.mxu1 %v1707_v33  ;;  %2527 = vmatpush2.msra.mxu0 %v1841_v45  ;;  %v1809_v54 = vld [vmem:[#allocation11 + $0x2c0] sm:$0xff]  ;;  %v1806_v45 = vld [vmem:[#allocation11 + $0x2a8] sm:$0xff] }
 0x2ca   : > { %2640 = vmatpush2.msra.mxu1 %v1969_v57  ;;  %2312 = vmatmul.mubr.f32.gmra.mxu0 %v1707_v33  ;;  %v1715_v33 = vadd.f32 %v6919_v19, %v1687_v12  ;;  %v1934_v57 = vld [vmem:[#allocation11 + $0x6a8] sm:$0xff]  ;;  %v1929_v53 = vld [vmem:[#allocation11 + $0x680] sm:$0xff] }
 0x2cb   : > { %2528 = vmatprep.subr.mxu0 %v1838_v14  ;;  %2641 = vmatprep.subr.mxu1 %v1966_v60  ;;  %v1802_v14 = vld [vmem:[#allocation11 + $0x288] sm:$0xff]  ;;  %v1801_v60 = vld [vmem:[#allocation11 + $0x280] sm:$0xff] }
 0x2cc   : > { %2529 = vmatpush2.msra.mxu0 %v1837_v0  ;;  %2642 = vmatpush2.msra.mxu1 %v1965_v39  ;;  %v1930_v19 = vld [vmem:[#allocation11 + $0x688] sm:$0xff]  ;;  %v1913_v35 = vld [vmem:[#allocation11 + $0x600] sm:$0xff] }
 0x2cd   : > { %2430 = vmatprep.mubr.f32.mxu1 %v1710_v40  ;;  %2530 = vmatprep.subr.mxu0 %v1834_v42  ;;  %v1798_v0 = vld [vmem:[#allocation11 + $0x268] sm:$0xff]  ;;  %v1925_v42 = vld [vmem:[#allocation11 + $0x660] sm:$0xff] }
 0x2ce   : > { %2643 = vmatprep.subr.mxu1 %v1962_v56  ;;  %2317 = vmatprep.mubr.f32.mxu0 %v1710_v40  ;;  %v1926_v39 = vld [vmem:[#allocation11 + $0x668] sm:$0xff]  ;;  %v1797_v40 = vld [vmem:[#allocation11 + $0x260] sm:$0xff] }
 0x2cf   : > { %2431 = vmatmul.mubr.f32.gmra.mxu1 %v1709_v1  ;;  %2531 = vmatpush2.msra.mxu0 %v1833_v20  ;;  %v1922_v56 = vld [vmem:[#allocation11 + $0x648] sm:$0xff]  ;;  %v2037_v6 = vld [vmem:[#allocation11 + $0x9e0] sm:$0xff] }
 0x2d0   : > { %2644 = vmatpush2.msra.mxu1 %v1961_v10  ;;  %2318 = vmatmul.mubr.f32.gmra.mxu0 %v1709_v1  ;;  %v1793_v1 = vld [vmem:[#allocation11 + $0x240] sm:$0xff]  ;;  %v1790_v17 = vld [vmem:[#allocation11 + $0x228] sm:$0xff] }
 0x2d1   : > { %2532 = vmatprep.subr.mxu0 %v1830_v26  ;;  %2645 = vmatprep.subr.mxu1 %v1958_v13  ;;  %v1918_v20 = vld [vmem:[#allocation11 + $0x628] sm:$0xff]  ;;  %v1917_v10 = vld [vmem:[#allocation11 + $0x620] sm:$0xff] }
 0x2d2   : > { %2533 = vmatpush2.msra.mxu0 %v1829_v36  ;;  %2646 = vmatpush2.msra.mxu1 %v1957_v22  ;;  %v1786_v25 = vld [vmem:[#allocation11 + $0x208] sm:$0xff]  ;;  %v1785_v13 = vld [vmem:[#allocation11 + $0x200] sm:$0xff] }
 0x2d3   : > { %2436 = vmatprep.mubr.f32.mxu1 %v1712_v43  ;;  %2534 = vmatprep.subr.mxu0 %v1826_v23  ;;  %v1914_v26 = vld [vmem:[#allocation11 + $0x608] sm:$0xff]  ;;  %v2025_v29 = vld [vmem:[#allocation11 + $0x980] sm:$0xff] }
 0x2d4   : > { %2647 = vmatprep.subr.mxu1 %v1954_v4  ;;  %2323 = vmatprep.mubr.f32.mxu0 %v1712_v43  ;;  %v1593_v36 = vld [vmem:[%s6983_s28 + $0x18] sm:$0xff]  ;;  %v1592_v22 = vld [vmem:[%s6983_s28 + $0x10] sm:$0xff] }
 0x2d5   : > { %2437 = vmatmul.mubr.f32.gmra.mxu1 %v1711_v15  ;;  %2535 = vmatpush2.msra.mxu0 %v1825_v47  ;;  %v2038_v43 = vld [vmem:[#allocation11 + $0x9e8] sm:$0xff]  ;;  %v2109_v4 = vld [vmem:[#allocation11 + $0xc20] sm:$0xff] }
 0x2d6   : > { %2648 = vmatpush2.msra.mxu1 %v1953_v49  ;;  %2324 = vmatmul.mubr.f32.gmra.mxu0 %v1711_v15  ;;  %v2110_v23 = vld [vmem:[#allocation11 + $0xc28] sm:$0xff]  ;;  %v2033_v49 = vld [vmem:[#allocation11 + $0x9c0] sm:$0xff] }
 0x2d7   : > { %2536 = vmatprep.subr.mxu0 %v1822_v51  ;;  %2649 = vmatprep.subr.mxu1 %v1950_v8  ;;  %v2034_v15 = vld [vmem:[#allocation11 + $0x9c8] sm:$0xff]  ;;  %v1599_v51 = vld [vmem:[%s6983_s28 + $0x48] sm:$0xff] }
 0x2d8   : > { %2537 = vmatpush2.msra.mxu0 %v1821_v52  ;;  %2650 = vmatpush2.msra.mxu1 %v1949_v55  ;;  %v1600_v47 = vld [vmem:[%s6983_s28 + $0x50] sm:$0xff]  ;;  %v7005_v21 = vld [vmem:[%s6983_s28 + $0x78] sm:$0xff]  ;;  %v1607_v55 = vld [vmem:[%s6983_s28 + $0x88] sm:$0xff] }
 0x2d9   : > { %2442 = vmatprep.mubr.f32.mxu1 %v1714_v9  ;;  %2538 = vmatprep.subr.mxu0 %v1818_v61  ;;  %v2030_v8 = vld [vmem:[#allocation11 + $0x9a8] sm:$0xff]  ;;  %v2029_v52 = vld [vmem:[#allocation11 + $0x9a0] sm:$0xff] }
 0x2da   : > { %2651 = vmatprep.subr.mxu1 %v1946_v37  ;;  %2329 = vmatprep.mubr.f32.mxu0 %v1714_v9  ;;  %v2026_v9 = vld [vmem:[#allocation11 + $0x988] sm:$0xff]  ;;  %v1606_v37 = vld [vmem:[%s6983_s28 + $0x80] sm:$0xff] }
 0x2db   : > { %2443 = vmatmul.mubr.f32.gmra.mxu1 %v1713_v11  ;;  %2539 = vmatpush2.msra.mxu0 %v1817_v59  ;;  %v2106_v61 = vld [vmem:[#allocation11 + $0xc08] sm:$0xff]  ;;  %v2021_v59 = vld [vmem:[#allocation11 + $0x960] sm:$0xff] }
 0x2dc   : > { %2652 = vmatpush2.msra.mxu1 %v1945_v62  ;;  %2330 = vmatmul.mubr.f32.gmra.mxu0 %v1713_v11  ;;  %v7012_v11 = vld [vmem:[%s6983_s28 + $0x70] sm:$0xff] }
 0x2dd   : > { %2540 = vmatprep.subr.mxu0 %v1814_v63  ;;  %2653 = vmatprep.subr.mxu1 %v1942_v41  ;;  %v2022_v24 = vld [vmem:[#allocation11 + $0x968] sm:$0xff]  ;;  %v1614_v63 = vld [vmem:[%s6983_s28 + $0xc0] sm:$0xff]  ;;  %v2017_v41 = vld [vmem:[#allocation11 + $0x940] sm:$0xff] }
 0x2de   : > { %2541 = vmatpush2.msra.mxu0 %v1813_v27  ;;  %2654 = vmatpush2.msra.mxu1 %v1941_v30  ;;  %v7015_v62 = vld [vmem:[%s6983_s28 + $0xb0] sm:$0xff]  ;;  %v1613_v27 = vld [vmem:[%s6983_s28 + $0xb8] sm:$0xff]  ;;  %v7022_v30 = vld [vmem:[%s6983_s28 + $0xa8] sm:$0xff] }
 0x2df   : > { %2448 = vmatprep.mubr.f32.mxu1 %v1716_v3  ;;  %2542 = vmatprep.subr.mxu0 %v1810_v7  ;;  %v2018_v12 = vld [vmem:[#allocation11 + $0x948] sm:$0xff]  ;;  %v2013_v7 = vld [vmem:[#allocation11 + $0x920] sm:$0xff] }
 0x2e0   : > { %2655 = vmatprep.subr.mxu1 %v1938_v31  ;;  %2335 = vmatprep.mubr.f32.mxu0 %v1716_v3  ;;  %v2014_v3 = vld [vmem:[#allocation11 + $0x928] sm:$0xff]  ;;  %v7025_v31 = vld [vmem:[%s6983_s28 + $0xe8] sm:$0xff] }
 0x2e1   : > { %2449 = vmatmul.mubr.f32.gmra.mxu1 %v1715_v33  ;;  %2543 = vmatpush2.msra.mxu0 %v1809_v54  ;;  %v1621_v54 = vld [vmem:[%s6983_s28 + $0xf8] sm:$0xff] }
 0x2e2   : > { %2656 = vmatpush2.msra.mxu1 %v1937_v38  ;;  %2336 = vmatmul.mubr.f32.gmra.mxu0 %v1715_v33  ;;  %v2010_v33 = vld [vmem:[#allocation11 + $0x908] sm:$0xff]  ;;  %v2009_v38 = vld [vmem:[#allocation11 + $0x900] sm:$0xff] }
 0x2e3   : > { %2544 = vmatprep.subr.mxu0 %v1806_v45  ;;  %2657 = vmatprep.subr.mxu1 %v1934_v57  ;;  %v1620_v45 = vld [vmem:[%s6983_s28 + $0xf0] sm:$0xff]  ;;  %v7032_v57 = vld [vmem:[%s6983_s28 + $0xe0] sm:$0xff] }
 0x2e4   : > { %2545 = vmatpush2.msra.mxu0 %v1805_v46  ;;  %2658 = vmatpush2.msra.mxu1 %v1933_v28  ;;  %v2006_v46 = vld [vmem:[#allocation11 + $0x8e8] sm:$0xff]  ;;  %v2005_v28 = vld [vmem:[#allocation11 + $0x8e0] sm:$0xff] }
 0x2e5   : > { %2454 = vmatprep.mubr.f32.mxu1 %v6929_v16  ;;  %2546 = vmatprep.subr.mxu0 %v1802_v14  ;;  %v2105_v14 = vld [vmem:[#allocation11 + $0xc00] sm:$0xff] }
 0x2e6   : > { %2659 = vmatprep.subr.mxu1 %v1930_v19  ;;  %2341 = vmatprep.mubr.f32.mxu0 %v6929_v16  ;;  %v1921_v16 = vld [vmem:[#allocation11 + $0x640] sm:$0xff]  ;;  %v2002_v19 = vld [vmem:[#allocation11 + $0x8c8] sm:$0xff] }
 0x2e7   : > { %2455 = vmatmul.mubr.f32.gmra.mxu1 %v6933_v34  ;;  %2547 = vmatpush2.msra.mxu0 %v1801_v60  ;;  %v7035_v60 = vld [vmem:[%s6983_s28 + $0x120] sm:$0xff] }
 0x2e8   : > { %2660 = vmatpush2.msra.mxu1 %v1929_v53  ;;  %2342 = vmatmul.mubr.f32.gmra.mxu0 %v6933_v34  ;;  %v1789_v34 = vld [vmem:[#allocation11 + $0x220] sm:$0xff] }
 0x2e9   : > { %2548 = vmatprep.subr.mxu0 %v1798_v0  ;;  %2661 = vmatprep.subr.mxu1 %v1926_v39  ;;  %v1628_v53 = vld [vmem:[%s6983_s28 + $0x130] sm:$0xff]  ;;  %v7040_v39 = vld [vmem:[%s6983_s28 + $0x118] sm:$0xff] }
 0x2ea   : > { %2549 = vmatpush2.msra.mxu0 %v1797_v40  ;;  %2662 = vmatpush2.msra.mxu1 %v1925_v42  ;;  %v2001_v0 = vld [vmem:[#allocation11 + $0x8c0] sm:$0xff]  ;;  %v1998_v42 = vld [vmem:[#allocation11 + $0x8a8] sm:$0xff] }
 0x2eb   : > { %2460 = vmatprep.mubr.f32.mxu1 %v6939_v44  ;;  %2550 = vmatprep.subr.mxu0 %v1794_v5  ;;  %v1627_v40 = vld [vmem:[%s6983_s28 + $0x128] sm:$0xff]  ;;  %v7045_v5 = vld [vmem:[%s6983_s28 + $0x158] sm:$0xff] }
 0x2ec   : > { %2663 = vmatprep.subr.mxu1 %v1922_v56  ;;  %2347 = vmatprep.mubr.f32.mxu0 %v6939_v44  ;;  %v6986_v44 = vld [vmem:[%s6983_s28 + $0x8] sm:$0xff] }
 0x2ed   : > { %2461 = vmatmul.mubr.f32.gmra.mxu1 %v6943_v48  ;;  %2551 = vmatpush2.msra.mxu0 %v1793_v1  ;;  %v1997_v56 = vld [vmem:[#allocation11 + $0x8a0] sm:$0xff] }
 0x2ee   : > { %2664 = vmatpush2.msra.mxu1 %v1921_v16  ;;  %2348 = vmatmul.mubr.f32.gmra.mxu0 %v6943_v48  ;;  %v6990_v48 = vld [vmem:[%s6983_s28] sm:$0xff]  ;;  %v1635_v1 = vld [vmem:[%s6983_s28 + $0x168] sm:$0xff]  ;;  %v1994_v16 = vld [vmem:[#allocation11 + $0x888] sm:$0xff] }
 0x2ef   : > { %2552 = vmatprep.subr.mxu0 %v1790_v17  ;;  %2665 = vmatprep.subr.mxu1 %v1918_v20  ;;  %v1784_v17 = vld [vmem:[#allocation11 + $0x1f8] sm:$0xff]  ;;  %v1993_v20 = vld [vmem:[#allocation11 + $0x880] sm:$0xff] }
 0x2f0   : > { %2553 = vmatpush2.msra.mxu0 %v1789_v34  ;;  %2666 = vmatpush2.msra.mxu1 %v1917_v10  ;;  %v1634_v34 = vld [vmem:[%s6983_s28 + $0x160] sm:$0xff]  ;;  %v7052_v10 = vld [vmem:[%s6983_s28 + $0x150] sm:$0xff] }
 0x2f1   : > { %2554 = vmatprep.subr.mxu0 %v1786_v25  ;;  %2667 = vmatprep.subr.mxu1 %v1914_v26  ;;  %v1990_v25 = vld [vmem:[#allocation11 + $0x868] sm:$0xff]  ;;  %v1989_v26 = vld [vmem:[#allocation11 + $0x860] sm:$0xff] }
 0x2f2   : > { %2555 = vmatpush2.msra.mxu0 %v1785_v13  ;;  %2556 = vmatprep.mubr.f32.mxu0 %v6986_v44  ;;  %v7055_v13 = vld [vmem:[%s6983_s28 + $0x190] sm:$0xff] }
 0x2f3   : > { %2668 = vmatpush2.msra.mxu1 %v1913_v35  ;;  %2669 = vmatprep.mubr.f32.mxu1 %v1593_v36  ;;  %v1986_v35 = vld [vmem:[#allocation11 + $0x848] sm:$0xff]  ;;  %v1642_v36 = vld [vmem:[%s6983_s28 + $0x1a0] sm:$0xff] }
 0x2f4   : > { %2557 = vmatmul.mubr.f32.vlgmr.msra.gmra.mxu0 %v6990_v48  ;;  %2670 = vmatmul.mubr.f32.vlgmr.msra.gmra.mxu1 %v1592_v22  ;;  %v1985_v22 = vld [vmem:[#allocation11 + $0x840] sm:$0xff] }
 0x2f5   : > { %2718 = vmatprep.subr.mxu0 %v2038_v43  ;;  %2859 = vmatprep.subr.mxu1 %v2110_v23  ;;  %v1641_v43 = vld [vmem:[%s6983_s28 + $0x198] sm:$0xff]  ;;  %v7062_v23 = vld [vmem:[%s6983_s28 + $0x188] sm:$0xff] }
 0x2f6   : > { %2719 = vmatpush1.msra.mxu0 %v2037_v6  ;;  %2860 = vmatpush1.msra.mxu1 %v2109_v4  ;;  %v1982_v6 = vld [vmem:[#allocation11 + $0x828] sm:$0xff]  ;;  %v1981_v4 = vld [vmem:[#allocation11 + $0x820] sm:$0xff] }
 0x2f7   : > { %2720 = vmatprep.subr.mxu0 %v2034_v15  ;;  %2562 = vmatprep.mubr.f32.mxu0 %v6996_v18  ;;  %v1978_v15 = vld [vmem:[#allocation11 + $0x808] sm:$0xff] }
 0x2f8   : > { %2675 = vmatprep.mubr.f32.mxu1 %v1600_v47  ;;  %2721 = vmatpush1.msra.mxu0 %v2033_v49  ;;  %v1595_v47 = vld [vmem:[%s6983_s28 + $0x28] sm:$0xff] }
 0x2f9   : > { %2563 = vmatmul.mubr.f32.gmra.mxu0 %v7000_v32  ;;  %2676 = vmatmul.mubr.f32.gmra.mxu1 %v1599_v51  ;;  %v1977_v49 = vld [vmem:[#allocation11 + $0x800] sm:$0xff] }
 0x2fa   : > { %2722 = vmatprep.subr.mxu0 %v2030_v8  ;;  %2568 = vmatprep.mubr.f32.mxu0 %v7005_v21  ;;  %v1596_v51 = vld [vmem:[%s6983_s28 + $0x30] sm:$0xff]  ;;  %v5551_v8 = vmov 0.0  }
 0x2fb   : > { %2723 = vmatpush1.msra.mxu0 %v2029_v52  ;;  %2681 = vmatprep.mubr.f32.mxu1 %v1607_v55  ;;  %v2102_v52 = vld [vmem:[#allocation11 + $0xbe8] sm:$0xff]  ;;  %v1783_v55 = vld [vmem:[#allocation11 + $0x1f0] sm:$0xff] }
 0x2fc   : > { %2724 = vmatprep.subr.mxu0 %v2026_v9  ;;  %2861 = vmatprep.subr.mxu1 %v2106_v61  ;;  %v2101_v9 = vld [vmem:[#allocation11 + $0xbe0] sm:$0xff]  ;;  %v1780_v61 = vld [vmem:[#allocation11 + $0x1d8] sm:$0xff] }
 0x2fd   : > { %2725 = vmatpush1.msra.mxu0 %v2025_v29  ;;  %2682 = vmatmul.mubr.f32.gmra.mxu1 %v1606_v37  ;;  %v2098_v29 = vld [vmem:[#allocation11 + $0xbc8] sm:$0xff]  ;;  %v1779_v37 = vld [vmem:[#allocation11 + $0x1d0] sm:$0xff] }
 0x2fe   : > { %2569 = vmatmul.mubr.f32.gmra.mxu0 %v7012_v11  ;;  %2726 = vmatprep.subr.mxu0 %v2022_v24  ;;  %v2097_v24 = vld [vmem:[#allocation11 + $0xbc0] sm:$0xff] }
 0x2ff   : > { %2727 = vmatpush1.msra.mxu0 %v2021_v59  ;;  %2574 = vmatprep.mubr.f32.mxu0 %v7015_v62  ;;  %v1776_v59 = vld [vmem:[#allocation11 + $0x1b8] sm:$0xff] }
 0x300   : > { %2728 = vmatprep.subr.mxu0 %v2018_v12  ;;  %2687 = vmatprep.mubr.f32.mxu1 %v1614_v63  ;;  %v2094_v12 = vld [vmem:[#allocation11 + $0xba8] sm:$0xff]  ;;  %v1775_v63 = vld [vmem:[#allocation11 + $0x1b0] sm:$0xff] }
 0x301   : > { %2729 = vmatpush1.msra.mxu0 %v2017_v41  ;;  %2688 = vmatmul.mubr.f32.gmra.mxu1 %v1613_v27  ;;  %v2093_v41 = vld [vmem:[#allocation11 + $0xba0] sm:$0xff]  ;;  %v1772_v27 = vld [vmem:[#allocation11 + $0x198] sm:$0xff] }
 0x302   : > { %2575 = vmatmul.mubr.f32.gmra.mxu0 %v7022_v30  ;;  %2730 = vmatprep.subr.mxu0 %v2014_v3  ;;  %v2090_v3 = vld [vmem:[#allocation11 + $0xb88] sm:$0xff] }
 0x303   : > { %2731 = vmatpush1.msra.mxu0 %v2013_v7  ;;  %2580 = vmatprep.mubr.f32.mxu0 %v7025_v31  ;;  %v1771_v7 = vld [vmem:[#allocation11 + $0x190] sm:$0xff] }
 0x304   : > { %2732 = vmatprep.subr.mxu0 %v2010_v33  ;;  %2693 = vmatprep.mubr.f32.mxu1 %v1621_v54  ;;  %v2089_v33 = vld [vmem:[#allocation11 + $0xb80] sm:$0xff]  ;;  %v1768_v54 = vld [vmem:[#allocation11 + $0x178] sm:$0xff] }
 0x305   : > { %2733 = vmatpush1.msra.mxu0 %v2009_v38  ;;  %2694 = vmatmul.mubr.f32.gmra.mxu1 %v1620_v45  ;;  %v2086_v38 = vld [vmem:[#allocation11 + $0xb68] sm:$0xff]  ;;  %v1767_v45 = vld [vmem:[#allocation11 + $0x170] sm:$0xff] }
 0x306   : > { %2581 = vmatmul.mubr.f32.gmra.mxu0 %v7032_v57  ;;  %2734 = vmatprep.subr.mxu0 %v2006_v46  ;;  %v2085_v46 = vld [vmem:[#allocation11 + $0xb60] sm:$0xff] }
 0x307   : > { %2735 = vmatpush1.msra.mxu0 %v2005_v28  ;;  %2862 = vmatpush1.msra.mxu1 %v2105_v14  ;;  %v1764_v28 = vld [vmem:[#allocation11 + $0x158] sm:$0xff]  ;;  %v2082_v14 = vld [vmem:[#allocation11 + $0xb48] sm:$0xff] }
 0x308   : > { %2736 = vmatprep.subr.mxu0 %v2002_v19  ;;  %2586 = vmatprep.mubr.f32.mxu0 %v7035_v60  ;;  %v1763_v19 = vld [vmem:[#allocation11 + $0x150] sm:$0xff] }
 0x309   : > { %2699 = vmatprep.mubr.f32.mxu1 %v1628_v53  ;;  %2737 = vmatpush1.msra.mxu0 %v2001_v0  ;;  %v2081_v53 = vld [vmem:[#allocation11 + $0xb40] sm:$0xff]  ;;  %v1760_v0 = vld [vmem:[#allocation11 + $0x138] sm:$0xff] }
 0x30a   : > { %2587 = vmatmul.mubr.f32.gmra.mxu0 %v7040_v39  ;;  %2700 = vmatmul.mubr.f32.gmra.mxu1 %v1627_v40  ;;  %v2078_v40 = vld [vmem:[#allocation11 + $0xb28] sm:$0xff] }
 0x30b   : > { %2738 = vmatprep.subr.mxu0 %v1998_v42  ;;  %2592 = vmatprep.mubr.f32.mxu0 %v7045_v5  ;;  %v1759_v42 = vld [vmem:[#allocation11 + $0x130] sm:$0xff] }
 0x30c   : > { %2739 = vmatpush1.msra.mxu0 %v1997_v56  ;;  %2705 = vmatprep.mubr.f32.mxu1 %v1635_v1  ;;  %v2077_v56 = vld [vmem:[#allocation11 + $0xb20] sm:$0xff]  ;;  %v1756_v1 = vld [vmem:[#allocation11 + $0x118] sm:$0xff] }
 0x30d   : > { %2740 = vmatprep.subr.mxu0 %v1994_v16  ;;  %2944 = vmatprep.subr.mxu1 %v1784_v17  ;;  %v2074_v16 = vld [vmem:[#allocation11 + $0xb08] sm:$0xff]  ;;  %v1755_v17 = vld [vmem:[#allocation11 + $0x110] sm:$0xff] }
 0x30e   : > { %2741 = vmatpush1.msra.mxu0 %v1993_v20  ;;  %2706 = vmatmul.mubr.f32.gmra.mxu1 %v1634_v34  ;;  %v2073_v20 = vld [vmem:[#allocation11 + $0xb00] sm:$0xff]  ;;  %v1752_v34 = vld [vmem:[#allocation11 + $0xf8] sm:$0xff] }
 0x30f   : > { %2593 = vmatmul.mubr.f32.gmra.mxu0 %v7052_v10  ;;  %2742 = vmatprep.subr.mxu0 %v1990_v25  ;;  %v2070_v25 = vld [vmem:[#allocation11 + $0xae8] sm:$0xff] }
 0x310   : > { %2743 = vmatpush1.msra.mxu0 %v1989_v26  ;;  %2598 = vmatprep.mubr.f32.mxu0 %v7055_v13  ;;  %v1751_v26 = vld [vmem:[#allocation11 + $0xf0] sm:$0xff] }
 0x311   : > { %2744 = vmatprep.subr.mxu0 %v1986_v35  ;;  %2711 = vmatprep.mubr.f32.mxu1 %v1642_v36  ;;  %v2069_v35 = vld [vmem:[#allocation11 + $0xae0] sm:$0xff]  ;;  %v1748_v36 = vld [vmem:[#allocation11 + $0xd8] sm:$0xff] }
 0x312   : > { %2745 = vmatpush1.msra.mxu0 %v1985_v22  ;;  %2712 = vmatmul.mubr.f32.gmra.mxu1 %v1641_v43  ;;  %v2066_v22 = vld [vmem:[#allocation11 + $0xac8] sm:$0xff]  ;;  %v1747_v43 = vld [vmem:[#allocation11 + $0xd0] sm:$0xff] }
 0x313   : > { %2599 = vmatmul.mubr.f32.gmra.mxu0 %v7062_v23  ;;  %2746 = vmatprep.subr.mxu0 %v1982_v6  ;;  %v2065_v6 = vld [vmem:[#allocation11 + $0xac0] sm:$0xff] }
 0x314   : > { %2747 = vmatpush1.msra.mxu0 %v1981_v4  ;;  %2895 = vmatprep.mubr.f32.mxu1 %v5551_v8  ;;  %v1744_v4 = vld [vmem:[#allocation11 + $0xb8] sm:$0xff] }
 0x315   : > { %2748 = vmatprep.subr.mxu0 %v1978_v15  ;;  %2782 = vmatprep.mubr.f32.mxu0 %v1595_v47  ;;  %v2062_v15 = vld [vmem:[#allocation11 + $0xaa8] sm:$0xff]  ;;  %v1743_v47 = vld [vmem:[#allocation11 + $0xb0] sm:$0xff] }
 0x316   : > { %2749 = vmatpush1.msra.mxu0 %v1977_v49  ;;  %4745 = vmatmul.mubr.msk.f32.vlgmr.msra.gmra.mxu1 %vm2467_vm4, %v1596_v51  ;;  %v2061_v49 = vld [vmem:[#allocation11 + $0xaa0] sm:$0xff]  ;;  %v1740_v51 = vld [vmem:[#allocation11 + $0x98] sm:$0xff] }
 0x317   : > { %2750 = vmatprep.subr.mxu0 %v2102_v52  ;;  %2945 = vmatpush1.msra.mxu1 %v1783_v55  ;;  %v2058_v52 = vld [vmem:[#allocation11 + $0xa88] sm:$0xff]  ;;  %v1739_v55 = vld [vmem:[#allocation11 + $0x90] sm:$0xff] }
 0x318   : > { %2751 = vmatpush2.msra.mxu0 %v2101_v9  ;;  %2946 = vmatprep.subr.mxu1 %v1780_v61  ;;  %v2057_v9 = vld [vmem:[#allocation11 + $0xa80] sm:$0xff]  ;;  %v1736_v61 = vld [vmem:[#allocation11 + $0x78] sm:$0xff] }
 0x319   : > { %2752 = vmatprep.subr.mxu0 %v2098_v29  ;;  %2947 = vmatpush1.msra.mxu1 %v1779_v37  ;;  %v2054_v29 = vld [vmem:[#allocation11 + $0xa68] sm:$0xff]  ;;  %v1735_v37 = vld [vmem:[#allocation11 + $0x70] sm:$0xff] }
 0x31a   : > { %2753 = vmatpush2.msra.mxu0 %v2097_v24  ;;  %2948 = vmatprep.subr.mxu1 %v1776_v59  ;;  %v2053_v24 = vld [vmem:[#allocation11 + $0xa60] sm:$0xff]  ;;  %v1732_v59 = vld [vmem:[#allocation11 + $0x58] sm:$0xff] }
 0x31b   : > { %2754 = vmatprep.subr.mxu0 %v2094_v12  ;;  %2949 = vmatpush1.msra.mxu1 %v1775_v63  ;;  %v2050_v12 = vld [vmem:[#allocation11 + $0xa48] sm:$0xff]  ;;  %v1731_v63 = vld [vmem:[#allocation11 + $0x50] sm:$0xff] }
 0x31c   : > { %2755 = vmatpush2.msra.mxu0 %v2093_v41  ;;  %2950 = vmatprep.subr.mxu1 %v1772_v27  ;;  %v2049_v41 = vld [vmem:[#allocation11 + $0xa40] sm:$0xff]  ;;  %v1728_v27 = vld [vmem:[#allocation11 + $0x38] sm:$0xff] }
 0x31d   : > { %2756 = vmatprep.subr.mxu0 %v2090_v3  ;;  %2951 = vmatpush1.msra.mxu1 %v1771_v7  ;;  %v2046_v3 = vld [vmem:[#allocation11 + $0xa28] sm:$0xff]  ;;  %v1727_v7 = vld [vmem:[#allocation11 + $0x30] sm:$0xff] }
 0x31e   : > { %2757 = vmatpush2.msra.mxu0 %v2089_v33  ;;  %2952 = vmatprep.subr.mxu1 %v1768_v54  ;;  %v2045_v33 = vld [vmem:[#allocation11 + $0xa20] sm:$0xff]  ;;  %v1724_v54 = vld [vmem:[#allocation11 + $0x18] sm:$0xff] }
 0x31f   : > { %2758 = vmatprep.subr.mxu0 %v2086_v38  ;;  %2953 = vmatpush1.msra.mxu1 %v1767_v45  ;;  %v2042_v38 = vld [vmem:[#allocation11 + $0xa08] sm:$0xff]  ;;  %v1723_v45 = vld [vmem:[#allocation11 + $0x10] sm:$0xff] }
 0x320   : > { %2759 = vmatpush2.msra.mxu0 %v2085_v46  ;;  %2954 = vmatprep.subr.mxu1 %v1764_v28  ;;  %v2041_v46 = vld [vmem:[#allocation11 + $0xa00] sm:$0xff]  ;;  %v1848_v28 = vld [vmem:[#allocation11 + $0x3f8] sm:$0xff] }
 0x321   : > { %2760 = vmatprep.subr.mxu0 %v2082_v14  ;;  %2955 = vmatpush1.msra.mxu1 %v1763_v19  ;;  %v7070_v14 = vld [vmem:[%s6983_s28 + $0x20] sm:$0xff] }
 0x322   : > { %2761 = vmatpush2.msra.mxu0 %v2081_v53  ;;  %2956 = vmatprep.subr.mxu1 %v1760_v0  ;;  %v1847_v19 = vld [vmem:[#allocation11 + $0x3f0] sm:$0xff]  ;;  %v1912_v53 = vld [vmem:[#allocation11 + $0x5f8] sm:$0xff] }
 0x323   : > { %2762 = vmatprep.subr.mxu0 %v2078_v40  ;;  %2957 = vmatpush1.msra.mxu1 %v1759_v42  ;;  %v1844_v0 = vld [vmem:[#allocation11 + $0x3d8] sm:$0xff]  ;;  %v1911_v40 = vld [vmem:[#allocation11 + $0x5f0] sm:$0xff] }
 0x324   : > { %2763 = vmatpush2.msra.mxu0 %v2077_v56  ;;  %2958 = vmatprep.subr.mxu1 %v1756_v1  ;;  %v1843_v42 = vld [vmem:[#allocation11 + $0x3d0] sm:$0xff]  ;;  %v1908_v56 = vld [vmem:[#allocation11 + $0x5d8] sm:$0xff] }
 0x325   : > { %2764 = vmatprep.subr.mxu0 %v2074_v16  ;;  %2959 = vmatpush1.msra.mxu1 %v1755_v17  ;;  %v7074_v1 = vld [vmem:[%s6983_s28 + $0x60] sm:$0xff]  ;;  %v7077_v16 = vld [vmem:[%s6983_s28 + $0x68] sm:$0xff] }
 0x326   : > { %2765 = vmatpush2.msra.mxu0 %v2073_v20  ;;  %2960 = vmatprep.subr.mxu1 %v1752_v34  ;;  %v1840_v17 = vld [vmem:[#allocation11 + $0x3b8] sm:$0xff]  ;;  %v1907_v20 = vld [vmem:[#allocation11 + $0x5d0] sm:$0xff] }
 0x327   : > { %2766 = vmatprep.subr.mxu0 %v2070_v25  ;;  %2961 = vmatpush1.msra.mxu1 %v1751_v26  ;;  %v7081_v34 = vld [vmem:[%s6983_s28 + $0x58] sm:$0xff]  ;;  %v1904_v26 = vld [vmem:[#allocation11 + $0x5b8] sm:$0xff] }
 0x328   : > { %2767 = vmatpush2.msra.mxu0 %v2069_v35  ;;  %2962 = vmatprep.subr.mxu1 %v1748_v36  ;;  %v1839_v25 = vld [vmem:[#allocation11 + $0x3b0] sm:$0xff]  ;;  %v1836_v35 = vld [vmem:[#allocation11 + $0x398] sm:$0xff] }
 0x329   : > { %2768 = vmatprep.subr.mxu0 %v2066_v22  ;;  %2963 = vmatpush1.msra.mxu1 %v1747_v43  ;;  %v1903_v36 = vld [vmem:[#allocation11 + $0x5b0] sm:$0xff]  ;;  %v1900_v43 = vld [vmem:[#allocation11 + $0x598] sm:$0xff] }
 0x32a   : > { %2769 = vmatpush2.msra.mxu0 %v2065_v6  ;;  %2964 = vmatprep.subr.mxu1 %v1744_v4  ;;  %v1835_v22 = vld [vmem:[#allocation11 + $0x390] sm:$0xff] }
 0x32b   : > { %2770 = vmatprep.subr.mxu0 %v2062_v15  ;;  %2965 = vmatpush1.msra.mxu1 %v1743_v47  ;;  %v7088_v6 = vld [vmem:[%s6983_s28 + $0x98] sm:$0xff]  ;;  %v7091_v4 = vld [vmem:[%s6983_s28 + $0xa0] sm:$0xff] }
 0x32c   : > { %2771 = vmatpush2.msra.mxu0 %v2061_v49  ;;  %2966 = vmatprep.subr.mxu1 %v1740_v51  ;;  %v1832_v15 = vld [vmem:[#allocation11 + $0x378] sm:$0xff]  ;;  %v1899_v47 = vld [vmem:[#allocation11 + $0x590] sm:$0xff]  ;;  %v7095_v49 = vld [vmem:[%s6983_s28 + $0x90] sm:$0xff] }
 0x32d   : > { %2772 = vmatprep.subr.mxu0 %v2058_v52  ;;  %2967 = vmatpush1.msra.mxu1 %v1739_v55  ;;  %v1831_v51 = vld [vmem:[#allocation11 + $0x370] sm:$0xff]  ;;  %v1896_v52 = vld [vmem:[#allocation11 + $0x578] sm:$0xff] }
 0x32e   : > { %2773 = vmatpush2.msra.mxu0 %v2057_v9  ;;  %2968 = vmatprep.subr.mxu1 %v1736_v61  ;;  %v1828_v55 = vld [vmem:[#allocation11 + $0x358] sm:$0xff]  ;;  %v1895_v9 = vld [vmem:[#allocation11 + $0x570] sm:$0xff] }
 0x32f   : > { %2774 = vmatprep.subr.mxu0 %v2054_v29  ;;  %2969 = vmatpush1.msra.mxu1 %v1735_v37  ;;  %v1827_v61 = vld [vmem:[#allocation11 + $0x350] sm:$0xff]  ;;  %v1892_v29 = vld [vmem:[#allocation11 + $0x558] sm:$0xff]  ;;  %v7102_v37 = vld [vmem:[%s6983_s28 + $0xd0] sm:$0xff] }
 0x330   : > { %2775 = vmatpush2.msra.mxu0 %v2053_v24  ;;  %2970 = vmatprep.subr.mxu1 %v1732_v59  ;;  %v7105_v24 = vld [vmem:[%s6983_s28 + $0xd8] sm:$0xff]  ;;  %v1824_v59 = vld [vmem:[#allocation11 + $0x338] sm:$0xff] }
 0x331   : > { %2776 = vmatprep.subr.mxu0 %v2050_v12  ;;  %2971 = vmatpush1.msra.mxu1 %v1731_v63  ;;  %v1891_v12 = vld [vmem:[#allocation11 + $0x550] sm:$0xff]  ;;  %v7109_v63 = vld [vmem:[%s6983_s28 + $0xc8] sm:$0xff] }
 0x332   : > { %2777 = vmatpush2.msra.mxu0 %v2049_v41  ;;  %2972 = vmatprep.subr.mxu1 %v1728_v27  ;;  %v1823_v41 = vld [vmem:[#allocation11 + $0x330] sm:$0xff]  ;;  %v1888_v27 = vld [vmem:[#allocation11 + $0x538] sm:$0xff] }
 0x333   : > { %2778 = vmatprep.subr.mxu0 %v2046_v3  ;;  %2973 = vmatpush1.msra.mxu1 %v1727_v7  ;;  %v1820_v3 = vld [vmem:[#allocation11 + $0x318] sm:$0xff]  ;;  %v1887_v7 = vld [vmem:[#allocation11 + $0x530] sm:$0xff] }
 0x334   : > { %2779 = vmatpush2.msra.mxu0 %v2045_v33  ;;  %2974 = vmatprep.subr.mxu1 %v1724_v54  ;;  %v1819_v33 = vld [vmem:[#allocation11 + $0x310] sm:$0xff]  ;;  %v1884_v54 = vld [vmem:[#allocation11 + $0x518] sm:$0xff] }
 0x335   : > { %2780 = vmatprep.subr.mxu0 %v2042_v38  ;;  %2975 = vmatpush1.msra.mxu1 %v1723_v45  ;;  %v7116_v38 = vld [vmem:[%s6983_s28 + $0x108] sm:$0xff]  ;;  %v7119_v45 = vld [vmem:[%s6983_s28 + $0x110] sm:$0xff] }
 0x336   : > { %2781 = vmatpush2.msra.mxu0 %v2041_v46  ;;  %2976 = vmatprep.subr.mxu1 %v1848_v28  ;;  %v1816_v46 = vld [vmem:[#allocation11 + $0x2f8] sm:$0xff]  ;;  %v1883_v28 = vld [vmem:[#allocation11 + $0x510] sm:$0xff] }
 0x337   : > { %2783 = vmatmul.mubr.f32.vlgmr.msra.gmra.mxu0 %v7070_v14  ;;  %2977 = vmatpush2.msra.mxu1 %v1847_v19  ;;  %v7123_v19 = vld [vmem:[%s6983_s28 + $0x100] sm:$0xff] }
 0x338   : > { %3057 = vmatprep.subr.mxu0 %v1912_v53  ;;  %2978 = vmatprep.subr.mxu1 %v1844_v0  ;;  %v1815_v53 = vld [vmem:[#allocation11 + $0x2f0] sm:$0xff]  ;;  %v1880_v0 = vld [vmem:[#allocation11 + $0x4f8] sm:$0xff] }
 0x339   : > { %3058 = vmatpush1.msra.mxu0 %v1911_v40  ;;  %2901 = vmatprep.mubr.f32.mxu1 %v5551_v8  ;;  %v1812_v40 = vld [vmem:[#allocation11 + $0x2d8] sm:$0xff] }
 0x33a   : > { %2979 = vmatpush2.msra.mxu1 %v1843_v42  ;;  %3059 = vmatprep.subr.mxu0 %v1908_v56  ;;  %v1879_v42 = vld [vmem:[#allocation11 + $0x4f0] sm:$0xff] }
 0x33b   : > { %2788 = vmatprep.mubr.f32.mxu0 %v7074_v1  ;;  %4746 = vmatmul.mubr.msk.f32.gmra.mxu1 %vm2467_vm4, %v7077_v16  ;;  %v1811_v56 = vld [vmem:[#allocation11 + $0x2d0] sm:$0xff] }
 0x33c   : > { %2980 = vmatprep.subr.mxu1 %v1840_v17  ;;  %3060 = vmatpush1.msra.mxu0 %v1907_v20  ;;  %v1876_v17 = vld [vmem:[#allocation11 + $0x4d8] sm:$0xff] }
 0x33d   : > { %2789 = vmatmul.mubr.f32.gmra.mxu0 %v7081_v34  ;;  %2981 = vmatpush2.msra.mxu1 %v1839_v25  ;;  %v7130_v20 = vld [vmem:[%s6983_s28 + $0x140] sm:$0xff]  ;;  %v7133_v25 = vld [vmem:[%s6983_s28 + $0x148] sm:$0xff] }
 0x33e   : > { %3061 = vmatprep.subr.mxu0 %v1904_v26  ;;  %2982 = vmatprep.subr.mxu1 %v1836_v35  ;;  %v1808_v26 = vld [vmem:[#allocation11 + $0x2b8] sm:$0xff]  ;;  %v1875_v35 = vld [vmem:[#allocation11 + $0x4d0] sm:$0xff] }
 0x33f   : > { %3062 = vmatpush1.msra.mxu0 %v1903_v36  ;;  %2907 = vmatprep.mubr.f32.mxu1 %v5551_v8  ;;  %v7137_v36 = vld [vmem:[%s6983_s28 + $0x138] sm:$0xff] }
 0x340   : > { %2983 = vmatpush2.msra.mxu1 %v1835_v22  ;;  %3063 = vmatprep.subr.mxu0 %v1900_v43  ;;  %v1807_v22 = vld [vmem:[#allocation11 + $0x2b0] sm:$0xff]  ;;  %v1872_v43 = vld [vmem:[#allocation11 + $0x4b8] sm:$0xff] }
 0x341   : > { %2794 = vmatprep.mubr.f32.mxu0 %v7088_v6  ;;  %4747 = vmatmul.mubr.msk.f32.gmra.mxu1 %vm2467_vm4, %v7091_v4 }
 0x342   : > { %2984 = vmatprep.subr.mxu1 %v1832_v15  ;;  %3064 = vmatpush1.msra.mxu0 %v1899_v47  ;;  %v1804_v15 = vld [vmem:[#allocation11 + $0x298] sm:$0xff]  ;;  %v1871_v47 = vld [vmem:[#allocation11 + $0x4b0] sm:$0xff] }
 0x343   : > { %2795 = vmatmul.mubr.f32.gmra.mxu0 %v7095_v49  ;;  %2985 = vmatpush2.msra.mxu1 %v1831_v51  ;;  %v1803_v51 = vld [vmem:[#allocation11 + $0x290] sm:$0xff] }
 0x344   : > { %3065 = vmatprep.subr.mxu0 %v1896_v52  ;;  %2986 = vmatprep.subr.mxu1 %v1828_v55  ;;  %v1868_v52 = vld [vmem:[#allocation11 + $0x498] sm:$0xff]  ;;  %v7144_v55 = vld [vmem:[%s6983_s28 + $0x178] sm:$0xff] }
 0x345   : > { %3066 = vmatpush1.msra.mxu0 %v1895_v9  ;;  %2913 = vmatprep.mubr.f32.mxu1 %v5551_v8  ;;  %v7147_v9 = vld [vmem:[%s6983_s28 + $0x180] sm:$0xff] }
 0x346   : > { %2987 = vmatpush2.msra.mxu1 %v1827_v61  ;;  %3067 = vmatprep.subr.mxu0 %v1892_v29  ;;  %v1800_v61 = vld [vmem:[#allocation11 + $0x278] sm:$0xff]  ;;  %v1867_v29 = vld [vmem:[#allocation11 + $0x490] sm:$0xff] }
 0x347   : > { %2800 = vmatprep.mubr.f32.mxu0 %v7102_v37  ;;  %4748 = vmatmul.mubr.msk.f32.gmra.mxu1 %vm2467_vm4, %v7105_v24 }
 0x348   : > { %2988 = vmatprep.subr.mxu1 %v1824_v59  ;;  %3068 = vmatpush1.msra.mxu0 %v1891_v12  ;;  %v7151_v59 = vld [vmem:[%s6983_s28 + $0x170] sm:$0xff]  ;;  %v1799_v12 = vld [vmem:[#allocation11 + $0x270] sm:$0xff] }
 0x349   : > { %2801 = vmatmul.mubr.f32.gmra.mxu0 %v7109_v63  ;;  %2989 = vmatpush2.msra.mxu1 %v1823_v41  ;;  %v1864_v41 = vld [vmem:[#allocation11 + $0x478] sm:$0xff] }
 0x34a   : > { %3069 = vmatprep.subr.mxu0 %v1888_v27  ;;  %2990 = vmatprep.subr.mxu1 %v1820_v3  ;;  %v1796_v27 = vld [vmem:[#allocation11 + $0x258] sm:$0xff]  ;;  %v1863_v3 = vld [vmem:[#allocation11 + $0x470] sm:$0xff] }
 0x34b   : > { %3070 = vmatpush1.msra.mxu0 %v1887_v7  ;;  %2919 = vmatprep.mubr.f32.mxu1 %v5551_v8  ;;  %v1795_v7 = vld [vmem:[#allocation11 + $0x250] sm:$0xff] }
 0x34c   : > { %2991 = vmatpush2.msra.mxu1 %v1819_v33  ;;  %3071 = vmatprep.subr.mxu0 %v1884_v54  ;;  %v1860_v33 = vld [vmem:[#allocation11 + $0x458] sm:$0xff]  ;;  %v7158_v54 = vld [vmem:[%s6983_s28 + $0x1b0] sm:$0xff] }
 0x34d   : > { %2806 = vmatprep.mubr.f32.mxu0 %v7116_v38  ;;  %4749 = vmatmul.mubr.msk.f32.gmra.mxu1 %vm2467_vm4, %v7119_v45 }
 0x34e   : > { %2992 = vmatprep.subr.mxu1 %v1816_v46  ;;  %3072 = vmatpush1.msra.mxu0 %v1883_v28  ;;  %v7161_v46 = vld [vmem:[%s6983_s28 + $0x1b8] sm:$0xff]  ;;  %v1792_v28 = vld [vmem:[#allocation11 + $0x238] sm:$0xff] }
 0x34f   : > { %2807 = vmatmul.mubr.f32.gmra.mxu0 %v7123_v19  ;;  %2993 = vmatpush2.msra.mxu1 %v1815_v53  ;;  %v1859_v53 = vld [vmem:[#allocation11 + $0x450] sm:$0xff] }
 0x350   : > { %3073 = vmatprep.subr.mxu0 %v1880_v0  ;;  %2994 = vmatprep.subr.mxu1 %v1812_v40  ;;  %v7165_v0 = vld [vmem:[%s6983_s28 + $0x1a8] sm:$0xff]  ;;  %v1791_v40 = vld [vmem:[#allocation11 + $0x230] sm:$0xff] }
 0x351   : > { %3074 = vmatpush1.msra.mxu0 %v1879_v42  ;;  %2925 = vmatprep.mubr.f32.mxu1 %v5551_v8  ;;  %v1856_v42 = vld [vmem:[#allocation11 + $0x438] sm:$0xff] }
 0x352   : > { %2995 = vmatpush2.msra.mxu1 %v1811_v56  ;;  %3075 = vmatprep.subr.mxu0 %v1876_v17  ;;  %v1788_v56 = vld [vmem:[#allocation11 + $0x218] sm:$0xff]  ;;  %v1855_v17 = vld [vmem:[#allocation11 + $0x430] sm:$0xff] }
 0x353   : > { %2812 = vmatprep.mubr.f32.mxu0 %v7130_v20  ;;  %4750 = vmatmul.mubr.msk.f32.gmra.mxu1 %vm2467_vm4, %v7133_v25 }
 0x354   : > { %2996 = vmatprep.subr.mxu1 %v1808_v26  ;;  %3076 = vmatpush1.msra.mxu0 %v1875_v35  ;;  %v1787_v26 = vld [vmem:[#allocation11 + $0x210] sm:$0xff]  ;;  %v1852_v35 = vld [vmem:[#allocation11 + $0x418] sm:$0xff] }
 0x355   : > { %2813 = vmatmul.mubr.f32.gmra.mxu0 %v7137_v36  ;;  %2997 = vmatpush2.msra.mxu1 %v1807_v22  ;;  %v1851_v22 = vld [vmem:[#allocation11 + $0x410] sm:$0xff] }
 0x356   : > { %3077 = vmatprep.subr.mxu0 %v1872_v43  ;;  %2998 = vmatprep.subr.mxu1 %v1804_v15  ;;  %v2040_v43 = vld [vmem:[#allocation11 + $0x9f8] sm:$0xff] }
 0x357   : > { %3078 = vmatpush1.msra.mxu0 %v1871_v47  ;;  %2931 = vmatprep.mubr.f32.mxu1 %v5551_v8  ;;  %v1976_v15 = vld [vmem:[#allocation11 + $0x7f8] sm:$0xff]  ;;  %v2039_v47 = vld [vmem:[#allocation11 + $0x9f0] sm:$0xff] }
 0x358   : > { %2999 = vmatpush2.msra.mxu1 %v1803_v51  ;;  %3079 = vmatprep.subr.mxu0 %v1868_v52  ;;  %v1975_v51 = vld [vmem:[#allocation11 + $0x7f0] sm:$0xff]  ;;  %v2036_v52 = vld [vmem:[#allocation11 + $0x9d8] sm:$0xff] }
 0x359   : > { %2818 = vmatprep.mubr.f32.mxu0 %v7144_v55  ;;  %4751 = vmatmul.mubr.msk.f32.gmra.mxu1 %vm2467_vm4, %v7147_v9 }
 0x35a   : > { %3000 = vmatprep.subr.mxu1 %v1800_v61  ;;  %3080 = vmatpush1.msra.mxu0 %v1867_v29  ;;  %v1972_v61 = vld [vmem:[#allocation11 + $0x7d8] sm:$0xff]  ;;  %v2035_v29 = vld [vmem:[#allocation11 + $0x9d0] sm:$0xff] }
 0x35b   : > { %2819 = vmatmul.mubr.f32.gmra.mxu0 %v7151_v59  ;;  %3001 = vmatpush2.msra.mxu1 %v1799_v12  ;;  %v1971_v12 = vld [vmem:[#allocation11 + $0x7d0] sm:$0xff] }
 0x35c   : > { %3081 = vmatprep.subr.mxu0 %v1864_v41  ;;  %3002 = vmatprep.subr.mxu1 %v1796_v27  ;;  %v2032_v41 = vld [vmem:[#allocation11 + $0x9b8] sm:$0xff] }
 0x35d   : > { %3082 = vmatpush1.msra.mxu0 %v1863_v3  ;;  %2937 = vmatprep.mubr.f32.mxu1 %v5551_v8  ;;  %v1968_v27 = vld [vmem:[#allocation11 + $0x7b8] sm:$0xff]  ;;  %v1967_v3 = vld [vmem:[#allocation11 + $0x7b0] sm:$0xff] }
 0x35e   : > { %3003 = vmatpush2.msra.mxu1 %v1795_v7  ;;  %3083 = vmatprep.subr.mxu0 %v1860_v33  ;;  %v1964_v7 = vld [vmem:[#allocation11 + $0x798] sm:$0xff]  ;;  %v2027_v33 = vld [vmem:[#allocation11 + $0x990] sm:$0xff] }
 0x35f   : > { %2824 = vmatprep.mubr.f32.mxu0 %v7158_v54  ;;  %4752 = vmatmul.mubr.msk.f32.gmra.mxu1 %vm2467_vm4, %v7161_v46 }
 0x360   : > { %3004 = vmatprep.subr.mxu1 %v1792_v28  ;;  %3084 = vmatpush1.msra.mxu0 %v1859_v53  ;;  %v1963_v28 = vld [vmem:[#allocation11 + $0x790] sm:$0xff]  ;;  %v1960_v53 = vld [vmem:[#allocation11 + $0x778] sm:$0xff] }
 0x361   : > { %2825 = vmatmul.mubr.f32.gmra.mxu0 %v7165_v0  ;;  %3005 = vmatpush2.msra.mxu1 %v1791_v40  ;;  %v2023_v40 = vld [vmem:[#allocation11 + $0x970] sm:$0xff] }
 0x362   : > { %3085 = vmatprep.subr.mxu0 %v1856_v42  ;;  %3006 = vmatprep.subr.mxu1 %v1788_v56  ;;  %v1959_v42 = vld [vmem:[#allocation11 + $0x770] sm:$0xff]  ;;  %v1956_v56 = vld [vmem:[#allocation11 + $0x758] sm:$0xff] }
 0x363   : > { %3086 = vmatpush1.msra.mxu0 %v1855_v17  ;;  %3007 = vmatpush2.msra.mxu1 %v1787_v26  ;;  %v2019_v17 = vld [vmem:[#allocation11 + $0x950] sm:$0xff] }
 0x364   : > { %3008 = vmatprep.mubr.f32.mxu1 %v6986_v44  ;;  %3087 = vmatprep.subr.mxu0 %v1852_v35  ;;  %v2031_v44 = vld [vmem:[#allocation11 + $0x9b0] sm:$0xff]  ;;  %v1952_v35 = vld [vmem:[#allocation11 + $0x738] sm:$0xff] }
 0x365   : > { %3009 = vmatmul.mubr.f32.vlgmr.msra.gmra.mxu1 %v6990_v48  ;;  %3088 = vmatpush1.msra.mxu0 %v1851_v22  ;;  %v2028_v48 = vld [vmem:[#allocation11 + $0x998] sm:$0xff]  ;;  %v1955_v26 = vld [vmem:[#allocation11 + $0x750] sm:$0xff] }
 0x366   : > { %3170 = vmatprep.subr.mxu1 %v2040_v43  ;;  %3089 = vmatprep.subr.mxu0 %v1976_v15  ;;  %v2015_v22 = vld [vmem:[#allocation11 + $0x930] sm:$0xff]  ;;  %v1948_v15 = vld [vmem:[#allocation11 + $0x718] sm:$0xff] }
 0x367   : > { %3171 = vmatpush1.msra.mxu1 %v2039_v47  ;;  %3090 = vmatpush2.msra.mxu0 %v1975_v51  ;;  %v1951_v43 = vld [vmem:[#allocation11 + $0x730] sm:$0xff] }
 0x368   : > { %3172 = vmatprep.subr.mxu1 %v2036_v52  ;;  %3014 = vmatprep.mubr.f32.mxu1 %v6996_v18  ;;  %v2024_v18 = vld [vmem:[#allocation11 + $0x978] sm:$0xff]  ;;  %v2011_v47 = vld [vmem:[#allocation11 + $0x910] sm:$0xff] }
 0x369   : > { %3091 = vmatprep.subr.mxu0 %v1972_v61  ;;  %3173 = vmatpush1.msra.mxu1 %v2035_v29  ;;  %v1947_v51 = vld [vmem:[#allocation11 + $0x710] sm:$0xff]  ;;  %v1944_v52 = vld [vmem:[#allocation11 + $0x6f8] sm:$0xff] }
 0x36a   : > { %3015 = vmatmul.mubr.f32.gmra.mxu1 %v7000_v32  ;;  %3092 = vmatpush2.msra.mxu0 %v1971_v12  ;;  %v2020_v32 = vld [vmem:[#allocation11 + $0x958] sm:$0xff]  ;;  %v2007_v61 = vld [vmem:[#allocation11 + $0x8f0] sm:$0xff] }
 0x36b   : > { %3174 = vmatprep.subr.mxu1 %v2032_v41  ;;  %3093 = vmatprep.subr.mxu0 %v1968_v27  ;;  %v1943_v29 = vld [vmem:[#allocation11 + $0x6f0] sm:$0xff]  ;;  %v1940_v12 = vld [vmem:[#allocation11 + $0x6d8] sm:$0xff] }
 0x36c   : > { %3175 = vmatpush1.msra.mxu1 %v2031_v44  ;;  %3094 = vmatpush2.msra.mxu0 %v1967_v3  ;;  %v2003_v41 = vld [vmem:[#allocation11 + $0x8d0] sm:$0xff]  ;;  %v1936_v44 = vld [vmem:[#allocation11 + $0x6b8] sm:$0xff] }
 0x36d   : > { %3176 = vmatprep.subr.mxu1 %v2028_v48  ;;  %3020 = vmatprep.mubr.f32.mxu1 %v7005_v21  ;;  %v2016_v21 = vld [vmem:[#allocation11 + $0x938] sm:$0xff]  ;;  %v1939_v27 = vld [vmem:[#allocation11 + $0x6d0] sm:$0xff] }
 0x36e   : > { %3095 = vmatprep.subr.mxu0 %v1964_v7  ;;  %3177 = vmatpush1.msra.mxu1 %v2027_v33  ;;  %v1999_v3 = vld [vmem:[#allocation11 + $0x8b0] sm:$0xff]  ;;  %v1932_v7 = vld [vmem:[#allocation11 + $0x698] sm:$0xff] }
 0x36f   : > { %3021 = vmatmul.mubr.f32.gmra.mxu1 %v7012_v11  ;;  %3096 = vmatpush2.msra.mxu0 %v1963_v28  ;;  %v2012_v11 = vld [vmem:[#allocation11 + $0x918] sm:$0xff]  ;;  %v1935_v48 = vld [vmem:[#allocation11 + $0x6b0] sm:$0xff] }
 0x370   : > { %3178 = vmatprep.subr.mxu1 %v2024_v18  ;;  %3097 = vmatprep.subr.mxu0 %v1960_v53  ;;  %v1995_v33 = vld [vmem:[#allocation11 + $0x890] sm:$0xff]  ;;  %v1928_v18 = vld [vmem:[#allocation11 + $0x678] sm:$0xff] }
 0x371   : > { %3179 = vmatpush1.msra.mxu1 %v2023_v40  ;;  %3098 = vmatpush2.msra.mxu0 %v1959_v42  ;;  %v1931_v28 = vld [vmem:[#allocation11 + $0x690] sm:$0xff]  ;;  %v7185_v42 = vpop.f32.mrf.mxu1 }
 0x372   : > { %3180 = vmatprep.subr.mxu1 %v2020_v32  ;;  %3026 = vmatprep.mubr.f32.mxu1 %v7015_v62  ;;  %v2008_v62 = vld [vmem:[#allocation11 + $0x8f8] sm:$0xff]  ;;  %v1991_v53 = vld [vmem:[#allocation11 + $0x870] sm:$0xff]  ;;  %7861 = vst [vmem:[#allocation29_spill] sm:$0xff] %v7185_v42 }
 0x373   : > { %3099 = vmatprep.subr.mxu0 %v1956_v56  ;;  %3181 = vmatpush1.msra.mxu1 %v2019_v17  ;;  %v1927_v40 = vld [vmem:[#allocation11 + $0x670] sm:$0xff]  ;;  %v1924_v32 = vld [vmem:[#allocation11 + $0x658] sm:$0xff]  ;;  %v7187_v17 = vpop.f32.mrf.mxu0 }
 0x374   : > { %3027 = vmatmul.mubr.f32.gmra.mxu1 %v7022_v30  ;;  %3100 = vmatpush2.msra.mxu0 %v1955_v26  ;;  %v2004_v30 = vld [vmem:[#allocation11 + $0x8d8] sm:$0xff]  ;;  %v1987_v56 = vld [vmem:[#allocation11 + $0x850] sm:$0xff] }
 0x375   : > { %3182 = vmatprep.subr.mxu1 %v2016_v21  ;;  %3101 = vmatprep.subr.mxu0 %v1952_v35  ;;  %v1984_v26 = vld [vmem:[#allocation11 + $0x838] sm:$0xff]  ;;  %v1919_v35 = vld [vmem:[#allocation11 + $0x630] sm:$0xff] }
 0x376   : > { %3183 = vmatpush1.msra.mxu1 %v2015_v22  ;;  %3102 = vmatpush2.msra.mxu0 %v1951_v43  ;;  %v1920_v21 = vld [vmem:[#allocation11 + $0x638] sm:$0xff]  ;;  %v7190_v22 = vpop.f32.mrf.mxu1 }
 0x377   : > { %3184 = vmatprep.subr.mxu1 %v2012_v11  ;;  %3032 = vmatprep.mubr.f32.mxu1 %v7025_v31  ;;  %v2000_v31 = vld [vmem:[#allocation11 + $0x8b8] sm:$0xff]  ;;  %7862 = vst [vmem:[#allocation30_spill] sm:$0xff] %v7190_v22 }
 0x378   : > { %3103 = vmatprep.subr.mxu0 %v1948_v15  ;;  %3185 = vmatpush1.msra.mxu1 %v2011_v47  ;;  %v1980_v43 = vld [vmem:[#allocation11 + $0x818] sm:$0xff]  ;;  %v7193_v15 = vpop.f32.mrf.mxu0  ;;  %v1979_v47 = vld [vmem:[#allocation11 + $0x810] sm:$0xff] }
 0x379   : > { %3033 = vmatmul.mubr.f32.gmra.mxu1 %v7032_v57  ;;  %3104 = vmatpush2.msra.mxu0 %v1947_v51  ;;  %v1996_v57 = vld [vmem:[#allocation11 + $0x898] sm:$0xff] }
 0x37a   : > { %3186 = vmatprep.subr.mxu1 %v2008_v62  ;;  %3105 = vmatprep.subr.mxu0 %v1944_v52  ;;  %v1916_v11 = vld [vmem:[#allocation11 + $0x618] sm:$0xff] }
 0x37b   : > { %3187 = vmatpush1.msra.mxu1 %v2007_v61  ;;  %3106 = vmatpush2.msra.mxu0 %v1943_v29  ;;  %v2104_v62 = vld [vmem:[#allocation11 + $0xbf8] sm:$0xff] }
 0x37c   : > { %3188 = vmatprep.subr.mxu1 %v2004_v30  ;;  %3038 = vmatprep.mubr.f32.mxu1 %v7035_v60  ;;  %v1992_v60 = vld [vmem:[#allocation11 + $0x878] sm:$0xff] }
 0x37d   : > { %3107 = vmatprep.subr.mxu0 %v1940_v12  ;;  %3189 = vmatpush1.msra.mxu1 %v2003_v41  ;;  %v2100_v29 = vld [vmem:[#allocation11 + $0xbd8] sm:$0xff]  ;;  %v5190_v41 = vld [vmem:[%s6983_s28 + $0x18] sm:$0xff] }
 0x37e   : > { %3039 = vmatmul.mubr.f32.gmra.mxu1 %v7040_v39  ;;  %3108 = vmatpush2.msra.mxu0 %v1939_v27  ;;  %v1988_v39 = vld [vmem:[#allocation11 + $0x858] sm:$0xff]  ;;  %v2099_v27 = vld [vmem:[#allocation11 + $0xbd0] sm:$0xff] }
 0x37f   : > { %3190 = vmatprep.subr.mxu1 %v2000_v31  ;;  %3109 = vmatprep.subr.mxu0 %v1936_v44  ;;  %v2112_v30 = vld [vmem:[#allocation11 + $0xc38] sm:$0xff]  ;;  %v2111_v31 = vld [vmem:[#allocation11 + $0xc30] sm:$0xff]  ;;  %v5191_v44 = vld [vmem:[%s6983_s28 + $0x10] sm:$0xff] }
 0x380   : > { %3191 = vmatpush1.msra.mxu1 %v1999_v3  ;;  %3110 = vmatpush2.msra.mxu0 %v1935_v48  ;;  %v2096_v3 = vld [vmem:[#allocation11 + $0xbb8] sm:$0xff]  ;;  %v2095_v48 = vld [vmem:[#allocation11 + $0xbb0] sm:$0xff] }
 0x381   : > { %3192 = vmatprep.subr.mxu1 %v1996_v57  ;;  %3044 = vmatprep.mubr.f32.mxu1 %v7045_v5  ;;  %v1923_v5 = vld [vmem:[#allocation11 + $0x650] sm:$0xff] }
 0x382   : > { %3111 = vmatprep.subr.mxu0 %v1932_v7  ;;  %3193 = vmatpush1.msra.mxu1 %v1995_v33  ;;  %v2092_v7 = vld [vmem:[#allocation11 + $0xb98] sm:$0xff] }
 0x383   : > { %3045 = vmatmul.mubr.f32.gmra.mxu1 %v7052_v10  ;;  %3112 = vmatpush2.msra.mxu0 %v1931_v28  ;;  %v1983_v10 = vld [vmem:[#allocation11 + $0x830] sm:$0xff]  ;;  %v5192_v28 = vld [vmem:[%s6983_s28 + $0x50] sm:$0xff] }
 0x384   : > { %3194 = vmatprep.subr.mxu1 %v1992_v60  ;;  %3113 = vmatprep.subr.mxu0 %v1928_v18  ;;  %v2091_v60 = vld [vmem:[#allocation11 + $0xb90] sm:$0xff]  ;;  %v2108_v18 = vld [vmem:[#allocation11 + $0xc18] sm:$0xff] }
 0x385   : > { %3195 = vmatpush1.msra.mxu1 %v1991_v53  ;;  %3114 = vmatpush2.msra.mxu0 %v1927_v40  ;;  %v5193_v40 = vld [vmem:[%s6983_s28 + $0x48] sm:$0xff] }
 0x386   : > { %3196 = vmatprep.subr.mxu1 %v1988_v39  ;;  %3050 = vmatprep.mubr.f32.mxu1 %v7055_v13  ;;  %v1915_v13 = vld [vmem:[#allocation11 + $0x610] sm:$0xff]  ;;  %v2088_v39 = vld [vmem:[#allocation11 + $0xb78] sm:$0xff] }
 0x387   : > { %3115 = vmatprep.subr.mxu0 %v1924_v32  ;;  %3197 = vmatpush1.msra.mxu1 %v1987_v56  ;;  %v2107_v32 = vld [vmem:[#allocation11 + $0xc10] sm:$0xff] }
 0x388   : > { %3051 = vmatmul.mubr.f32.gmra.mxu1 %v7062_v23  ;;  %3116 = vmatpush2.msra.mxu0 %v1923_v5  ;;  %v2103_v23 = vld [vmem:[#allocation11 + $0xbf0] sm:$0xff]  ;;  %v5194_v5 = vld [vmem:[%s6983_s28 + $0x88] sm:$0xff] }
 0x389   : > { %3198 = vmatprep.subr.mxu1 %v1984_v26  ;;  %3117 = vmatprep.subr.mxu0 %v1920_v21  ;;  %v7195_v51 = vpop.f32.mrf.mxu1  ;;  %v2087_v26 = vld [vmem:[#allocation11 + $0xb70] sm:$0xff]  ;;  %v2084_v21 = vld [vmem:[#allocation11 + $0xb58] sm:$0xff] }
 0x38a   : > { %7863 = vst [vmem:[#allocation31_spill] sm:$0xff] %v7195_v51  ;;  %3199 = vmatpush1.msra.mxu1 %v1983_v10  ;;  %3118 = vmatpush2.msra.mxu0 %v1919_v35  ;;  %v7197_v52 = vpop.f32.mrf.mxu0  ;;  %v2083_v10 = vld [vmem:[#allocation11 + $0xb50] sm:$0xff] }
 0x38b   : > { %3200 = vmatprep.subr.mxu1 %v1980_v43  ;;  %3119 = vmatprep.subr.mxu0 %v1916_v11  ;;  %v7199_v61 = vpop.f32.mrf.mxu1  ;;  %v5195_v43 = vld [vmem:[%s6983_s28 + $0x80] sm:$0xff] }
 0x38c   : > { %7864 = vst [vmem:[#allocation32_spill] sm:$0xff] %v7199_v61  ;;  %3201 = vmatpush1.msra.mxu1 %v1979_v47  ;;  %3120 = vmatpush2.msra.mxu0 %v1915_v13  ;;  %v7201_v12 = vpop.f32.mrf.mxu0  ;;  %v2080_v11 = vld [vmem:[#allocation11 + $0xb38] sm:$0xff] }
 0x38d   : > { %3121 = vmatprep.mubr.f32.mxu0 %v5190_v41  ;;  %3202 = vmatprep.subr.mxu1 %v2104_v62  ;;  %v3528_v13 = vld [vmem:[#allocation16 + $0x170] sm:$0xff]  ;;  %v5197_v41 = vld [vmem:[%s6983_s28 + $0x28] sm:$0xff] }
 0x38e   : > { %3122 = vmatmul.mubr.f32.vlgmr.msra.gmra.mxu0 %v5191_v44  ;;  %3203 = vmatpush2.msra.mxu1 %v2103_v23  ;;  %v5196_v62 = vld [vmem:[%s6983_s28 + $0xc0] sm:$0xff]  ;;  %v5198_v44 = vld [vmem:[%s6983_s28 + $0xb8] sm:$0xff] }
 0x38f   : > { %3204 = vmatprep.subr.mxu1 %v2100_v29  ;;  %3311 = vmatprep.subr.mxu0 %v2112_v30  ;;  %v7205_v57 = vpop.f32.mrf.mxu1  ;;  %v2079_v23 = vld [vmem:[#allocation11 + $0xb30] sm:$0xff]  ;;  %v2076_v30 = vld [vmem:[#allocation11 + $0xb18] sm:$0xff] }
 0x390   : > { %7865 = vst [vmem:[#allocation33_spill] sm:$0xff] %v7205_v57  ;;  %3205 = vmatpush2.msra.mxu1 %v2099_v27  ;;  %3312 = vmatpush1.msra.mxu0 %v2111_v31  ;;  %v7207_v33 = vpop.f32.mrf.mxu0  ;;  %v2075_v31 = vld [vmem:[#allocation11 + $0xb10] sm:$0xff] }
 0x391   : > { %3127 = vmatprep.mubr.f32.mxu0 %v5192_v28  ;;  %3206 = vmatprep.subr.mxu1 %v2096_v3  ;;  %v7210_v53 = vpop.f32.mrf.mxu1  ;;  %v2072_v3 = vld [vmem:[#allocation11 + $0xaf8] sm:$0xff] }
 0x392   : > { %7866 = vst [vmem:[#allocation34_spill] sm:$0xff] %v7210_v53  ;;  %3128 = vmatmul.mubr.f32.gmra.mxu0 %v5193_v40  ;;  %3207 = vmatpush2.msra.mxu1 %v2095_v48  ;;  %v7213_v56 = vpop.f32.mrf.mxu0  ;;  %v5199_v48 = vld [vmem:[%s6983_s28 + $0xf8] sm:$0xff] }
 0x393   : > { %3208 = vmatprep.subr.mxu1 %v2092_v7  ;;  %3133 = vmatprep.mubr.f32.mxu0 %v5194_v5  ;;  %v2071_v7 = vld [vmem:[#allocation11 + $0xaf0] sm:$0xff]  ;;  %v2064_v5 = vld [vmem:[#allocation11 + $0xab8] sm:$0xff] }
 0x394   : > { %3209 = vmatpush2.msra.mxu1 %v2091_v60  ;;  %3313 = vmatprep.subr.mxu0 %v2108_v18  ;;  %v2068_v60 = vld [vmem:[#allocation11 + $0xad8] sm:$0xff]  ;;  %v2067_v40 = vld [vmem:[#allocation11 + $0xad0] sm:$0xff] }
 0x395   : > { %3210 = vmatprep.subr.mxu1 %v2088_v39  ;;  %3314 = vmatpush1.msra.mxu0 %v2107_v32  ;;  %v7216_v35 = vpop.f32.mrf.mxu1  ;;  %v5200_v32 = vld [vmem:[%s6983_s28 + $0xf0] sm:$0xff] }
 0x396   : > { %7867 = vst [vmem:[#allocation35_spill] sm:$0xff] %v7216_v35  ;;  %3134 = vmatmul.mubr.f32.gmra.mxu0 %v5195_v43  ;;  %3211 = vmatpush2.msra.mxu1 %v2087_v26  ;;  %v7219_v47 = vpop.f32.mrf.mxu0  ;;  %v2060_v43 = vld [vmem:[#allocation11 + $0xa98] sm:$0xff] }
 0x397   : > { %3212 = vmatprep.subr.mxu1 %v2084_v21  ;;  %3139 = vmatprep.mubr.f32.mxu0 %v5196_v62  ;;  %v7222_v29 = vpop.f32.mrf.mxu1  ;;  %v5201_v21 = vld [vmem:[%s6983_s28 + $0x130] sm:$0xff]  ;;  %v5202_v62 = vld [vmem:[%s6983_s28 + $0x128] sm:$0xff] }
 0x398   : > { %7868 = vst [vmem:[#allocation36_spill] sm:$0xff] %v7222_v29  ;;  %3213 = vmatpush2.msra.mxu1 %v2083_v10  ;;  %3234 = vmatprep.mubr.f32.mxu1 %v5197_v41  ;;  %v7225_v27 = vpop.f32.mrf.mxu0  ;;  %v2063_v10 = vld [vmem:[#allocation11 + $0xab0] sm:$0xff]  ;;  %v5203_v41 = vld [vmem:[%s6983_s28 + $0x168] sm:$0xff] }
 0x399   : > { %3214 = vmatprep.subr.mxu1 %v2080_v11  ;;  %3691 = vmatprep.subr.mxu0 %v3528_v13  ;;  %v2059_v11 = vld [vmem:[#allocation11 + $0xa90] sm:$0xff] }
 0x39a   : > { %3140 = vmatmul.mubr.f32.gmra.mxu0 %v5198_v44  ;;  %3215 = vmatpush2.msra.mxu1 %v2079_v23  ;;  %v2056_v23 = vld [vmem:[#allocation11 + $0xa78] sm:$0xff] }
 0x39b   : > { %3216 = vmatprep.subr.mxu1 %v2076_v30  ;;  %3145 = vmatprep.mubr.f32.mxu0 %v5199_v48  ;;  %v7229_v28 = vpop.f32.mrf.mxu1  ;;  %v2051_v48 = vld [vmem:[#allocation11 + $0xa50] sm:$0xff] }
 0x39c   : > { %7869 = vst [vmem:[#allocation37_spill] sm:$0xff] %v7229_v28  ;;  %3217 = vmatpush2.msra.mxu1 %v2075_v31  ;;  %v7231_v18 = vpop.f32.mrf.mxu0  ;;  %v2055_v31 = vld [vmem:[#allocation11 + $0xa70] sm:$0xff] }
 0x39d   : > { %3218 = vmatprep.subr.mxu1 %v2072_v3  ;;  %v7233_v39 = vpop.f32.mrf.mxu1  ;;  %v2052_v3 = vld [vmem:[#allocation11 + $0xa58] sm:$0xff] }
 0x39e   : > { %7870 = vst [vmem:[#allocation38_spill] sm:$0xff] %v7233_v39  ;;  %3146 = vmatmul.mubr.f32.gmra.mxu0 %v5200_v32  ;;  %3219 = vmatpush2.msra.mxu1 %v2071_v7  ;;  %v7236_v26 = vpop.f32.mrf.mxu0  ;;  %v5205_v32 = vld [vmem:[%s6983_s28 + $0x1a0] sm:$0xff] }
 0x39f   : > { %3220 = vmatprep.subr.mxu1 %v2068_v60  ;;  %3151 = vmatprep.mubr.f32.mxu0 %v5201_v21  ;;  %v5204_v60 = vld [vmem:[%s6983_s28 + $0x160] sm:$0xff] }
 0x3a0   : > { %3221 = vmatpush2.msra.mxu1 %v2067_v40  ;;  %v2048_v40 = vld [vmem:[#allocation11 + $0xa38] sm:$0xff] }
 0x3a1   : > { %3222 = vmatprep.subr.mxu1 %v2064_v5  ;;  %v7239_v13 = vpop.f32.mrf.mxu1  ;;  %v2047_v5 = vld [vmem:[#allocation11 + $0xa30] sm:$0xff] }
 0x3a2   : > { %7871 = vst [vmem:[#allocation39_spill] sm:$0xff] %v7239_v13  ;;  %3152 = vmatmul.mubr.f32.gmra.mxu0 %v5202_v62  ;;  %3223 = vmatpush2.msra.mxu1 %v2063_v10  ;;  %v7242_v30 = vpop.f32.mrf.mxu0  ;;  %v2044_v10 = vld [vmem:[#allocation11 + $0xa18] sm:$0xff]  ;;  %v5206_v62 = vld [vmem:[%s6983_s28 + $0x198] sm:$0xff] }
 0x3a3   : > { %3224 = vmatprep.subr.mxu1 %v2060_v43  ;;  %3157 = vmatprep.mubr.f32.mxu0 %v5203_v41  ;;  %v7245_v44 = vpop.f32.mrf.mxu1  ;;  %v2043_v43 = vld [vmem:[#allocation11 + $0xa10] sm:$0xff] }
 0x3a4   : > { %7872 = vst [vmem:[#allocation40_spill] sm:$0xff] %v7245_v44  ;;  %3225 = vmatpush2.msra.mxu1 %v2059_v11  ;;  %v7247_v7 = vpop.f32.mrf.mxu0  ;;  %v3527_v41 = vld [vmem:[#allocation16 + $0x168] sm:$0xff] }
 0x3a5   : > { %3226 = vmatprep.subr.mxu1 %v2056_v23 }
 0x3a6   : > { %3158 = vmatmul.mubr.f32.gmra.mxu0 %v5204_v60  ;;  %3227 = vmatpush2.msra.mxu1 %v2055_v31  ;;  %v3524_v60 = vld [vmem:[#allocation16 + $0x150] sm:$0xff] }
 0x3a7   : > { %3228 = vmatprep.subr.mxu1 %v2052_v3  ;;  %3163 = vmatprep.mubr.f32.mxu0 %v5205_v32  ;;  %v7251_v21 = vpop.f32.mrf.mxu1  ;;  %v3525_v3 = vld [vmem:[#allocation16 + $0x158] sm:$0xff]  ;;  %v3522_v32 = vld [vmem:[#allocation16 + $0x140] sm:$0xff] }
 0x3a8   : > { %7873 = vst [vmem:[#allocation41_spill] sm:$0xff] %v7251_v21  ;;  %3229 = vmatpush2.msra.mxu1 %v2051_v48  ;;  %v7253_v11 = vpop.f32.mrf.mxu0  ;;  %v5207_v48 = vld [vmem:[%s6983_s28 + $0x30] sm:$0xff] }
 0x3a9   : > { %3230 = vmatprep.subr.mxu1 %v2048_v40  ;;  %v7257_v23 = vpop.f32.mrf.mxu1 }
 0x3aa   : > { %3164 = vmatmul.mubr.f32.gmra.mxu0 %v5206_v62  ;;  %3231 = vmatpush2.msra.mxu1 %v2047_v5  ;;  %7874 = vst [vmem:[#allocation42_spill] sm:$0xff] %v7257_v23  ;;  %v7260_v31 = vpop.f32.mrf.mxu0 }
 0x3ab   : > { %3232 = vmatprep.subr.mxu1 %v2044_v10  ;;  %3347 = vmatprep.mubr.f32.mxu0 %v5551_v8 }
 0x3ac   : > { %3233 = vmatpush2.msra.mxu1 %v2043_v43  ;;  %v3518_v43 = vld [vmem:[#allocation16 + $0x120] sm:$0xff] }
 0x3ad   : > { %3235 = vmatmul.mubr.f32.vlgmr.msra.gmra.mxu1 %v7070_v14  ;;  %v7266_v40 = vpop.f32.mrf.mxu1  ;;  %v3521_v14 = vld [vmem:[#allocation16 + $0x138] sm:$0xff] }
 0x3ae   : > { %4753 = vmatmul.mubr.msk.f32.vlgmr.msra.gmra.mxu0 %vm2467_vm4, %v5207_v48  ;;  %3240 = vmatprep.mubr.f32.mxu1 %v7074_v1  ;;  %7875 = vst [vmem:[#allocation43_spill] sm:$0xff] %v7266_v40  ;;  %v7269_v5 = vpop.f32.mrf.mxu0  ;;  %v3519_v1 = vld [vmem:[#allocation16 + $0x128] sm:$0xff] }
 0x3af   : > { %3353 = vmatprep.mubr.f32.mxu0 %v5551_v8  ;;  %3692 = vmatpush1.msra.mxu0 %v3527_v41  ;;  %v7275_v10 = vpop.f32.mrf.mxu1  ;;  %v3516_v41 = vld [vmem:[#allocation16 + $0x110] sm:$0xff] }
 0x3b0   : > { %3693 = vmatprep.subr.mxu0 %v3525_v3  ;;  %7876 = vst [vmem:[#allocation44_spill] sm:$0xff] %v7275_v10  ;;  %v3624_v3 = vld [vmem:[#allocation16 + $0x470] sm:$0xff] }
 0x3b1   : > { %3241 = vmatmul.mubr.f32.gmra.mxu1 %v7081_v34  ;;  %3694 = vmatpush1.msra.mxu0 %v3524_v60  ;;  %v7278_v34 = vpop.f32.mrf.mxu0  ;;  %v3512_v60 = vld [vmem:[#allocation16 + $0xf0] sm:$0xff] }
 0x3b2   : > { %4754 = vmatmul.mubr.msk.f32.gmra.mxu0 %vm2467_vm4, %v7077_v16  ;;  %3246 = vmatprep.mubr.f32.mxu1 %v7088_v6  ;;  %v3515_v16 = vld [vmem:[#allocation16 + $0x108] sm:$0xff]  ;;  %v3513_v6 = vld [vmem:[#allocation16 + $0xf8] sm:$0xff] }
 0x3b3   : > { %3359 = vmatprep.mubr.f32.mxu0 %v5551_v8  ;;  %3695 = vmatprep.subr.mxu0 %v3522_v32  ;;  %v3623_v32 = vld [vmem:[#allocation16 + $0x468] sm:$0xff] }
 0x3b4   : > { %3696 = vmatpush1.msra.mxu0 %v3521_v14  ;;  %v7280_v62 = vpop.f32.mrf.mxu1  ;;  %3804 = vmatprep.subr.mxu1 %v3624_v3  ;;  %v3503_v3 = vld [vmem:[#allocation16 + $0xa8] sm:$0xff] }
 0x3b5   : > { %3247 = vmatmul.mubr.f32.gmra.mxu1 %v7095_v49  ;;  %3697 = vmatprep.subr.mxu0 %v3519_v1  ;;  %v7287_v49 = vpop.f32.mrf.mxu0  ;;  %v3507_v1 = vld [vmem:[#allocation16 + $0xc8] sm:$0xff] }
 0x3b6   : > { %4755 = vmatmul.mubr.msk.f32.gmra.mxu0 %vm2467_vm4, %v7091_v4  ;;  %3252 = vmatprep.mubr.f32.mxu1 %v7102_v37  ;;  %v7289_v48 = vpop.f32.mrf.mxu1  ;;  %v3510_v4 = vld [vmem:[#allocation16 + $0xe0] sm:$0xff]  ;;  %v3509_v37 = vld [vmem:[#allocation16 + $0xd8] sm:$0xff] }
 0x3b7   : > { %3365 = vmatprep.mubr.f32.mxu0 %v5551_v8  ;;  %3698 = vmatpush1.msra.mxu0 %v3518_v43  ;;  %v3621_v43 = vld [vmem:[#allocation16 + $0x458] sm:$0xff] }
 0x3b8   : > { %3699 = vmatprep.subr.mxu0 %v3516_v41  ;;  %3805 = vmatpush1.msra.mxu1 %v3623_v32  ;;  %v3618_v32 = vld [vmem:[#allocation16 + $0x440] sm:$0xff] }
 0x3b9   : > { %3253 = vmatmul.mubr.f32.gmra.mxu1 %v7109_v63  ;;  %3700 = vmatpush1.msra.mxu0 %v3515_v16  ;;  %v7296_v63 = vpop.f32.mrf.mxu0  ;;  %v7298_v14 = vpop.f32.mrf.mxu1  ;;  %v3620_v16 = vld [vmem:[#allocation16 + $0x450] sm:$0xff] }
 0x3ba   : > { %4756 = vmatmul.mubr.msk.f32.gmra.mxu0 %vm2467_vm4, %v7105_v24  ;;  %3258 = vmatprep.mubr.f32.mxu1 %v7116_v38  ;;  %v3506_v24 = vld [vmem:[#allocation16 + $0xc0] sm:$0xff]  ;;  %v3504_v38 = vld [vmem:[#allocation16 + $0xb0] sm:$0xff] }
 0x3bb   : > { %3371 = vmatprep.mubr.f32.mxu0 %v5551_v8  ;;  %3701 = vmatprep.subr.mxu0 %v3513_v6  ;;  %v7307_v41 = vpop.f32.mrf.mxu1 }
 0x3bc   : > { %3702 = vmatpush1.msra.mxu0 %v3512_v60  ;;  %3806 = vmatprep.subr.mxu1 %v3621_v43  ;;  %v3498_v60 = vld [vmem:[#allocation16 + $0x80] sm:$0xff]  ;;  %v3492_v43 = vld [vmem:[#allocation16 + $0x50] sm:$0xff] }
 0x3bd   : > { %3259 = vmatmul.mubr.f32.gmra.mxu1 %v7123_v19  ;;  %3703 = vmatprep.subr.mxu0 %v3510_v4  ;;  %v7305_v19 = vpop.f32.mrf.mxu0  ;;  %v7316_v6 = vpop.f32.mrf.mxu1  ;;  %v3494_v4 = vld [vmem:[#allocation16 + $0x60] sm:$0xff] }
 0x3be   : > { %4757 = vmatmul.mubr.msk.f32.gmra.mxu0 %vm2467_vm4, %v7119_v45  ;;  %3264 = vmatprep.mubr.f32.mxu1 %v7130_v20  ;;  %v3501_v45 = vld [vmem:[#allocation16 + $0x98] sm:$0xff]  ;;  %v3500_v20 = vld [vmem:[#allocation16 + $0x90] sm:$0xff] }
 0x3bf   : > { %3377 = vmatprep.mubr.f32.mxu0 %v5551_v8  ;;  %3704 = vmatpush1.msra.mxu0 %v3509_v37 }
 0x3c0   : > { %3705 = vmatprep.subr.mxu0 %v3507_v1  ;;  %3807 = vmatpush1.msra.mxu1 %v3620_v16  ;;  %v7325_v1 = vpop.f32.mrf.mxu1 }
 0x3c1   : > { %3265 = vmatmul.mubr.f32.gmra.mxu1 %v7137_v36  ;;  %3706 = vmatpush1.msra.mxu0 %v3506_v24  ;;  %v7314_v36 = vpop.f32.mrf.mxu0  ;;  %v3489_v24 = vld [vmem:[#allocation16 + $0x38] sm:$0xff] }
 0x3c2   : > { %4758 = vmatmul.mubr.msk.f32.gmra.mxu0 %vm2467_vm4, %v7133_v25  ;;  %3270 = vmatprep.mubr.f32.mxu1 %v7144_v55  ;;  %v3497_v25 = vld [vmem:[#allocation16 + $0x78] sm:$0xff]  ;;  %v3495_v55 = vld [vmem:[#allocation16 + $0x68] sm:$0xff] }
 0x3c3   : > { %3383 = vmatprep.mubr.f32.mxu0 %v5551_v8  ;;  %3707 = vmatprep.subr.mxu0 %v3504_v38  ;;  %v7323_v37 = vpop.f32.mrf.mxu0  ;;  %v3612_v38 = vld [vmem:[#allocation16 + $0x410] sm:$0xff] }
 0x3c4   : > { %3708 = vmatpush1.msra.mxu0 %v3503_v3  ;;  %3808 = vmatprep.subr.mxu1 %v3618_v32  ;;  %v3488_v3 = vld [vmem:[#allocation16 + $0x30] sm:$0xff] }
 0x3c5   : > { %3271 = vmatmul.mubr.f32.gmra.mxu1 %v7151_v59  ;;  %3709 = vmatprep.subr.mxu0 %v3501_v45  ;;  %v3617_v59 = vld [vmem:[#allocation16 + $0x438] sm:$0xff]  ;;  %v7329_v16 = vpop.f32.mrf.mxu0  ;;  %v7331_v45 = vpop.f32.mrf.mxu1  ;;  %v3608_v32 = vld [vmem:[#allocation16 + $0x3f0] sm:$0xff] }
 0x3c6   : > { %4759 = vmatmul.mubr.msk.f32.gmra.mxu0 %vm2467_vm4, %v7147_v9  ;;  %3276 = vmatprep.mubr.f32.mxu1 %v7158_v54  ;;  %v3615_v9 = vld [vmem:[#allocation16 + $0x428] sm:$0xff]  ;;  %v3614_v54 = vld [vmem:[#allocation16 + $0x420] sm:$0xff] }
 0x3c7   : > { %3389 = vmatprep.mubr.f32.mxu0 %v5551_v8  ;;  %3710 = vmatpush1.msra.mxu0 %v3500_v20  ;;  %v3491_v8 = vld [vmem:[#allocation16 + $0x48] sm:$0xff]  ;;  %v3486_v20 = vld [vmem:[#allocation16 + $0x20] sm:$0xff] }
 0x3c8   : > { %3711 = vmatprep.subr.mxu0 %v3498_v60  ;;  %3809 = vmatpush1.msra.mxu1 %v3617_v59  ;;  %v3609_v60 = vld [vmem:[#allocation16 + $0x3f8] sm:$0xff] }
 0x3c9   : > { %3277 = vmatmul.mubr.f32.gmra.mxu1 %v7165_v0  ;;  %3712 = vmatpush1.msra.mxu0 %v3497_v25  ;;  %v3611_v0 = vld [vmem:[#allocation16 + $0x408] sm:$0xff]  ;;  %v3605_v59 = vld [vmem:[#allocation16 + $0x3d8] sm:$0xff] }
 0x3ca   : > { %4760 = vmatmul.mubr.msk.f32.gmra.mxu0 %vm2467_vm4, %v7161_v46  ;;  %3713 = vmatprep.subr.mxu0 %v3495_v55  ;;  %v3485_v46 = vld [vmem:[#allocation16 + $0x18] sm:$0xff]  ;;  %v3483_v25 = vld [vmem:[#allocation16 + $0x8] sm:$0xff]  ;;  %v3606_v55 = vld [vmem:[#allocation16 + $0x3e0] sm:$0xff] }
 0x3cb   : > { %3714 = vmatpush1.msra.mxu0 %v3494_v4  ;;  %3810 = vmatprep.subr.mxu1 %v3615_v9  ;;  %v3482_v4 = vld [vmem:[#allocation16] sm:$0xff]  ;;  %v7335_v9 = vpop.f32.mrf.mxu1 }
 0x3cc   : > { %3715 = vmatprep.subr.mxu0 %v3492_v43  ;;  %3811 = vmatpush1.msra.mxu1 %v3614_v54  ;;  %v7333_v43 = vpop.f32.mrf.mxu0  ;;  %v3603_v54 = vld [vmem:[#allocation16 + $0x3c8] sm:$0xff] }
 0x3cd   : > { %3716 = vmatpush1.msra.mxu0 %v3491_v8  ;;  %3812 = vmatprep.subr.mxu1 %v3612_v38  ;;  %v3576_v8 = vld [vmem:[#allocation16 + $0x2f0] sm:$0xff]  ;;  %v3602_v38 = vld [vmem:[#allocation16 + $0x3c0] sm:$0xff]  ;;  %v7339_v40 = vpop.f32.mrf.mxu1 }
 0x3ce   : > { %3717 = vmatprep.subr.mxu0 %v3489_v24  ;;  %3813 = vmatpush1.msra.mxu1 %v3611_v0  ;;  %v3575_v24 = vld [vmem:[#allocation16 + $0x2e8] sm:$0xff]  ;;  %v3600_v0 = vld [vmem:[#allocation16 + $0x3b0] sm:$0xff]  ;;  %v7337_v10 = vpop.f32.mrf.mxu0 }
 0x3cf   : > { %3718 = vmatpush1.msra.mxu0 %v3488_v3  ;;  %3814 = vmatprep.subr.mxu1 %v3609_v60  ;;  %v3573_v3 = vld [vmem:[#allocation16 + $0x2d8] sm:$0xff]  ;;  %v3599_v60 = vld [vmem:[#allocation16 + $0x3a8] sm:$0xff]  ;;  %v7343_v21 = vpop.f32.mrf.mxu1 }
 0x3d0   : > { %3719 = vmatprep.subr.mxu0 %v3486_v20  ;;  %3815 = vmatpush1.msra.mxu1 %v3608_v32  ;;  %v3572_v20 = vld [vmem:[#allocation16 + $0x2d0] sm:$0xff]  ;;  %v3597_v32 = vld [vmem:[#allocation16 + $0x398] sm:$0xff]  ;;  %v7341_v23 = vpop.f32.mrf.mxu0 }
 0x3d1   : > { %3720 = vmatpush1.msra.mxu0 %v3485_v46  ;;  %3816 = vmatprep.subr.mxu1 %v3606_v55  ;;  %v3570_v46 = vld [vmem:[#allocation16 + $0x2c0] sm:$0xff]  ;;  %v3596_v55 = vld [vmem:[#allocation16 + $0x390] sm:$0xff]  ;;  %v7347_v13 = vpop.f32.mrf.mxu1 }
 0x3d2   : > { %3721 = vmatprep.subr.mxu0 %v3483_v25  ;;  %3817 = vmatpush1.msra.mxu1 %v3605_v59  ;;  %v3569_v25 = vld [vmem:[#allocation16 + $0x2b8] sm:$0xff]  ;;  %v3594_v59 = vld [vmem:[#allocation16 + $0x380] sm:$0xff]  ;;  %v7345_v44 = vpop.f32.mrf.mxu0 }
 0x3d3   : > { %3722 = vmatpush1.msra.mxu0 %v3482_v4  ;;  %3818 = vmatprep.subr.mxu1 %v3603_v54  ;;  %v3567_v4 = vld [vmem:[#allocation16 + $0x2a8] sm:$0xff]  ;;  %v3593_v54 = vld [vmem:[#allocation16 + $0x378] sm:$0xff]  ;;  %v7351_v28 = vpop.f32.mrf.mxu1 }
 0x3d4   : > { %3723 = vmatprep.subr.mxu0 %v3576_v8  ;;  %3819 = vmatpush1.msra.mxu1 %v3602_v38  ;;  %v3566_v8 = vld [vmem:[#allocation16 + $0x2a0] sm:$0xff]  ;;  %v3591_v38 = vld [vmem:[#allocation16 + $0x368] sm:$0xff]  ;;  %v7349_v39 = vpop.f32.mrf.mxu0 }
 0x3d5   : > { %3724 = vmatpush2.msra.mxu0 %v3575_v24  ;;  %3820 = vmatprep.subr.mxu1 %v3600_v0  ;;  %v3564_v24 = vld [vmem:[#allocation16 + $0x290] sm:$0xff]  ;;  %v3590_v0 = vld [vmem:[#allocation16 + $0x360] sm:$0xff]  ;;  %v7355_v35 = vpop.f32.mrf.mxu1 }
 0x3d6   : > { %3725 = vmatprep.subr.mxu0 %v3573_v3  ;;  %3821 = vmatpush1.msra.mxu1 %v3599_v60  ;;  %v3563_v3 = vld [vmem:[#allocation16 + $0x288] sm:$0xff]  ;;  %v3588_v60 = vld [vmem:[#allocation16 + $0x350] sm:$0xff]  ;;  %v7353_v29 = vpop.f32.mrf.mxu0 }
 0x3d7   : > { %3726 = vmatpush2.msra.mxu0 %v3572_v20  ;;  %3822 = vmatprep.subr.mxu1 %v3597_v32  ;;  %v3561_v20 = vld [vmem:[#allocation16 + $0x278] sm:$0xff]  ;;  %v3587_v32 = vld [vmem:[#allocation16 + $0x348] sm:$0xff]  ;;  %v7359_v57 = vpop.f32.mrf.mxu1 }
 0x3d8   : > { %3727 = vmatprep.subr.mxu0 %v3570_v46  ;;  %3823 = vmatpush1.msra.mxu1 %v3596_v55  ;;  %v3560_v46 = vld [vmem:[#allocation16 + $0x270] sm:$0xff]  ;;  %v3585_v55 = vld [vmem:[#allocation16 + $0x338] sm:$0xff]  ;;  %v7357_v53 = vpop.f32.mrf.mxu0 }
 0x3d9   : > { %3728 = vmatpush2.msra.mxu0 %v3569_v25  ;;  %3824 = vmatprep.subr.mxu1 %v3594_v59  ;;  %v3558_v25 = vld [vmem:[#allocation16 + $0x260] sm:$0xff]  ;;  %v3584_v59 = vld [vmem:[#allocation16 + $0x330] sm:$0xff]  ;;  %v7363_v51 = vpop.f32.mrf.mxu1 }
 0x3da   : > { %3729 = vmatprep.subr.mxu0 %v3567_v4  ;;  %3825 = vmatpush1.msra.mxu1 %v3593_v54  ;;  %v3557_v4 = vld [vmem:[#allocation16 + $0x258] sm:$0xff]  ;;  %v3582_v54 = vld [vmem:[#allocation16 + $0x320] sm:$0xff]  ;;  %v7361_v61 = vpop.f32.mrf.mxu0 }
 0x3db   : > { %3730 = vmatpush2.msra.mxu0 %v3566_v8  ;;  %3826 = vmatprep.subr.mxu1 %v3591_v38  ;;  %v3555_v8 = vld [vmem:[#allocation16 + $0x248] sm:$0xff]  ;;  %v3581_v38 = vld [vmem:[#allocation16 + $0x318] sm:$0xff]  ;;  %v7367_v50 = vpop.f32.mrf.mxu1 }
 0x3dc   : > { %3731 = vmatprep.subr.mxu0 %v3564_v24  ;;  %3827 = vmatpush1.msra.mxu1 %v3590_v0  ;;  %v3554_v24 = vld [vmem:[#allocation16 + $0x240] sm:$0xff]  ;;  %v3579_v0 = vld [vmem:[#allocation16 + $0x308] sm:$0xff]  ;;  %v7365_v22 = vpop.f32.mrf.mxu0 }
 0x3dd   : > { %3732 = vmatpush2.msra.mxu0 %v3563_v3  ;;  %3828 = vmatprep.subr.mxu1 %v3588_v60  ;;  %v3552_v3 = vld [vmem:[#allocation16 + $0x230] sm:$0xff]  ;;  %v3578_v60 = vld [vmem:[#allocation16 + $0x300] sm:$0xff] }
 0x3de   : > { %3733 = vmatprep.subr.mxu0 %v3561_v20  ;;  %3829 = vmatpush1.msra.mxu1 %v3587_v32  ;;  %v3551_v20 = vld [vmem:[#allocation16 + $0x228] sm:$0xff]  ;;  %v3672_v32 = vld [vmem:[#allocation16 + $0x5f0] sm:$0xff] }
 0x3df   : > { %3734 = vmatpush2.msra.mxu0 %v3560_v46  ;;  %3830 = vmatprep.subr.mxu1 %v3585_v55  ;;  %v3549_v46 = vld [vmem:[#allocation16 + $0x218] sm:$0xff]  ;;  %v3671_v55 = vld [vmem:[#allocation16 + $0x5e8] sm:$0xff] }
 0x3e0   : > { %3735 = vmatprep.subr.mxu0 %v3558_v25  ;;  %3831 = vmatpush1.msra.mxu1 %v3584_v59  ;;  %v3548_v25 = vld [vmem:[#allocation16 + $0x210] sm:$0xff]  ;;  %v3669_v59 = vld [vmem:[#allocation16 + $0x5d8] sm:$0xff] }
 0x3e1   : > { %3736 = vmatpush2.msra.mxu0 %v3557_v4  ;;  %3832 = vmatprep.subr.mxu1 %v3582_v54  ;;  %v3546_v4 = vld [vmem:[#allocation16 + $0x200] sm:$0xff]  ;;  %v3668_v54 = vld [vmem:[#allocation16 + $0x5d0] sm:$0xff] }
 0x3e2   : > { %3737 = vmatprep.subr.mxu0 %v3555_v8  ;;  %3833 = vmatpush1.msra.mxu1 %v3581_v38  ;;  %v3545_v8 = vld [vmem:[#allocation16 + $0x1f8] sm:$0xff]  ;;  %v3666_v38 = vld [vmem:[#allocation16 + $0x5c0] sm:$0xff] }
 0x3e3   : > { %3738 = vmatpush2.msra.mxu0 %v3554_v24  ;;  %3834 = vmatprep.subr.mxu1 %v3579_v0  ;;  %v3543_v24 = vld [vmem:[#allocation16 + $0x1e8] sm:$0xff]  ;;  %v3665_v0 = vld [vmem:[#allocation16 + $0x5b8] sm:$0xff] }
 0x3e4   : > { %3739 = vmatprep.subr.mxu0 %v3552_v3  ;;  %3835 = vmatpush1.msra.mxu1 %v3578_v60  ;;  %v3542_v3 = vld [vmem:[#allocation16 + $0x1e0] sm:$0xff]  ;;  %v3663_v60 = vld [vmem:[#allocation16 + $0x5a8] sm:$0xff] }
 0x3e5   : > { %3740 = vmatpush2.msra.mxu0 %v3551_v20  ;;  %3836 = vmatprep.subr.mxu1 %v3672_v32  ;;  %v3540_v20 = vld [vmem:[#allocation16 + $0x1d0] sm:$0xff]  ;;  %v3662_v32 = vld [vmem:[#allocation16 + $0x5a0] sm:$0xff] }
 0x3e6   : > { %3741 = vmatprep.subr.mxu0 %v3549_v46  ;;  %3837 = vmatpush2.msra.mxu1 %v3671_v55  ;;  %v3539_v46 = vld [vmem:[#allocation16 + $0x1c8] sm:$0xff]  ;;  %v3660_v55 = vld [vmem:[#allocation16 + $0x590] sm:$0xff] }
 0x3e7   : > { %3742 = vmatpush2.msra.mxu0 %v3548_v25  ;;  %3838 = vmatprep.subr.mxu1 %v3669_v59  ;;  %v3537_v25 = vld [vmem:[#allocation16 + $0x1b8] sm:$0xff]  ;;  %v3659_v59 = vld [vmem:[#allocation16 + $0x588] sm:$0xff] }
 0x3e8   : > { %3743 = vmatprep.subr.mxu0 %v3546_v4  ;;  %3839 = vmatpush2.msra.mxu1 %v3668_v54  ;;  %v3536_v4 = vld [vmem:[#allocation16 + $0x1b0] sm:$0xff]  ;;  %v3657_v54 = vld [vmem:[#allocation16 + $0x578] sm:$0xff] }
 0x3e9   : > { %3744 = vmatpush2.msra.mxu0 %v3545_v8  ;;  %3840 = vmatprep.subr.mxu1 %v3666_v38  ;;  %v3534_v8 = vld [vmem:[#allocation16 + $0x1a0] sm:$0xff]  ;;  %v3656_v38 = vld [vmem:[#allocation16 + $0x570] sm:$0xff] }
 0x3ea   : > { %3745 = vmatprep.subr.mxu0 %v3543_v24  ;;  %3841 = vmatpush2.msra.mxu1 %v3665_v0  ;;  %v3533_v24 = vld [vmem:[#allocation16 + $0x198] sm:$0xff]  ;;  %v3654_v0 = vld [vmem:[#allocation16 + $0x560] sm:$0xff] }
 0x3eb   : > { %3746 = vmatpush2.msra.mxu0 %v3542_v3  ;;  %3842 = vmatprep.subr.mxu1 %v3663_v60  ;;  %v3531_v3 = vld [vmem:[#allocation16 + $0x188] sm:$0xff]  ;;  %v3653_v60 = vld [vmem:[#allocation16 + $0x558] sm:$0xff] }
 0x3ec   : > { %3747 = vmatprep.subr.mxu0 %v3540_v20  ;;  %3843 = vmatpush2.msra.mxu1 %v3662_v32  ;;  %v3530_v20 = vld [vmem:[#allocation16 + $0x180] sm:$0xff]  ;;  %v3651_v32 = vld [vmem:[#allocation16 + $0x548] sm:$0xff] }
 0x3ed   : > { %3748 = vmatpush2.msra.mxu0 %v3539_v46  ;;  %3844 = vmatprep.subr.mxu1 %v3660_v55  ;;  %v3577_v46 = vld [vmem:[#allocation16 + $0x2f8] sm:$0xff]  ;;  %v3650_v55 = vld [vmem:[#allocation16 + $0x540] sm:$0xff] }
 0x3ee   : > { %3749 = vmatprep.subr.mxu0 %v3537_v25  ;;  %3845 = vmatpush2.msra.mxu1 %v3659_v59  ;;  %v2559_v25 = vadd.f32 %v7287_v49, %v7187_v17  ;;  %v2561_v59 = vadd.f32 %v7296_v63, %v7193_v15  ;;  %v7376_v17 = vld [vmem:[#allocation14] sm:$0xf]  ;;  %v3644_v49 = vld [vmem:[#allocation16 + $0x510] sm:$0xff]  ;;  %v2565_v15 = vadd.f32 %v7305_v19, %v7197_v52 }
 0x3ef   : > { %3750 = vmatpush2.msra.mxu0 %v3536_v4  ;;  %3846 = vmatprep.subr.mxu1 %v3657_v54  ;;  %v3648_v4 = vld [vmem:[#allocation16 + $0x530] sm:$0xff]  ;;  %v7373_v54 = vpop.f32.mrf.mxu0 }
 0x3f0   : > { %3751 = vmatprep.subr.mxu0 %v3534_v8  ;;  %3847 = vmatpush2.msra.mxu1 %v3656_v38  ;;  %v3647_v8 = vld [vmem:[#allocation16 + $0x528] sm:$0xff]  ;;  %v3645_v38 = vld [vmem:[#allocation16 + $0x518] sm:$0xff]  ;;  %v2672_v42 = vadd.f32 %v7280_v62, %v2559_v25  ;;  %v3636_v19 = vld [vmem:[#allocation16 + $0x4d0] sm:$0xff] }
 0x3f1   : > { %3752 = vmatpush2.msra.mxu0 %v3533_v24  ;;  %3848 = vmatprep.subr.mxu1 %v3654_v0  ;;  %v2897_v24 = vpop.f32.mrf.mxu1  ;;  %v3642_v0 = vld [vmem:[#allocation16 + $0x500] sm:$0xff]  ;;  %v3639_v25 = vld [vmem:[#allocation16 + $0x4e8] sm:$0xff] }
 0x3f2   : > { %3753 = vmatprep.subr.mxu0 %v3531_v3  ;;  %3849 = vmatpush2.msra.mxu1 %v3653_v60  ;;  %v3641_v60 = vld [vmem:[#allocation16 + $0x4f8] sm:$0xff] }
 0x3f3   : > { %3754 = vmatpush2.msra.mxu0 %v3530_v20  ;;  %3850 = vmatprep.subr.mxu1 %v3651_v32  ;;  %v2674_v20 = vadd.f32 %v7289_v48, %v2561_v59  ;;  %v7383_v32 = vrot.slane %v7376_v17, %v6902_v2  ;;  %v7389_v48 = vrot.slane %v7376_v17, %v6899_v58 }
 0x3f4   : > { %4768 = vmatprep.subr.mxu0 %v3577_v46  ;;  %3851 = vmatpush2.msra.mxu1 %v3650_v55  ;;  %v2899_v46 = vpop.f32.mrf.mxu1  ;;  %v2567_v55 = vadd.f32 %v7314_v36, %v7201_v12  ;;  %v2678_v59 = vadd.f32 %v7298_v14, %v2565_v15  ;;  %v3632_v14 = vld [vmem:[#allocation16 + $0x4b0] sm:$0xff]  ;;  %v2573_v15 = vadd.f32 %v7329_v16, %v7213_v56  ;;  %v3574_v56 = vld [vmem:[#allocation16 + $0x2e0] sm:$0xff] }
 0x3f5   : > { %3852 = vmatprep.subr.mxu1 %v3648_v4  ;;  %v3626_v16 = vld [vmem:[#allocation16 + $0x480] sm:$0xff] }
 0x3f6   : > { %3853 = vmatpush2.msra.mxu1 %v3647_v8 }
 0x3f7   : > { %v2784_v3 = vpop.f32.mrf.mxu0  ;;  %3854 = vmatprep.subr.mxu1 %v3645_v38 }
 0x3f8   : > { %v2785_v63 = vadd.f32 %v2784_v3, %v2672_v42  ;;  %3855 = vmatpush2.msra.mxu1 %v3644_v49  ;;  %v3638_v42 = vld [vmem:[#allocation16 + $0x4e0] sm:$0xff]  ;;  %v3635_v49 = vld [vmem:[#allocation16 + $0x4c8] sm:$0xff] }
 0x3f9   : > { %v2786_v62 = vpop.f32.mrf.mxu0  ;;  %3856 = vmatprep.subr.mxu1 %v3642_v0  ;;  %v2571_v0 = vadd.f32 %v7323_v37, %v7207_v33 }
 0x3fa   : > { %v2898_v4 = vadd.f32 %v2897_v24, %v2785_v63  ;;  %v2787_v8 = vadd.f32 %v2786_v62, %v2674_v20  ;;  %3857 = vmatpush2.msra.mxu1 %v3641_v60  ;;  %v3633_v24 = vld [vmem:[#allocation16 + $0x4b8] sm:$0xff]  ;;  %v2680_v20 = vadd.f32 %v7307_v41, %v2567_v55  ;;  %v3630_v62 = vld [vmem:[#allocation16 + $0x4a0] sm:$0xff] }
 0x3fb   : > { %v2903_v52 = vpop.f32.mrf.mxu1  ;;  %3858 = vmatprep.subr.mxu1 %v3639_v25  ;;  %v3629_v41 = vld [vmem:[#allocation16 + $0x498] sm:$0xff] }
 0x3fc   : > { %v2900_v38 = vadd.f32 %v2899_v46, %v2787_v8  ;;  %v7393_v3 = vadd.f32 %v7383_v32, %v2898_v4  ;;  %3859 = vmatpush2.msra.mxu1 %v3638_v42  ;;  %v3529_v55 = vld [vmem:[#allocation16 + $0x178] sm:$0xff]  ;;  %v3627_v42 = vld [vmem:[#allocation16 + $0x488] sm:$0xff] }
 0x3fd   : > { %v2790_v12 = vpop.f32.mrf.mxu0  ;;  %v2905_v36 = vpop.f32.mrf.mxu1  ;;  %3860 = vmatprep.subr.mxu1 %v3636_v19  ;;  %v2684_v19 = vadd.f32 %v7316_v6, %v2571_v0  ;;  %v3673_v6 = vld [vmem:[#allocation16 + $0x5f8] sm:$0xff] }
 0x3fe   : > { %v2791_v63 = vadd.f32 %v2790_v12, %v2678_v59  ;;  %v7399_v60 = vadd.f32 %v7389_v48, %v2900_v38  ;;  %3861 = vmatpush2.msra.mxu1 %v3635_v49  ;;  %v3450_v33 = vmax.f32 %v7393_v3, 0.0  ;;  %v3526_v12 = vld [vmem:[#allocation16 + $0x160] sm:$0xff] }
 0x3ff   : > { %v2792_v46 = vpop.f32.mrf.mxu0  ;;  %3862 = vmatprep.subr.mxu1 %v3633_v24 }
 0x400   : > { %v2904_v25 = vadd.f32 %v2903_v52, %v2791_v63  ;;  %v2793_v4 = vadd.f32 %v2792_v46, %v2680_v20  ;;  %v3451_v8 = vmax.f32 %v7399_v60, 0.0  ;;  %3863 = vmatpush2.msra.mxu1 %v3632_v14  ;;  %v2686_v52 = vadd.f32 %v7325_v1, %v2573_v15  ;;  %v3571_v1 = vld [vmem:[#allocation16 + $0x2c8] sm:$0xff] }
 0x401   : > { %v2909_v37 = vpop.f32.mrf.mxu1  ;;  %3864 = vmatprep.subr.mxu1 %v3630_v62  ;;  %v3523_v14 = vld [vmem:[#allocation16 + $0x148] sm:$0xff]  ;;  %v2579_v15 = vadd.f32 %v7337_v10, %v7225_v27  ;;  %v3565_v27 = vld [vmem:[#allocation16 + $0x298] sm:$0xff] }
 0x402   : > { %v2906_v59 = vadd.f32 %v2905_v36, %v2793_v4  ;;  %3755 = vmatprep.mubr.f32.mxu0 %v3451_v8  ;;  %v7412_v24 = vadd.f32 %v7383_v32, %v2904_v25  ;;  %3865 = vmatpush2.msra.mxu1 %v3629_v41  ;;  %v2577_v36 = vadd.f32 %v7333_v43, %v7219_v47  ;;  %v3568_v47 = vld [vmem:[#allocation16 + $0x2b0] sm:$0xff] }
 0x403   : > { %v2796_v38 = vpop.f32.mrf.mxu0  ;;  %v2911_v49 = vpop.f32.mrf.mxu1  ;;  %3756 = vmatmul.mubr.f32.vlgmr.msra.gmra.mxu0 %v3450_v33  ;;  %3866 = vmatprep.subr.mxu1 %v3627_v42  ;;  %v3520_v41 = vld [vmem:[#allocation16 + $0x130] sm:$0xff] }
 0x404   : > { %v2797_v20 = vadd.f32 %v2796_v38, %v2684_v19  ;;  %4769 = vmatpush3.msra.mxu0 %v3529_v55  ;;  %v7417_v0 = vadd.f32 %v7389_v48, %v2906_v59  ;;  %3867 = vmatpush2.msra.mxu1 %v3626_v16  ;;  %v3454_v4 = vmax.f32 %v7412_v24, 0.0  ;;  %v2690_v55 = vadd.f32 %v7331_v45, %v2577_v36  ;;  %v3517_v59 = vld [vmem:[#allocation16 + $0x118] sm:$0xff]  ;;  %v3562_v38 = vld [vmem:[#allocation16 + $0x280] sm:$0xff] }
 0x405   : > { %v2798_v63 = vpop.f32.mrf.mxu0  ;;  %4770 = vmatprep.subr.mxu0 %v3574_v56  ;;  %4824 = vmatprep.subr.mxu1 %v3673_v6  ;;  %v2692_v56 = vadd.f32 %v7335_v9, %v2579_v15  ;;  %v2583_v45 = vadd.f32 %v7341_v23, %v7231_v18  ;;  %v2585_v6 = vadd.f32 %v7345_v44, %v7236_v26  ;;  %v3559_v9 = vld [vmem:[#allocation16 + $0x268] sm:$0xff] }
 0x406   : > { %v2910_v46 = vadd.f32 %v2909_v37, %v2797_v20  ;;  %v2799_v62 = vadd.f32 %v2798_v63, %v2686_v52  ;;  %v3455_v25 = vmax.f32 %v7417_v0, 0.0  ;;  %4771 = vmatpush3.msra.mxu0 %v3526_v12  ;;  %v3514_v12 = vld [vmem:[#allocation16 + $0x100] sm:$0xff]  ;;  %v3511_v23 = vld [vmem:[#allocation16 + $0xe8] sm:$0xff] }
 0x407   : > { %v2915_v43 = vpop.f32.mrf.mxu1  ;;  %4772 = vmatprep.subr.mxu0 %v3571_v1 }
 0x408   : > { %v2912_v42 = vadd.f32 %v2911_v49, %v2799_v62  ;;  %3761 = vmatprep.mubr.f32.mxu0 %v3455_v25  ;;  %4773 = vmatpush3.msra.mxu0 %v3523_v14  ;;  %v7429_v19 = vadd.f32 %v7383_v32, %v2910_v46  ;;  %v2696_v14 = vadd.f32 %v7339_v40, %v2583_v45  ;;  %v3556_v46 = vld [vmem:[#allocation16 + $0x250] sm:$0xff] }
 0x409   : > { %v2802_v10 = vpop.f32.mrf.mxu0  ;;  %v2917_v37 = vpop.f32.mrf.mxu1  ;;  %3762 = vmatmul.mubr.f32.gmra.mxu0 %v3454_v4  ;;  %4774 = vmatprep.subr.mxu0 %v3568_v47  ;;  %v3508_v47 = vld [vmem:[#allocation16 + $0xd0] sm:$0xff]  ;;  %v2589_v40 = vadd.f32 %v7349_v39, %v7242_v30  ;;  %v3502_v30 = vld [vmem:[#allocation16 + $0xa0] sm:$0xff] }
 0x40a   : > { %v2803_v16 = vadd.f32 %v2802_v10, %v2690_v55  ;;  %v7435_v52 = vadd.f32 %v7389_v48, %v2912_v42  ;;  %4775 = vmatpush3.msra.mxu0 %v3520_v41  ;;  %v3458_v18 = vmax.f32 %v7429_v19, 0.0  ;;  %v3553_v42 = vld [vmem:[#allocation16 + $0x238] sm:$0xff] }
 0x40b   : > { %v2804_v49 = vpop.f32.mrf.mxu0  ;;  %4776 = vmatprep.subr.mxu0 %v3565_v27  ;;  %v3505_v10 = vld [vmem:[#allocation16 + $0xb8] sm:$0xff] }
 0x40c   : > { %v2916_v36 = vadd.f32 %v2915_v43, %v2803_v16  ;;  %v2805_v20 = vadd.f32 %v2804_v49, %v2692_v56  ;;  %v3459_v1 = vmax.f32 %v7435_v52, 0.0  ;;  %4777 = vmatpush3.msra.mxu0 %v3517_v59  ;;  %v2698_v43 = vadd.f32 %v7343_v21, %v2585_v6  ;;  %v3550_v21 = vld [vmem:[#allocation16 + $0x220] sm:$0xff] }
 0x40d   : > { %v2921_v63 = vpop.f32.mrf.mxu1  ;;  %4778 = vmatprep.subr.mxu0 %v3562_v38  ;;  %v2702_v38 = vadd.f32 %v7347_v13, %v2589_v40  ;;  %v2595_v13 = vadd.f32 %v7357_v53, %v7253_v11  ;;  %v3493_v11 = vld [vmem:[#allocation16 + $0x58] sm:$0xff] }
 0x40e   : > { %v2918_v15 = vadd.f32 %v2917_v37, %v2805_v20  ;;  %3767 = vmatprep.mubr.f32.mxu0 %v3459_v1  ;;  %4779 = vmatpush3.msra.mxu0 %v3514_v12  ;;  %v7447_v62 = vadd.f32 %v7383_v32, %v2916_v36  ;;  %v2591_v37 = vadd.f32 %v7353_v29, %v7247_v7  ;;  %v3547_v12 = vld [vmem:[#allocation16 + $0x208] sm:$0xff] }
 0x40f   : > { %v2808_v26 = vpop.f32.mrf.mxu0  ;;  %v2923_v44 = vpop.f32.mrf.mxu1  ;;  %3768 = vmatmul.mubr.f32.gmra.mxu0 %v3458_v18  ;;  %4780 = vmatprep.subr.mxu0 %v3559_v9  ;;  %v3499_v36 = vld [vmem:[#allocation16 + $0x88] sm:$0xff]  ;;  %v2708_v40 = vadd.f32 %v7355_v35, %v2595_v13  ;;  %v2601_v35 = vadd.f32 %v7365_v22, %v7269_v5  ;;  %v3484_v22 = vld [vmem:[#allocation16 + $0x10] sm:$0xff] }
 0x410   : > { %v2809_v41 = vadd.f32 %v2808_v26, %v2696_v14  ;;  %v7453_v55 = vadd.f32 %v7389_v48, %v2918_v15  ;;  %4781 = vmatpush3.msra.mxu0 %v3511_v23  ;;  %v3462_v39 = vmax.f32 %v7447_v62, 0.0  ;;  %v2704_v20 = vadd.f32 %v7351_v28, %v2591_v37  ;;  %v3544_v23 = vld [vmem:[#allocation16 + $0x1f0] sm:$0xff]  ;;  %v3541_v28 = vld [vmem:[#allocation16 + $0x1d8] sm:$0xff] }
 0x411   : > { %v2810_v27 = vpop.f32.mrf.mxu0  ;;  %4782 = vmatprep.subr.mxu0 %v3556_v46  ;;  %v3496_v15 = vld [vmem:[#allocation16 + $0x70] sm:$0xff]  ;;  %v2597_v46 = vadd.f32 %v7361_v61, %v7260_v31  ;;  %v2714_v5 = vadd.f32 %v7363_v51, %v2601_v35 }
 0x412   : > { %v2922_v59 = vadd.f32 %v2921_v63, %v2809_v41  ;;  %v2811_v56 = vadd.f32 %v2810_v27, %v2698_v43  ;;  %v3463_v45 = vmax.f32 %v7453_v55, 0.0  ;;  %4783 = vmatpush3.msra.mxu0 %v3508_v47  ;;  %v3490_v27 = vld [vmem:[#allocation16 + $0x40] sm:$0xff] }
 0x413   : > { %v2927_v16 = vpop.f32.mrf.mxu1  ;;  %4784 = vmatprep.subr.mxu0 %v3553_v42  ;;  %v3538_v42 = vld [vmem:[#allocation16 + $0x1c0] sm:$0xff] }
 0x414   : > { %v2924_v49 = vadd.f32 %v2923_v44, %v2811_v56  ;;  %3773 = vmatprep.mubr.f32.mxu0 %v3463_v45  ;;  %4785 = vmatpush3.msra.mxu0 %v3505_v10  ;;  %v7465_v6 = vadd.f32 %v7383_v32, %v2922_v59  ;;  %v2710_v10 = vadd.f32 %v7359_v57, %v2597_v46  ;;  %v3535_v56 = vld [vmem:[#allocation16 + $0x1a8] sm:$0xff]  ;;  %v3532_v57 = vld [vmem:[#allocation16 + $0x190] sm:$0xff] }
 0x415   : > { %v2814_v29 = vpop.f32.mrf.mxu0  ;;  %v2929_v7 = vpop.f32.mrf.mxu1  ;;  %3774 = vmatmul.mubr.f32.gmra.mxu0 %v3462_v39  ;;  %4786 = vmatprep.subr.mxu0 %v3550_v21 }
 0x416   : > { %v2815_v9 = vadd.f32 %v2814_v29, %v2702_v38  ;;  %v7471_v63 = vadd.f32 %v7389_v48, %v2924_v49  ;;  %4787 = vmatpush3.msra.mxu0 %v3502_v30  ;;  %v3466_v53 = vmax.f32 %v7465_v6, 0.0  ;;  %v3487_v30 = vld [vmem:[#allocation16 + $0x28] sm:$0xff]  ;;  %v2603_v38 = vadd.f32 %v7373_v54, %v7278_v34 }
 0x417   : > { %v2816_v14 = vpop.f32.mrf.mxu0  ;;  %4788 = vmatprep.subr.mxu0 %v3547_v12 }
 0x418   : > { %v2928_v26 = vadd.f32 %v2927_v16, %v2815_v9  ;;  %v2817_v44 = vadd.f32 %v2816_v14, %v2704_v20  ;;  %v3467_v47 = vmax.f32 %v7471_v63, 0.0  ;;  %4789 = vmatpush3.msra.mxu0 %v3499_v36  ;;  %v2716_v34 = vadd.f32 %v7367_v50, %v2603_v38 }
 0x419   : > { %v2933_v43 = vpop.f32.mrf.mxu1  ;;  %4790 = vmatprep.subr.mxu0 %v3544_v23 }
 0x41a   : > { %v2930_v41 = vadd.f32 %v2929_v7, %v2817_v44  ;;  %3779 = vmatprep.mubr.f32.mxu0 %v3467_v47  ;;  %4791 = vmatpush3.msra.mxu0 %v3496_v15  ;;  %v7483_v31 = vadd.f32 %v7383_v32, %v2928_v26 }
 0x41b   : > { %v2820_v61 = vpop.f32.mrf.mxu0  ;;  %3780 = vmatmul.mubr.f32.gmra.mxu0 %v3466_v53  ;;  %4792 = vmatprep.subr.mxu0 %v3541_v28  ;;  %v2935_v21 = vpop.f32.mrf.mxu1 }
 0x41c   : > { %v2821_v37 = vadd.f32 %v2820_v61, %v2708_v40  ;;  %v3439_v59 = vadd.f32 %v7389_v48, %v2930_v41  ;;  %4793 = vmatpush3.msra.mxu0 %v3493_v11  ;;  %v3470_v7 = vmax.f32 %v7483_v31, 0.0 }
 0x41d   : > { %v2822_v16 = vpop.f32.mrf.mxu0  ;;  %4794 = vmatprep.subr.mxu0 %v3538_v42 }
 0x41e   : > { %v2934_v49 = vadd.f32 %v2933_v43, %v2821_v37  ;;  %v2823_v12 = vadd.f32 %v2822_v16, %v2710_v10  ;;  %v3471_v29 = vmax.f32 %v3439_v59, 0.0  ;;  %4795 = vmatpush3.msra.mxu0 %v3490_v27  ;;  %v7877_v37 = vld [vmem:[#allocation29_spill] sm:$0xff]  ;;  %v7878_v16 = vld [vmem:[#allocation28_spill] sm:$0xff] }
 0x41f   : > { %4796 = vmatprep.subr.mxu0 %v3535_v56  ;;  %v2939_v20 = vpop.f32.mrf.mxu1  ;;  %v3412_v38 = vsub.s32 3, %v7878_v16 }
 0x420   : > { %v2936_v36 = vadd.f32 %v2935_v21, %v2823_v12  ;;  %3785 = vmatprep.mubr.f32.mxu0 %v3471_v29  ;;  %4797 = vmatpush3.msra.mxu0 %v3487_v30  ;;  %v3442_v9 = vadd.f32 %v7383_v32, %v2934_v49  ;;  %v3408_v30 = vsub.s32 2, %v7878_v16  ;;  %v7879_v49 = vld [vmem:[#allocation30_spill] sm:$0xff] }
 0x421   : > { %v2826_v13 = vpop.f32.mrf.mxu0  ;;  %3786 = vmatmul.mubr.f32.gmra.mxu0 %v3470_v7  ;;  %4798 = vmatprep.subr.mxu0 %v3532_v57  ;;  %v2941_v51 = vpop.f32.mrf.mxu1 }
 0x422   : > { %v2827_v54 = vadd.f32 %v2826_v13, %v2714_v5  ;;  %v3443_v23 = vadd.f32 %v7389_v48, %v2936_v36  ;;  %4799 = vmatpush3.msra.mxu0 %v3484_v22  ;;  %v3474_v44 = vmax.f32 %v3442_v9, 0.0  ;;  %v7880_v22 = vld [vmem:[#allocation31_spill] sm:$0xff]  ;;  %v7562_v9 = vrot.slane %v7376_v17, %v3408_v30 }
 0x423   : > { %v2828_v14 = vpop.f32.mrf.mxu0 }
 0x424   : > { %v2940_v15 = vadd.f32 %v2939_v20, %v2827_v54  ;;  %v2829_v46 = vadd.f32 %v2828_v14, %v2716_v34  ;;  %v3475_v26 = vmax.f32 %v3443_v23, 0.0  ;;  %v7565_v54 = vrot.slane %v7376_v17, %v3412_v38  ;;  %v7881_v23 = vld [vmem:[#allocation32_spill] sm:$0xff]  ;;  %v7884_v38 = vld [vmem:[#allocation35_spill] sm:$0xff] }
 0x425   : > { %v3010_v50 = vpop.f32.mrf.mxu1 }
 0x426   : > { %v2942_v28 = vadd.f32 %v2941_v51, %v2829_v46  ;;  %3791 = vmatprep.mubr.f32.mxu0 %v3475_v26  ;;  %v3446_v43 = vadd.f32 %v7383_v32, %v2940_v15  ;;  %v3011_v59 = vadd.f32 %v3010_v50, %v7877_v37 }
 0x427   : > { %3792 = vmatmul.mubr.f32.gmra.mxu0 %v3474_v44  ;;  %v3012_v42 = vpop.f32.mrf.mxu1 }
 0x428   : > { %v3447_v11 = vadd.f32 %v7389_v48, %v2942_v28  ;;  %v3478_v41 = vmax.f32 %v3446_v43, 0.0  ;;  %v3013_v12 = vadd.f32 %v3012_v42, %v7879_v49  ;;  %v7882_v28 = vld [vmem:[#allocation33_spill] sm:$0xff]  ;;  %v7883_v42 = vld [vmem:[#allocation34_spill] sm:$0xff] }
 0x42a   : > { %v3479_v40 = vmax.f32 %v3447_v11, 0.0  ;;  %v3016_v32 = vpop.f32.mrf.mxu1 }
 0x42b   : > { %v3017_v5 = vadd.f32 %v3016_v32, %v7880_v22  ;;  %v7885_v22 = vld [vmem:[#allocation36_spill] sm:$0xff] }
 0x42c   : > { %3797 = vmatprep.mubr.f32.mxu0 %v3479_v40  ;;  %v3018_v48 = vpop.f32.mrf.mxu1 }
 0x42d   : > { %3798 = vmatmul.mubr.f32.gmra.mxu0 %v3478_v41  ;;  %v3019_v14 = vadd.f32 %v3018_v48, %v7881_v23 }
 0x42e   : > { %3981 = vmatprep.mubr.f32.mxu0 %v3451_v8 }
 0x42f   : > { %v3022_v3 = vpop.f32.mrf.mxu1 }
 0x430   : > { %v3023_v43 = vadd.f32 %v3022_v3, %v7882_v28 }
 0x431   : > { %3982 = vmatmul.mubr.f32.vlgmr.msra.gmra.mxu0 %v3450_v33  ;;  %v3024_v60 = vpop.f32.mrf.mxu1 }
 0x432   : > { %3986 = vmatprep.mubr.f32.mxu0 %v3455_v25  ;;  %v3025_v32 = vadd.f32 %v3024_v60, %v7883_v42 }
 0x434   : > { %v3028_v8 = vpop.f32.mrf.mxu1 }
 0x435   : > { %3987 = vmatmul.mubr.f32.gmra.mxu0 %v3454_v4  ;;  %v3029_v49 = vadd.f32 %v3028_v8, %v7884_v38 }
 0x436   : > { %3991 = vmatprep.mubr.f32.mxu0 %v3459_v1  ;;  %v7518_v33 = vpop.f32.mrf.mxu1 }
 0x439   : > { %3992 = vmatmul.mubr.f32.gmra.mxu0 %v3458_v18  ;;  %v7520_v0 = vpop.f32.mrf.mxu1 }
 0x43a   : > { %3996 = vmatprep.mubr.f32.mxu0 %v3463_v45 }
 0x43b   : > { %v7522_v19 = vpop.f32.mrf.mxu1 }
 0x43d   : > { %3997 = vmatmul.mubr.f32.gmra.mxu0 %v3462_v39 }
 0x43e   : > { %4001 = vmatprep.mubr.f32.mxu0 %v3467_v47  ;;  %v7524_v18 = vpop.f32.mrf.mxu1 }
 0x440   : > { %v7526_v45 = vpop.f32.mrf.mxu1 }
 0x441   : > { %4002 = vmatmul.mubr.f32.gmra.mxu0 %v3466_v53 }
 0x442   : > { %4006 = vmatprep.mubr.f32.mxu0 %v3471_v29 }
 0x443   : > { %v7532_v63 = vpop.f32.mrf.mxu1 }
 0x445   : > { %4007 = vmatmul.mubr.f32.gmra.mxu0 %v3470_v7  ;;  %v7538_v61 = vpop.f32.mrf.mxu1 }
 0x446   : > { %4011 = vmatprep.mubr.f32.mxu0 %v3475_v26 }
 0x448   : > { %v7544_v10 = vpop.f32.mrf.mxu1 }
 0x449   : > { %4012 = vmatmul.mubr.f32.gmra.mxu0 %v3474_v44 }
 0x44a   : > { %4016 = vmatprep.mubr.f32.mxu0 %v3479_v40  ;;  %v7551_v21 = vpop.f32.mrf.mxu1 }
 0x44d   : > { %4017 = vmatmul.mubr.f32.gmra.mxu0 %v3478_v41 }
 0x44e   : > { %v3123_v24 = vpop.f32.mrf.mxu0 }
 0x44f   : > { %v3124_v29 = vadd.f32 %v3123_v24, %v3011_v59 }
 0x450   : > { %v3125_v25 = vpop.f32.mrf.mxu0 }
 0x451   : > { %v3126_v36 = vadd.f32 %v3125_v25, %v3013_v12 }
 0x452   : > { %v3129_v4 = vpop.f32.mrf.mxu0 }
 0x453   : > { %v3130_v15 = vadd.f32 %v3129_v4, %v3017_v5  ;;  %v3031_v5 = vadd.f32 %v7518_v33, %v7885_v22 }
 0x454   : > { %v3131_v52 = vpop.f32.mrf.mxu0 }
 0x455   : > { %v3132_v11 = vadd.f32 %v3131_v52, %v3019_v14 }
 0x456   : > { %v3135_v1 = vpop.f32.mrf.mxu0 }
 0x457   : > { %v3136_v25 = vadd.f32 %v3135_v1, %v3023_v43 }
 0x458   : > { %v3137_v62 = vpop.f32.mrf.mxu0 }
 0x459   : > { %v3138_v52 = vadd.f32 %v3137_v62, %v3025_v32 }
 0x45a   : > { %v3141_v55 = vpop.f32.mrf.mxu0 }
 0x45c   : > { %v7528_v39 = vpop.f32.mrf.mxu0 }
 0x45e   : > { %v7530_v6 = vpop.f32.mrf.mxu0 }
 0x460   : > { %v7534_v47 = vpop.f32.mrf.mxu0 }
 0x462   : > { %v7536_v53 = vpop.f32.mrf.mxu0 }
 0x464   : > { %v7540_v31 = vpop.f32.mrf.mxu0 }
 0x466   : > { %v7542_v27 = vpop.f32.mrf.mxu0 }
 0x468   : > { %v7546_v35 = vpop.f32.mrf.mxu0 }
 0x46a   : > { %v7549_v56 = vpop.f32.mrf.mxu0 }
 0x46c   : > { %v7556_v57 = vpop.f32.mrf.mxu0 }
 0x46d   : > { %v3236_v7 = vpop.f32.mrf.mxu1 }
 0x46e   : > { %v3237_v20 = vadd.f32 %v3236_v7, %v3124_v29  ;;  %v3349_v13 = vpop.f32.mrf.mxu0 }
 0x46f   : > { %v3238_v34 = vpop.f32.mrf.mxu1 }
 0x470   : > { %v3350_v46 = vadd.f32 %v3349_v13, %v3237_v20  ;;  %v3239_v26 = vadd.f32 %v3238_v34, %v3126_v36  ;;  %v3351_v51 = vpop.f32.mrf.mxu0  ;;  %v3625_v13 = vld [vmem:[#allocation16 + $0x478] sm:$0xff]  ;;  %v3142_v34 = vadd.f32 %v3141_v55, %v3029_v49  ;;  %v3144_v55 = vadd.f32 %v7528_v39, %v3031_v5  ;;  %v3619_v39 = vld [vmem:[#allocation16 + $0x448] sm:$0xff] }
 0x471   : > { %v3242_v44 = vpop.f32.mrf.mxu1  ;;  %v3661_v5 = vld [vmem:[#allocation16 + $0x598] sm:$0xff] }
 0x472   : > { %v3352_v40 = vadd.f32 %v3351_v51, %v3239_v26  ;;  %v3243_v41 = vadd.f32 %v3242_v44, %v3130_v15  ;;  %v3355_v50 = vpop.f32.mrf.mxu0  ;;  %v7571_v24 = vadd.f32 %v7562_v9, %v3350_v46  ;;  %v3670_v15 = vld [vmem:[#allocation16 + $0x5e0] sm:$0xff]  ;;  %v7886_v46 = vld [vmem:[#allocation37_spill] sm:$0xff] }
 0x473   : > { %v3244_v17 = vpop.f32.mrf.mxu1  ;;  %v3035_v33 = vadd.f32 %v7520_v0, %v7886_v46  ;;  %v3622_v51 = vld [vmem:[#allocation16 + $0x460] sm:$0xff] }
 0x474   : > { %v7574_v48 = vadd.f32 %v7565_v54, %v3352_v40  ;;  %v3356_v4 = vadd.f32 %v3355_v50, %v3243_v41  ;;  %v3245_v37 = vadd.f32 %v3244_v17, %v3132_v11  ;;  %v3357_v59 = vpop.f32.mrf.mxu0  ;;  %v3452_v1 = vmax.f32 %v7571_v24, 0.0  ;;  %v3667_v40 = vld [vmem:[#allocation16 + $0x5c8] sm:$0xff]  ;;  %v7887_v41 = vld [vmem:[#allocation38_spill] sm:$0xff] }
 0x475   : > { %v3248_v3 = vpop.f32.mrf.mxu1  ;;  %v3037_v50 = vadd.f32 %v7522_v19, %v7887_v41  ;;  %v3148_v42 = vadd.f32 %v7530_v6, %v3035_v33  ;;  %v3664_v19 = vld [vmem:[#allocation16 + $0x5b0] sm:$0xff]  ;;  %v7888_v6 = vld [vmem:[#allocation39_spill] sm:$0xff] }
 0x476   : > { %v3453_v12 = vmax.f32 %v7574_v48, 0.0  ;;  %v3358_v29 = vadd.f32 %v3357_v59, %v3245_v37  ;;  %v3249_v7 = vadd.f32 %v3248_v3, %v3136_v25  ;;  %v3361_v60 = vpop.f32.mrf.mxu0  ;;  %v7582_v36 = vadd.f32 %v7562_v9, %v3356_v4  ;;  %v3616_v3 = vld [vmem:[#allocation16 + $0x430] sm:$0xff]  ;;  %v4178_v48 = vld [vmem:[#allocation19 + $0xd8] sm:$0xff] }
 0x477   : > { %v3250_v20 = vpop.f32.mrf.mxu1  ;;  %v3041_v38 = vadd.f32 %v7524_v18, %v7888_v6  ;;  %v4161_v24 = vld [vmem:[#allocation19 + $0x50] sm:$0xff] }
 0x478   : > { %v7585_v8 = vadd.f32 %v7565_v54, %v3358_v29  ;;  %v3362_v62 = vadd.f32 %v3361_v60, %v3249_v7  ;;  %v3251_v23 = vadd.f32 %v3250_v20, %v3138_v52  ;;  %v3363_v14 = vpop.f32.mrf.mxu0  ;;  %3868 = vmatprep.mubr.f32.mxu1 %v3453_v12  ;;  %v3456_v0 = vmax.f32 %v7582_v36, 0.0  ;;  %v7889_v20 = vld [vmem:[#allocation40_spill] sm:$0xff] }
 0x479   : > { %v3254_v26 = vpop.f32.mrf.mxu1  ;;  %3869 = vmatmul.mubr.f32.vlgmr.msra.gmra.mxu1 %v3452_v1  ;;  %v3150_v52 = vadd.f32 %v7534_v47, %v3037_v50  ;;  %v3154_v18 = vadd.f32 %v7536_v53, %v3041_v38  ;;  %v3613_v47 = vld [vmem:[#allocation16 + $0x418] sm:$0xff]  ;;  %v7890_v53 = vld [vmem:[#allocation41_spill] sm:$0xff]  ;;  %v4159_v36 = vld [vmem:[#allocation19 + $0x40] sm:$0xff] }
 0x47a   : > { %v3457_v44 = vmax.f32 %v7585_v8, 0.0  ;;  %v3364_v28 = vadd.f32 %v3363_v14, %v3251_v23  ;;  %v3255_v43 = vadd.f32 %v3254_v26, %v3142_v34  ;;  %v3367_v11 = vpop.f32.mrf.mxu0  ;;  %4825 = vmatpush3.msra.mxu1 %v3625_v13  ;;  %v7600_v32 = vadd.f32 %v7562_v9, %v3362_v62  ;;  %v3655_v50 = vld [vmem:[#allocation16 + $0x568] sm:$0xff] }
 0x47b   : > { %v3256_v17 = vpop.f32.mrf.mxu1  ;;  %4826 = vmatprep.subr.mxu1 %v3670_v15  ;;  %v3043_v13 = vadd.f32 %v7526_v45, %v7889_v20  ;;  %v3658_v45 = vld [vmem:[#allocation16 + $0x580] sm:$0xff]  ;;  %v3047_v26 = vadd.f32 %v7532_v63, %v7890_v53  ;;  %v4160_v8 = vld [vmem:[#allocation19 + $0x48] sm:$0xff] }
 0x47c   : > { %v7603_v25 = vadd.f32 %v7565_v54, %v3364_v28  ;;  %v3368_v4 = vadd.f32 %v3367_v11, %v3255_v43  ;;  %v3257_v37 = vadd.f32 %v3256_v17, %v3144_v55  ;;  %v3369_v59 = vpop.f32.mrf.mxu0  ;;  %3874 = vmatprep.mubr.f32.mxu1 %v3457_v44  ;;  %4827 = vmatpush3.msra.mxu1 %v3622_v51  ;;  %v3460_v34 = vmax.f32 %v7600_v32, 0.0  ;;  %v3610_v55 = vld [vmem:[#allocation16 + $0x400] sm:$0xff]  ;;  %v4157_v32 = vld [vmem:[#allocation19 + $0x30] sm:$0xff] }
 0x47d   : > { %v3260_v49 = vpop.f32.mrf.mxu1  ;;  %3875 = vmatmul.mubr.f32.gmra.mxu1 %v3456_v0  ;;  %4828 = vmatprep.subr.mxu1 %v3667_v40  ;;  %v3156_v28 = vadd.f32 %v7540_v31, %v3043_v13  ;;  %v3160_v63 = vadd.f32 %v7542_v27, %v3047_v26  ;;  %v3607_v31 = vld [vmem:[#allocation16 + $0x3e8] sm:$0xff]  ;;  %v7892_v27 = vld [vmem:[#allocation43_spill] sm:$0xff] }
 0x47e   : > { %v3461_v29 = vmax.f32 %v7603_v25, 0.0  ;;  %v3370_v7 = vadd.f32 %v3369_v59, %v3257_v37  ;;  %v3261_v60 = vadd.f32 %v3260_v49, %v3148_v42  ;;  %v3373_v22 = vpop.f32.mrf.mxu0  ;;  %4829 = vmatpush3.msra.mxu1 %v3619_v39  ;;  %v7618_v62 = vadd.f32 %v7562_v9, %v3368_v4  ;;  %v7891_v42 = vld [vmem:[#allocation42_spill] sm:$0xff] }
 0x47f   : > { %v3262_v23 = vpop.f32.mrf.mxu1  ;;  %4830 = vmatprep.subr.mxu1 %v3664_v19  ;;  %v3049_v17 = vadd.f32 %v7538_v61, %v7891_v42  ;;  %v3652_v61 = vld [vmem:[#allocation16 + $0x550] sm:$0xff]  ;;  %v3053_v49 = vadd.f32 %v7544_v10, %v7892_v27  ;;  %v3649_v13 = vld [vmem:[#allocation16 + $0x538] sm:$0xff] }
 0x480   : > { %v7621_v14 = vadd.f32 %v7565_v54, %v3370_v7  ;;  %v3374_v15 = vadd.f32 %v3373_v22, %v3261_v60  ;;  %v3263_v46 = vadd.f32 %v3262_v23, %v3150_v52  ;;  %v3375_v33 = vpop.f32.mrf.mxu0  ;;  %3880 = vmatprep.mubr.f32.mxu1 %v3461_v29  ;;  %4831 = vmatpush3.msra.mxu1 %v3616_v3  ;;  %v3464_v39 = vmax.f32 %v7618_v62, 0.0  ;;  %v3604_v52 = vld [vmem:[#allocation16 + $0x3d0] sm:$0xff]  ;;  %v4158_v25 = vld [vmem:[#allocation19 + $0x38] sm:$0xff]  ;;  %v4155_v62 = vld [vmem:[#allocation19 + $0x20] sm:$0xff] }
 0x481   : > { %v3266_v51 = vpop.f32.mrf.mxu1  ;;  %3881 = vmatmul.mubr.f32.gmra.mxu1 %v3460_v34  ;;  %4832 = vmatprep.subr.mxu1 %v3661_v5  ;;  %v3162_v7 = vadd.f32 %v7546_v35, %v3049_v17  ;;  %v3166_v10 = vadd.f32 %v7549_v56, %v3053_v49  ;;  %v3601_v35 = vld [vmem:[#allocation16 + $0x3b8] sm:$0xff] }
 0x482   : > { %v3465_v43 = vmax.f32 %v7621_v14, 0.0  ;;  %v3376_v11 = vadd.f32 %v3375_v33, %v3263_v46  ;;  %v3267_v40 = vadd.f32 %v3266_v51, %v3154_v18  ;;  %v3379_v41 = vpop.f32.mrf.mxu0  ;;  %4833 = vmatpush3.msra.mxu1 %v3613_v47  ;;  %v7636_v4 = vadd.f32 %v7562_v9, %v3374_v15  ;;  %v7893_v18 = vld [vmem:[#allocation44_spill] sm:$0xff] }
 0x483   : > { %v3268_v37 = vpop.f32.mrf.mxu1  ;;  %4834 = vmatprep.subr.mxu1 %v3658_v45  ;;  %v3055_v23 = vadd.f32 %v7551_v21, %v7893_v18  ;;  %v3646_v21 = vld [vmem:[#allocation16 + $0x520] sm:$0xff]  ;;  %v4156_v14 = vld [vmem:[#allocation19 + $0x28] sm:$0xff] }
 0x484   : > { %v7639_v59 = vadd.f32 %v7565_v54, %v3376_v11  ;;  %v3380_v19 = vadd.f32 %v3379_v41, %v3267_v40  ;;  %v3269_v6 = vadd.f32 %v3268_v37, %v3156_v28  ;;  %v3381_v38 = vpop.f32.mrf.mxu0  ;;  %3886 = vmatprep.mubr.f32.mxu1 %v3465_v43  ;;  %4835 = vmatpush3.msra.mxu1 %v3610_v55  ;;  %v3468_v47 = vmax.f32 %v7636_v4, 0.0  ;;  %v3598_v51 = vld [vmem:[#allocation16 + $0x3a0] sm:$0xff]  ;;  %v3595_v37 = vld [vmem:[#allocation16 + $0x388] sm:$0xff] }
 0x485   : > { %v3272_v3 = vpop.f32.mrf.mxu1  ;;  %3887 = vmatmul.mubr.f32.gmra.mxu1 %v3464_v39  ;;  %4836 = vmatprep.subr.mxu1 %v3655_v50  ;;  %v3168_v55 = vadd.f32 %v7556_v57, %v3055_v23  ;;  %v3643_v50 = vld [vmem:[#allocation16 + $0x508] sm:$0xff]  ;;  %v4182_v23 = vld [vmem:[#allocation19 + $0xf8] sm:$0xff] }
 0x486   : > { %v3469_v60 = vmax.f32 %v7639_v59, 0.0  ;;  %v3382_v22 = vadd.f32 %v3381_v38, %v3269_v6  ;;  %v3273_v5 = vadd.f32 %v3272_v3, %v3160_v63  ;;  %v3385_v20 = vpop.f32.mrf.mxu0  ;;  %4837 = vmatpush3.msra.mxu1 %v3607_v31  ;;  %v7654_v15 = vadd.f32 %v7562_v9, %v3380_v19  ;;  %v3640_v38 = vld [vmem:[#allocation16 + $0x4f0] sm:$0xff]  ;;  %v3637_v3 = vld [vmem:[#allocation16 + $0x4d8] sm:$0xff]  ;;  %4880 = vmatprep.subr.mxu0 %v4182_v23 }
 0x487   : > { %v3274_v46 = vpop.f32.mrf.mxu1  ;;  %4838 = vmatprep.subr.mxu1 %v3652_v61  ;;  %v3592_v61 = vld [vmem:[#allocation16 + $0x370] sm:$0xff]  ;;  %v4154_v4 = vld [vmem:[#allocation19 + $0x18] sm:$0xff] }
 0x488   : > { %v7657_v33 = vadd.f32 %v7565_v54, %v3382_v22  ;;  %v3386_v45 = vadd.f32 %v3385_v20, %v3273_v5  ;;  %v3275_v53 = vadd.f32 %v3274_v46, %v3162_v7  ;;  %v3387_v26 = vpop.f32.mrf.mxu0  ;;  %3892 = vmatprep.mubr.f32.mxu1 %v3469_v60  ;;  %4839 = vmatpush3.msra.mxu1 %v3604_v52  ;;  %v3472_v42 = vmax.f32 %v7654_v15, 0.0  ;;  %v3589_v22 = vld [vmem:[#allocation16 + $0x358] sm:$0xff]  ;;  %v3634_v20 = vld [vmem:[#allocation16 + $0x4c0] sm:$0xff]  ;;  %v3628_v46 = vld [vmem:[#allocation16 + $0x490] sm:$0xff] }
 0x489   : > { %v3278_v56 = vpop.f32.mrf.mxu1  ;;  %3893 = vmatmul.mubr.f32.gmra.mxu1 %v3468_v47  ;;  %4840 = vmatprep.subr.mxu1 %v3649_v13  ;;  %v3586_v13 = vld [vmem:[#allocation16 + $0x340] sm:$0xff]  ;;  %v4169_v59 = vld [vmem:[#allocation19 + $0x90] sm:$0xff]  ;;  %v4152_v15 = vld [vmem:[#allocation19 + $0x8] sm:$0xff] }
 0x48a   : > { %v3473_v28 = vmax.f32 %v7657_v33, 0.0  ;;  %v3388_v11 = vadd.f32 %v3387_v26, %v3275_v53  ;;  %v3279_v40 = vadd.f32 %v3278_v56, %v3166_v10  ;;  %v3391_v41 = vpop.f32.mrf.mxu0  ;;  %4841 = vmatpush3.msra.mxu1 %v3601_v35  ;;  %v7667_v17 = vadd.f32 %v7562_v9, %v3386_v45  ;;  %v4166_v35 = vld [vmem:[#allocation19 + $0x78] sm:$0xff]  ;;  %v3580_v45 = vld [vmem:[#allocation16 + $0x310] sm:$0xff]  ;;  %v4167_v33 = vld [vmem:[#allocation19 + $0x80] sm:$0xff] }
 0x48b   : > { %v3280_v63 = vpop.f32.mrf.mxu1  ;;  %4842 = vmatprep.subr.mxu1 %v3646_v21  ;;  %v4181_v53 = vld [vmem:[#allocation19 + $0xf0] sm:$0xff]  ;;  %4881 = vmatpush3.msra.mxu0 %v4166_v35  ;;  %v4180_v21 = vld [vmem:[#allocation19 + $0xe8] sm:$0xff] }
 0x48c   : > { %v7670_v31 = vadd.f32 %v7565_v54, %v3388_v11  ;;  %v3392_v19 = vadd.f32 %v3391_v41, %v3279_v40  ;;  %v3281_v57 = vadd.f32 %v3280_v63, %v3168_v55  ;;  %v3393_v6 = vpop.f32.mrf.mxu0  ;;  %3898 = vmatprep.mubr.f32.mxu1 %v3473_v28  ;;  %4843 = vmatpush3.msra.mxu1 %v3598_v51  ;;  %v3476_v52 = vmax.f32 %v7667_v17, 0.0  ;;  %v4165_v26 = vld [vmem:[#allocation19 + $0x70] sm:$0xff]  ;;  %v4164_v56 = vld [vmem:[#allocation19 + $0x68] sm:$0xff]  ;;  %v4179_v51 = vld [vmem:[#allocation19 + $0xe0] sm:$0xff] }
 0x48d   : > { %3899 = vmatmul.mubr.f32.gmra.mxu1 %v3472_v42  ;;  %4844 = vmatprep.subr.mxu1 %v3643_v50  ;;  %v4163_v55 = vld [vmem:[#allocation19 + $0x60] sm:$0xff]  ;;  %v4177_v11 = vld [vmem:[#allocation19 + $0xd0] sm:$0xff]  ;;  %v4198_v40 = vld [vmem:[#allocation19 + $0x178] sm:$0xff] }
 0x48e   : > { %v3477_v27 = vmax.f32 %v7670_v31, 0.0  ;;  %v3394_v49 = vadd.f32 %v3393_v6, %v3281_v57  ;;  %4845 = vmatpush3.msra.mxu1 %v3595_v37  ;;  %v7679_v7 = vadd.f32 %v7562_v9, %v3392_v19  ;;  %v3631_v9 = vld [vmem:[#allocation16 + $0x4a8] sm:$0xff]  ;;  %4882 = vmatprep.subr.mxu0 %v4181_v53  ;;  %v4197_v41 = vld [vmem:[#allocation19 + $0x170] sm:$0xff]  ;;  %v4194_v17 = vld [vmem:[#allocation19 + $0x158] sm:$0xff] }
 0x48f   : > { %4846 = vmatprep.subr.mxu1 %v3640_v38  ;;  %4883 = vmatpush3.msra.mxu0 %v4165_v26  ;;  %v4196_v50 = vld [vmem:[#allocation19 + $0x168] sm:$0xff]  ;;  %v4193_v63 = vld [vmem:[#allocation19 + $0x150] sm:$0xff]  ;;  %v4191_v31 = vld [vmem:[#allocation19 + $0x140] sm:$0xff] }
 0x490   : > { %v7682_v5 = vadd.f32 %v7565_v54, %v3394_v49  ;;  %3904 = vmatprep.mubr.f32.mxu1 %v3477_v27  ;;  %4847 = vmatpush3.msra.mxu1 %v3592_v61  ;;  %v3480_v10 = vmax.f32 %v7679_v7, 0.0  ;;  %v3583_v54 = vld [vmem:[#allocation16 + $0x328] sm:$0xff]  ;;  %v4190_v19 = vld [vmem:[#allocation19 + $0x138] sm:$0xff]  ;;  %v4189_v57 = vld [vmem:[#allocation19 + $0x130] sm:$0xff] }
 0x491   : > { %3905 = vmatmul.mubr.f32.gmra.mxu1 %v3476_v52  ;;  %4848 = vmatprep.subr.mxu1 %v3637_v3  ;;  %v4192_v37 = vld [vmem:[#allocation19 + $0x148] sm:$0xff]  ;;  %v4187_v38 = vld [vmem:[#allocation19 + $0x120] sm:$0xff]  ;;  %v4186_v61 = vld [vmem:[#allocation19 + $0x118] sm:$0xff] }
 0x492   : > { %v3481_v18 = vmax.f32 %v7682_v5, 0.0  ;;  %4849 = vmatpush3.msra.mxu1 %v3589_v22  ;;  %4884 = vmatprep.subr.mxu0 %v4180_v21  ;;  %v4188_v6 = vld [vmem:[#allocation19 + $0x128] sm:$0xff]  ;;  %v4183_v3 = vld [vmem:[#allocation19 + $0x100] sm:$0xff]  ;;  %v7736_v21 = vld [vmem:[#allocation17] sm:$0x7] }
 0x493   : > { %4850 = vmatprep.subr.mxu1 %v3634_v20  ;;  %4885 = vmatpush3.msra.mxu0 %v4164_v56  ;;  %v4184_v49 = vld [vmem:[#allocation19 + $0x108] sm:$0xff]  ;;  %v7740_v56 = vrot.slane %v7736_v21, %v6902_v2 }
 0x494   : > { %3910 = vmatprep.mubr.f32.mxu1 %v3481_v18  ;;  %4851 = vmatpush3.msra.mxu1 %v3586_v13 }
 0x495   : > { %3911 = vmatmul.mubr.f32.gmra.mxu1 %v3480_v10  ;;  %4852 = vmatprep.subr.mxu1 %v3631_v9 }
 0x496   : > { %4853 = vmatpush3.msra.mxu1 %v3583_v54  ;;  %4086 = vmatprep.mubr.f32.mxu1 %v3453_v12  ;;  %v4162_v12 = vld [vmem:[#allocation19 + $0x58] sm:$0xff] }
 0x497   : > { %4854 = vmatprep.subr.mxu1 %v3628_v46  ;;  %4886 = vmatprep.subr.mxu0 %v4179_v51 }
 0x498   : > { %4855 = vmatpush3.msra.mxu1 %v3580_v45  ;;  %4887 = vmatpush3.msra.mxu0 %v4163_v55  ;;  %v7746_v55 = vrot.slane %v7736_v21, %v6899_v58 }
 0x499   : > { %4087 = vmatmul.mubr.f32.vlgmr.msra.gmra.mxu1 %v3452_v1  ;;  %4888 = vmatprep.subr.mxu0 %v4178_v48  ;;  %v4176_v1 = vld [vmem:[#allocation19 + $0xc8] sm:$0xff] }
 0x49a   : > { %4091 = vmatprep.mubr.f32.mxu1 %v3457_v44  ;;  %4889 = vmatpush3.msra.mxu0 %v4162_v12  ;;  %v4175_v44 = vld [vmem:[#allocation19 + $0xc0] sm:$0xff] }
 0x49b   : > { %4890 = vmatprep.subr.mxu0 %v4177_v11  ;;  %4960 = vmatprep.subr.mxu1 %v4198_v40 }
 0x49c   : > { %4891 = vmatpush3.msra.mxu0 %v4161_v24  ;;  %4961 = vmatpush3.msra.mxu1 %v4198_v40 }
 0x49d   : > { %4092 = vmatmul.mubr.f32.gmra.mxu1 %v3456_v0  ;;  %4892 = vmatprep.subr.mxu0 %v4176_v1  ;;  %v4174_v0 = vld [vmem:[#allocation19 + $0xb8] sm:$0xff] }
 0x49e   : > { %4096 = vmatprep.mubr.f32.mxu1 %v3461_v29  ;;  %4893 = vmatpush3.msra.mxu0 %v4160_v8  ;;  %v4173_v29 = vld [vmem:[#allocation19 + $0xb0] sm:$0xff] }
 0x49f   : > { %4894 = vmatprep.subr.mxu0 %v4175_v44  ;;  %4962 = vmatprep.subr.mxu1 %v4197_v41 }
 0x4a0   : > { %4895 = vmatpush3.msra.mxu0 %v4159_v36  ;;  %4963 = vmatpush3.msra.mxu1 %v4197_v41 }
 0x4a1   : > { %4097 = vmatmul.mubr.f32.gmra.mxu1 %v3460_v34  ;;  %4896 = vmatprep.subr.mxu0 %v4174_v0  ;;  %v4172_v34 = vld [vmem:[#allocation19 + $0xa8] sm:$0xff] }
 0x4a2   : > { %4101 = vmatprep.mubr.f32.mxu1 %v3465_v43  ;;  %4897 = vmatpush3.msra.mxu0 %v4158_v25  ;;  %v4171_v43 = vld [vmem:[#allocation19 + $0xa0] sm:$0xff] }
 0x4a3   : > { %4898 = vmatprep.subr.mxu0 %v4173_v29  ;;  %4964 = vmatprep.subr.mxu1 %v4196_v50 }
 0x4a4   : > { %4899 = vmatpush3.msra.mxu0 %v4157_v32  ;;  %4965 = vmatpush3.msra.mxu1 %v4196_v50 }
 0x4a5   : > { %4102 = vmatmul.mubr.f32.gmra.mxu1 %v3464_v39  ;;  %4900 = vmatprep.subr.mxu0 %v4172_v34  ;;  %v4170_v39 = vld [vmem:[#allocation19 + $0x98] sm:$0xff] }
 0x4a6   : > { %4106 = vmatprep.mubr.f32.mxu1 %v3469_v60  ;;  %4901 = vmatpush3.msra.mxu0 %v4156_v14  ;;  %v4153_v60 = vld [vmem:[#allocation19 + $0x10] sm:$0xff] }
 0x4a7   : > { %4902 = vmatprep.subr.mxu0 %v4171_v43 }
 0x4a8   : > { %4903 = vmatpush3.msra.mxu0 %v4155_v62 }
 0x4a9   : > { %4107 = vmatmul.mubr.f32.gmra.mxu1 %v3468_v47  ;;  %4904 = vmatprep.subr.mxu0 %v4170_v39  ;;  %v4168_v47 = vld [vmem:[#allocation19 + $0x88] sm:$0xff] }
 0x4aa   : > { %4111 = vmatprep.mubr.f32.mxu1 %v3473_v28  ;;  %4905 = vmatpush3.msra.mxu0 %v4154_v4  ;;  %v4151_v28 = vld [vmem:[#allocation19] sm:$0xff] }
 0x4ab   : > { %4906 = vmatprep.subr.mxu0 %v4169_v59 }
 0x4ac   : > { %4907 = vmatpush3.msra.mxu0 %v4153_v60 }
 0x4ad   : > { %4112 = vmatmul.mubr.f32.gmra.mxu1 %v3472_v42  ;;  %4908 = vmatprep.subr.mxu0 %v4168_v47  ;;  %v4195_v42 = vld [vmem:[#allocation19 + $0x160] sm:$0xff] }
 0x4ae   : > { %4116 = vmatprep.mubr.f32.mxu1 %v3477_v27  ;;  %4909 = vmatpush3.msra.mxu0 %v4152_v15  ;;  %v4185_v27 = vld [vmem:[#allocation19 + $0x110] sm:$0xff] }
 0x4af   : > { %4910 = vmatprep.subr.mxu0 %v4167_v33  ;;  %4966 = vmatprep.subr.mxu1 %v4195_v42 }
 0x4b0   : > { %4911 = vmatpush3.msra.mxu0 %v4151_v28  ;;  %4967 = vmatpush3.msra.mxu1 %v4195_v42 }
 0x4b1   : > { %4117 = vmatmul.mubr.f32.gmra.mxu1 %v3476_v52  ;;  %4968 = vmatprep.subr.mxu1 %v4194_v17 }
 0x4b2   : > { %4121 = vmatprep.mubr.f32.mxu1 %v3481_v18  ;;  %4969 = vmatpush3.msra.mxu1 %v4194_v17 }
 0x4b3   : > { %4970 = vmatprep.subr.mxu1 %v4193_v63 }
 0x4b4   : > { %4971 = vmatpush3.msra.mxu1 %v4193_v63 }
 0x4b5   : > { %4122 = vmatmul.mubr.f32.gmra.mxu1 %v3480_v10  ;;  %4972 = vmatprep.subr.mxu1 %v4192_v37 }
 0x4b6   : > { %4973 = vmatpush3.msra.mxu1 %v4192_v37 }
 0x4b7   : > { %4974 = vmatprep.subr.mxu1 %v4191_v31 }
 0x4b8   : > { %4975 = vmatpush3.msra.mxu1 %v4191_v31 }
 0x4b9   : > { %4976 = vmatprep.subr.mxu1 %v4190_v19 }
 0x4ba   : > { %4977 = vmatpush3.msra.mxu1 %v4190_v19 }
 0x4bb   : > { %4978 = vmatprep.subr.mxu1 %v4189_v57 }
 0x4bc   : > { %4979 = vmatpush3.msra.mxu1 %v4189_v57 }
 0x4bd   : > { %4980 = vmatprep.subr.mxu1 %v4188_v6 }
 0x4be   : > { %4981 = vmatpush3.msra.mxu1 %v4188_v6 }
 0x4bf   : > { %4982 = vmatprep.subr.mxu1 %v4187_v38 }
 0x4c0   : > { %4983 = vmatpush3.msra.mxu1 %v4187_v38 }
 0x4c1   : > { %4984 = vmatprep.subr.mxu1 %v4186_v61 }
 0x4c2   : > { %4985 = vmatpush3.msra.mxu1 %v4186_v61 }
 0x4c3   : > { %4986 = vmatprep.subr.mxu1 %v4185_v27  ;;  %v3757_v52 = vpop.f32.mrf.mxu0 }
 0x4c4   : > { %4987 = vmatpush3.msra.mxu1 %v4185_v27  ;;  %v3758_v48 = vadd.f32 %v3757_v52, %v7740_v56 }
 0x4c5   : > { %4988 = vmatprep.subr.mxu1 %v4184_v49  ;;  %v3759_v7 = vpop.f32.mrf.mxu0 }
 0x4c6   : > { %4989 = vmatpush3.msra.mxu1 %v4184_v49  ;;  %v3760_v24 = vadd.f32 %v3759_v7, %v7746_v55 }
 0x4c7   : > { %4990 = vmatprep.subr.mxu1 %v4183_v3 }
 0x4c8   : > { %4991 = vmatpush3.msra.mxu1 %v4183_v3 }
 0x4c9   : > { %v3763_v22 = vpop.f32.mrf.mxu0 }
 0x4ca   : > { %v3764_v36 = vadd.f32 %v3763_v22, %v7740_v56 }
 0x4cb   : > { %v3765_v5 = vpop.f32.mrf.mxu0 }
 0x4cc   : > { %v3766_v25 = vadd.f32 %v3765_v5, %v7746_v55 }
 0x4cf   : > { %v3769_v20 = vpop.f32.mrf.mxu0 }
 0x4d0   : > { %v3770_v43 = vadd.f32 %v3769_v20, %v7740_v56 }
 0x4d1   : > { %v3771_v13 = vpop.f32.mrf.mxu0 }
 0x4d2   : > { %v3772_v4 = vadd.f32 %v3771_v13, %v7746_v55 }
 0x4d5   : > { %v3775_v18 = vpop.f32.mrf.mxu0 }
 0x4d6   : > { %v3776_v28 = vadd.f32 %v3775_v18, %v7740_v56 }
 0x4d7   : > { %v3777_v9 = vpop.f32.mrf.mxu0 }
 0x4d8   : > { %v3778_v50 = vadd.f32 %v3777_v9, %v7746_v55 }
 0x4db   : > { %v3781_v23 = vpop.f32.mrf.mxu0 }
 0x4dc   : > { %v3782_v19 = vadd.f32 %v3781_v23, %v7740_v56 }
 0x4dd   : > { %v3783_v10 = vpop.f32.mrf.mxu0 }
 0x4de   : > { %v3784_v38 = vadd.f32 %v3783_v10, %v7746_v55 }
 0x4e1   : > { %v3787_v54 = vpop.f32.mrf.mxu0 }
 0x4e2   : > { %v3788_v7 = vadd.f32 %v3787_v54, %v7740_v56 }
 0x4e3   : > { %v7726_v46 = vpop.f32.mrf.mxu0 }
 0x4e4   : > { %v3790_v20 = vadd.f32 %v7726_v46, %v7746_v55 }
 0x4e7   : > { %v7728_v35 = vpop.f32.mrf.mxu0 }
 0x4e8   : > { %v3794_v10 = vadd.f32 %v7728_v35, %v7740_v56 }
 0x4e9   : > { %v7730_v45 = vpop.f32.mrf.mxu0 }
 0x4ea   : > { %v3796_v54 = vadd.f32 %v7730_v45, %v7746_v55  ;;  %v7780_v45 = vrot.slane %v7736_v21, %v3408_v30 }
 0x4ed   : > { %v7732_v53 = vpop.f32.mrf.mxu0 }
 0x4ef   : > { %v7734_v26 = vpop.f32.mrf.mxu0 }
 0x4f0   : > { %v3802_v35 = vadd.f32 %v7734_v26, %v7746_v55 }
 0x4f1   : > { %v7742_v51 = vpop.f32.mrf.mxu0 }
 0x4f3   : > { %v7749_v12 = vpop.f32.mrf.mxu0 }
 0x4f5   : > { %v7753_v2 = vpop.f32.mrf.mxu0 }
 0x4f7   : > { %v7757_v62 = vpop.f32.mrf.mxu0 }
 0x4f9   : > { %v7761_v40 = vpop.f32.mrf.mxu0 }
 0x4fb   : > { %v4807_v57 = vpop.f32.mrf.mxu0 }
 0x4fd   : > { %v4809_v22 = vpop.f32.mrf.mxu0 }
 0x539   : > { %v3870_v11 = vpop.f32.mrf.mxu1 }
 0x53a   : > { %v3871_v1 = vadd.f32 %v3870_v11, %v3758_v48  ;;  %v4810_v11 = vpop.f32.mrf.mxu0 }
 0x53b   : > { %v3872_v8 = vpop.f32.mrf.mxu1 }
 0x53c   : > { %v3873_v44 = vadd.f32 %v3872_v8, %v3760_v24  ;;  %v4127_v58 = vmax.f32 %v3871_v1, 0.0 }
 0x53d   : > { %v3876_v0 = vpop.f32.mrf.mxu1 }
 0x53e   : > { %v4128_v29 = vmax.f32 %v3873_v44, 0.0  ;;  %v3877_v32 = vadd.f32 %v3876_v0, %v3764_v36  ;;  %v3800_v0 = vadd.f32 %v7732_v53, %v7740_v56 }
 0x53f   : > { %v3878_v34 = vpop.f32.mrf.mxu1 }
 0x540   : > { %v3879_v14 = vadd.f32 %v3878_v34, %v3766_v25  ;;  %4270 = vmatprep.mubr.f32.mxu0 %v4128_v29  ;;  %v4130_v60 = vmax.f32 %v3877_v32, 0.0  ;;  %v4812_v25 = vpop.f32.mrf.mxu0 }
 0x541   : > { %v3882_v39 = vpop.f32.mrf.mxu1  ;;  %4271 = vmatmul.mubr.f32.vlgmr.msra.gmra.mxu0 %v4127_v58 }
 0x542   : > { %v4131_v59 = vmax.f32 %v3879_v14, 0.0  ;;  %v3883_v47 = vadd.f32 %v3882_v39, %v3770_v43  ;;  %v4802_v43 = vadd.f32 %v7749_v12, %v7742_v51  ;;  %v4813_v53 = vpop.f32.mrf.mxu0 }
 0x543   : > { %v3884_v15 = vpop.f32.mrf.mxu1 }
 0x544   : > { %v3885_v33 = vadd.f32 %v3884_v15, %v3772_v4  ;;  %4275 = vmatprep.mubr.f32.mxu0 %v4131_v59  ;;  %v4133_v17 = vmax.f32 %v3883_v47, 0.0  ;;  %v3984_v55 = vadd.f32 %v4802_v43, %v7780_v45  ;;  %v4815_v30 = vpop.f32.mrf.mxu0  ;;  %v4808_v15 = vadd.f32 %v4807_v57, %v7761_v40 }
 0x545   : > { %v3888_v41 = vpop.f32.mrf.mxu1  ;;  %4276 = vmatmul.mubr.f32.gmra.mxu0 %v4130_v60  ;;  %v4805_v60 = vadd.f32 %v7757_v62, %v7753_v2  ;;  %v4811_v62 = vadd.f32 %v4810_v11, %v4809_v22  ;;  %v4814_v40 = vadd.f32 %v4813_v53, %v4812_v25 }
 0x546   : > { %v4134_v42 = vmax.f32 %v3885_v33, 0.0  ;;  %v3889_v63 = vadd.f32 %v3888_v41, %v3776_v28  ;;  %v4816_v41 = vpop.f32.mrf.mxu0  ;;  %v3994_v2 = vadd.f32 %v4808_v15, %v7780_v45  ;;  %v4761_v15 = vld [vmem:[#allocation20] ss:$0 sm:$0xff] }
 0x547   : > { %v3890_v37 = vpop.f32.mrf.mxu1  ;;  %v3989_v12 = vadd.f32 %v4805_v60, %v7780_v45  ;;  %v4817_v22 = vadd.f32 %v4816_v41, %v4815_v30 }
 0x548   : > { %v3891_v31 = vadd.f32 %v3890_v37, %v3778_v50  ;;  %4280 = vmatprep.mubr.f32.mxu0 %v4134_v42  ;;  %v4136_v27 = vmax.f32 %v3889_v63, 0.0 }
 0x549   : > { %v3894_v6 = vpop.f32.mrf.mxu1  ;;  %4281 = vmatmul.mubr.f32.gmra.mxu0 %v4133_v17 }
 0x54a   : > { %v4137_v61 = vmax.f32 %v3891_v31, 0.0  ;;  %v3895_v49 = vadd.f32 %v3894_v6, %v3782_v19  ;;  %v4818_v31 = vpop.f32.mrf.mxu0 }
 0x54b   : > { %v3896_v3 = vpop.f32.mrf.mxu1 }
 0x54c   : > { %v3897_v52 = vadd.f32 %v3896_v3, %v3784_v38  ;;  %4285 = vmatprep.mubr.f32.mxu0 %v4137_v61  ;;  %v4139_v18 = vmax.f32 %v3895_v49, 0.0  ;;  %v3999_v61 = vadd.f32 %v4811_v62, %v7780_v45  ;;  %v4819_v49 = vpop.f32.mrf.mxu0 }
 0x54d   : > { %v3900_v5 = vpop.f32.mrf.mxu1  ;;  %4286 = vmatmul.mubr.f32.gmra.mxu0 %v4136_v27  ;;  %v4820_v11 = vadd.f32 %v4819_v49, %v4818_v31 }
 0x54e   : > { %v4140_v13 = vmax.f32 %v3897_v52, 0.0  ;;  %v3901_v9 = vadd.f32 %v3900_v5, %v3788_v7  ;;  %v4004_v5 = vadd.f32 %v4814_v40, %v7780_v45 }
 0x54f   : > { %v3902_v23 = vpop.f32.mrf.mxu1 }
 0x550   : > { %v3903_v48 = vadd.f32 %v3902_v23, %v3790_v20  ;;  %4290 = vmatprep.mubr.f32.mxu0 %v4140_v13  ;;  %v4142_v8 = vmax.f32 %v3901_v9, 0.0 }
 0x551   : > { %v3906_v24 = vpop.f32.mrf.mxu1  ;;  %4291 = vmatmul.mubr.f32.gmra.mxu0 %v4139_v18  ;;  %v4821_v18 = vpop.f32.mrf.mxu0 }
 0x552   : > { %v4143_v1 = vmax.f32 %v3903_v48, 0.0  ;;  %v3907_v44 = vadd.f32 %v3906_v24, %v3794_v10  ;;  %v4009_v10 = vadd.f32 %v4817_v22, %v7780_v45 }
 0x553   : > { %v3908_v36 = vpop.f32.mrf.mxu1 }
 0x554   : > { %v3909_v46 = vadd.f32 %v3908_v36, %v3796_v54  ;;  %4295 = vmatprep.mubr.f32.mxu0 %v4143_v1  ;;  %v4145_v32 = vmax.f32 %v3907_v44, 0.0  ;;  %v4822_v1 = vpop.f32.mrf.mxu0 }
 0x555   : > { %v3912_v29 = vpop.f32.mrf.mxu1  ;;  %4296 = vmatmul.mubr.f32.gmra.mxu0 %v4142_v8 }
 0x556   : > { %v4146_v58 = vmax.f32 %v3909_v46, 0.0  ;;  %v3913_v34 = vadd.f32 %v3912_v29, %v3800_v0  ;;  %v4014_v46 = vadd.f32 %v4820_v11, %v7780_v45  ;;  %v4823_v0 = vadd.f32 %v4822_v1, %v4821_v18 }
 0x557   : > { %v3914_v14 = vpop.f32.mrf.mxu1 }
 0x558   : > { %v3915_v39 = vadd.f32 %v3914_v14, %v3802_v35  ;;  %4300 = vmatprep.mubr.f32.mxu0 %v4146_v58  ;;  %v4148_v59 = vmax.f32 %v3913_v34, 0.0  ;;  %v4019_v34 = vadd.f32 %v4823_v0, %v7780_v45 }
 0x559   : > { %v4856_v56 = vpop.f32.mrf.mxu1  ;;  %4301 = vmatmul.mubr.f32.gmra.mxu0 %v4145_v32 }
 0x55a   : > { %v4149_v4 = vmax.f32 %v3915_v39, 0.0 }
 0x55b   : > { %v4857_v26 = vpop.f32.mrf.mxu1 }
 0x55c   : > { %v4858_v16 = vadd.f32 %v4857_v26, %v4856_v56  ;;  %4305 = vmatprep.mubr.f32.mxu0 %v4149_v4 }
 0x55d   : > { %v4859_v21 = vpop.f32.mrf.mxu1  ;;  %4306 = vmatmul.mubr.f32.gmra.mxu0 %v4148_v59 }
 0x55e   : > { %v4089_v47 = vadd.f32 %v4858_v16, %v3984_v55 }
 0x55f   : > { %v4860_v51 = vpop.f32.mrf.mxu1 }
 0x560   : > { %v4129_v33 = vmax.f32 %v4089_v47, 0.0  ;;  %v4861_v28 = vadd.f32 %v4860_v51, %v4859_v21 }
 0x561   : > { %v4862_v50 = vpop.f32.mrf.mxu1 }
 0x562   : > { %v4094_v42 = vadd.f32 %v4861_v28, %v3989_v12  ;;  %4992 = vmatprep.mubr.f32.mxu1 %v4129_v33 }
 0x563   : > { %v4863_v17 = vpop.f32.mrf.mxu1 }
 0x564   : > { %v4132_v63 = vmax.f32 %v4094_v42, 0.0  ;;  %v4864_v37 = vadd.f32 %v4863_v17, %v4862_v50 }
 0x565   : > { %v4865_v19 = vpop.f32.mrf.mxu1 }
 0x566   : > { %v4099_v6 = vadd.f32 %v4864_v37, %v3994_v2  ;;  %4993 = vmatmul.mubr.f32.vlgmr.msra.gmra.mxu1 %v4132_v63 }
 0x567   : > { %v4866_v38 = vpop.f32.mrf.mxu1 }
 0x568   : > { %v4135_v57 = vmax.f32 %v4099_v6, 0.0  ;;  %v4867_v27 = vadd.f32 %v4866_v38, %v4865_v19 }
 0x569   : > { %v4868_v3 = vpop.f32.mrf.mxu1 }
 0x56a   : > { %v4104_v52 = vadd.f32 %v4867_v27, %v3999_v61  ;;  %4995 = vmatprep.mubr.f32.mxu1 %v4135_v57 }
 0x56b   : > { %v4869_v7 = vpop.f32.mrf.mxu1 }
 0x56c   : > { %v4138_v20 = vmax.f32 %v4104_v52, 0.0  ;;  %v4870_v13 = vadd.f32 %v4869_v7, %v4868_v3 }
 0x56d   : > { %v4871_v9 = vpop.f32.mrf.mxu1 }
 0x56e   : > { %v4109_v23 = vadd.f32 %v4870_v13, %v4004_v5  ;;  %4996 = vmatmul.mubr.f32.gmra.mxu1 %v4138_v20 }
 0x56f   : > { %v4872_v48 = vpop.f32.mrf.mxu1 }
 0x570   : > { %v4141_v24 = vmax.f32 %v4109_v23, 0.0  ;;  %v4873_v54 = vadd.f32 %v4872_v48, %v4871_v9 }
 0x571   : > { %v4874_v8 = vpop.f32.mrf.mxu1 }
 0x572   : > { %v4114_v44 = vadd.f32 %v4873_v54, %v4009_v10  ;;  %4998 = vmatprep.mubr.f32.mxu1 %v4141_v24 }
 0x573   : > { %v4875_v36 = vpop.f32.mrf.mxu1 }
 0x574   : > { %v4144_v25 = vmax.f32 %v4114_v44, 0.0  ;;  %v4876_v29 = vadd.f32 %v4875_v36, %v4874_v8 }
 0x575   : > { %v4877_v35 = vpop.f32.mrf.mxu1 }
 0x576   : > { %v4119_v58 = vadd.f32 %v4876_v29, %v4014_v46  ;;  %4999 = vmatmul.mubr.f32.gmra.mxu1 %v4144_v25 }
 0x577   : > { %v4878_v32 = vpop.f32.mrf.mxu1 }
 0x578   : > { %v4147_v14 = vmax.f32 %v4119_v58, 0.0  ;;  %v4879_v43 = vadd.f32 %v4878_v32, %v4877_v35 }
 0x57a   : > { %v4124_v39 = vadd.f32 %v4879_v43, %v4019_v34  ;;  %5001 = vmatprep.mubr.f32.mxu1 %v4147_v14 }
 0x57c   : > { %v4150_v53 = vmax.f32 %v4124_v39, 0.0 }
 0x57e   : > { %5002 = vmatmul.mubr.f32.gmra.mxu1 %v4150_v53 }
 0x601   : > { %v4912_v56 = vpop.f32.mrf.mxu0 }
 0x603   : > { %v4913_v4 = vpop.f32.mrf.mxu0 }
 0x604   : > { %v4914_v45 = vadd.f32 %v4913_v4, %v4912_v56 }
 0x605   : > { %v4915_v59 = vpop.f32.mrf.mxu0 }
 0x606   : > { %v4273_v2 = vadd.f32 %v4914_v45, %v4761_v15 }
 0x607   : > { %v4916_v26 = vpop.f32.mrf.mxu0 }
 0x608   : > { %v4917_v51 = vadd.f32 %v4916_v26, %v4915_v59 }
 0x609   : > { %v4918_v55 = vpop.f32.mrf.mxu0 }
 0x60a   : > { %v4278_v33 = vadd.f32 %v4917_v51, %v4761_v15 }
 0x60b   : > { %v4919_v60 = vpop.f32.mrf.mxu0 }
 0x60c   : > { %v4920_v37 = vadd.f32 %v4919_v60, %v4918_v55 }
 0x60d   : > { %v4921_v16 = vpop.f32.mrf.mxu0 }
 0x60e   : > { %v4283_v57 = vadd.f32 %v4920_v37, %v4761_v15 }
 0x60f   : > { %v4922_v30 = vpop.f32.mrf.mxu0 }
 0x610   : > { %v4923_v17 = vadd.f32 %v4922_v30, %v4921_v16 }
 0x611   : > { %v4924_v21 = vpop.f32.mrf.mxu0 }
 0x612   : > { %v4288_v31 = vadd.f32 %v4923_v17, %v4761_v15 }
 0x613   : > { %v4925_v47 = vpop.f32.mrf.mxu0 }
 0x614   : > { %v4926_v49 = vadd.f32 %v4925_v47, %v4924_v21 }
 0x615   : > { %v4927_v12 = vpop.f32.mrf.mxu0 }
 0x616   : > { %v4293_v20 = vadd.f32 %v4926_v49, %v4761_v15 }
 0x617   : > { %v4928_v28 = vpop.f32.mrf.mxu0 }
 0x618   : > { %v4929_v40 = vadd.f32 %v4928_v28, %v4927_v12 }
 0x619   : > { %v4930_v62 = vpop.f32.mrf.mxu0 }
 0x61a   : > { %v4298_v52 = vadd.f32 %v4929_v40, %v4761_v15 }
 0x61b   : > { %v4931_v19 = vpop.f32.mrf.mxu0 }
 0x61c   : > { %v4932_v23 = vadd.f32 %v4931_v19, %v4930_v62 }
 0x61d   : > { %v4933_v27 = vpop.f32.mrf.mxu0 }
 0x61e   : > { %v4303_v24 = vadd.f32 %v4932_v23, %v4761_v15 }
 0x61f   : > { %v4934_v7 = vpop.f32.mrf.mxu0 }
 0x620   : > { %v4935_v18 = vadd.f32 %v4934_v7, %v4933_v27 }
 0x622   : > { %v4308_v48 = vadd.f32 %v4935_v18, %v4761_v15 }
 0x626   : > { %v4994_v41 = vpop.f32.mrf.mxu1 }
 0x627   : > { %v4383_v50 = vadd.f32 %v4994_v41, %v4278_v33 }
 0x628   : > { %v4377_v42 = vpop.f32.mrf.mxu1 }
 0x629   : > { %4418 = vmax.xlane.f32.xlu0 %v4383_v50  ;;  %v4378_v63 = vadd.f32 %v4377_v42, %v4273_v2 }
 0x62d   : > { %4416 = vmax.xlane.f32.xlu0 %v4378_v63 }
 0x62e   : > { %v4997_v6 = vpop.f32.mrf.mxu1 }
 0x62f   : > { %v4393_v38 = vadd.f32 %v4997_v6, %v4288_v31 }
 0x630   : > { %v4387_v61 = vpop.f32.mrf.mxu1 }
 0x631   : > { %4422 = vmax.xlane.f32.xlu1 %v4393_v38  ;;  %v4388_v3 = vadd.f32 %v4387_v61, %v4283_v57 }
 0x635   : > { %4420 = vmax.xlane.f32.xlu1 %v4388_v3 }
 0x636   : > { %v5000_v5 = vpop.f32.mrf.mxu1 }
 0x637   : > { %v4403_v22 = vadd.f32 %v5000_v5, %v4298_v52 }
 0x638   : > { %v4397_v13 = vpop.f32.mrf.mxu1 }
 0x639   : > { %v4398_v9 = vadd.f32 %v4397_v13, %v4293_v20  ;;  %4426 = vmax.xlane.f32.xlu1 %v4403_v22 }
 0x63b   : > { %4424 = vmax.xlane.f32.xlu0 %v4398_v9 }
 0x63e   : > { %v5003_v10 = vpop.f32.mrf.mxu1 }
 0x63f   : > { %v4413_v11 = vadd.f32 %v5003_v10, %v4308_v48 }
 0x640   : > { %v4407_v54 = vpop.f32.mrf.mxu1 }
 0x641   : > { %v4408_v1 = vadd.f32 %v4407_v54, %v4303_v24  ;;  %4430 = vmax.xlane.f32.xlu1 %v4413_v11 }
 0x643   : > { %4428 = vmax.xlane.f32.xlu0 %v4408_v1 }
 0x6b2   : > { %v4419_v8 = vpop.xlane.xlu0 %4418 }
 0x6b3   : > { %v4433_v44 = vsub.f32 %v4383_v50, %v4419_v8 }
 0x6b5   : > { %v4442_v36 = vmul.f32 1.442695, %v4433_v44 }
 0x6b6   : > { %v4417_v46 = vpop.xlane.xlu0 %4416 }
 0x6b7   : > { %5158 = vpow2.f32 %v4442_v36  ;;  %v4432_v0 = vsub.f32 %v4378_v63, %v4417_v46 }
 0x6b9   : > { %v4440_v25 = vmul.f32 1.442695, %v4432_v0 }
 0x6ba   : > { %v4423_v29 = vpop.xlane.xlu1 %4422 }
 0x6bb   : > { %5160 = vpow2.f32 %v4440_v25  ;;  %v4435_v35 = vsub.f32 %v4393_v38, %v4423_v29 }
 0x6bd   : > { %v4446_v58 = vmul.f32 1.442695, %v4435_v35 }
 0x6be   : > { %v4421_v32 = vpop.xlane.xlu1 %4420 }
 0x6bf   : > { %5162 = vpow2.f32 %v4446_v58  ;;  %v4434_v34 = vsub.f32 %v4388_v3, %v4421_v32 }
 0x6c1   : > { %v4444_v14 = vmul.f32 1.442695, %v4434_v34 }
 0x6c2   : > { %v4427_v43 = vpop.xlane.xlu1 %4426 }
 0x6c3   : > { %5164 = vpow2.f32 %v4444_v14  ;;  %v4437_v39 = vsub.f32 %v4403_v22, %v4427_v43 }
 0x6c4   : > { %v5159_v53 = vpop.eup %5158  ;;  %v4425_v56 = vpop.xlane.xlu0 %4424 }
 0x6c5   : > { %v4450_v4 = vmul.f32 1.442695, %v4437_v39  ;;  %v4436_v59 = vsub.f32 %v4398_v9, %v4425_v56  ;;  %4458 = vadd.xlane.f32.xlu1 %v5159_v53 }
 0x6c7   : > { %5166 = vpow2.f32 %v4450_v4  ;;  %v4448_v26 = vmul.f32 1.442695, %v4436_v59 }
 0x6c8   : > { %v5161_v55 = vpop.eup %5160 }
 0x6c9   : > { %5168 = vpow2.f32 %v4448_v26  ;;  %4456 = vadd.xlane.f32.xlu0 %v5161_v55 }
 0x6ca   : > { %v4431_v60 = vpop.xlane.xlu1 %4430 }
 0x6cb   : > { %v4439_v16 = vsub.f32 %v4413_v11, %v4431_v60 }
 0x6cc   : > { %v5163_v30 = vpop.eup %5162  ;;  %v4429_v21 = vpop.xlane.xlu0 %4428 }
 0x6cd   : > { %v4454_v47 = vmul.f32 1.442695, %v4439_v16  ;;  %v4438_v51 = vsub.f32 %v4408_v1, %v4429_v21  ;;  %4462 = vadd.xlane.f32.xlu1 %v5163_v30 }
 0x6cf   : > { %5170 = vpow2.f32 %v4454_v47  ;;  %v4452_v12 = vmul.f32 1.442695, %v4438_v51 }
 0x6d0   : > { %v5165_v15 = vpop.eup %5164 }
 0x6d1   : > { %5172 = vpow2.f32 %v4452_v12  ;;  %4460 = vadd.xlane.f32.xlu0 %v5165_v15 }
 0x6d4   : > { %v5167_v45 = vpop.eup %5166 }
 0x6d5   : > { %4466 = vadd.xlane.f32.xlu1 %v5167_v45 }
 0x6d6   : > { %v5169_v33 = vpop.eup %5168 }
 0x6d7   : > { %4464 = vadd.xlane.f32.xlu0 %v5169_v33 }
 0x6dc   : > { %v7795_v28 = vpop.eup %5170 }
 0x6dd   : > { %4470 = vadd.xlane.f32.xlu1 %v7795_v28 }
 0x6de   : > { %v7798_v41 = vpop.eup %5172 }
 0x6df   : > { %4468 = vadd.xlane.f32.xlu0 %v7798_v41 }
 0x74e   : > { %v4459_v50 = vpop.xlane.xlu1 %4458 }
 0x74f   : > { %5174 = vrcp.f32 %v4459_v50 }
 0x752   : > { %v4457_v42 = vpop.xlane.xlu0 %4456 }
 0x753   : > { %5176 = vrcp.f32 %v4457_v42 }
 0x756   : > { %v4463_v17 = vpop.xlane.xlu1 %4462 }
 0x757   : > { %5178 = vrcp.f32 %v4463_v17 }
 0x75a   : > { %v4461_v2 = vpop.xlane.xlu0 %4460 }
 0x75b   : > { %5180 = vrcp.f32 %v4461_v2 }
 0x75c   : > { %v5175_v62 = vpop.eup %5174 }
 0x75d   : > { %v4481_v63 = vmul.f32 %v5175_v62, %v4459_v50 }
 0x75e   : > { %v4467_v37 = vpop.xlane.xlu1 %4466 }
 0x75f   : > { %v4489_v31 = vsub.f32 2.0, %v4481_v63  ;;  %5182 = vrcp.f32 %v4467_v37 }
 0x760   : > { %v5177_v19 = vpop.eup %5176  ;;  %v4465_v6 = vpop.xlane.xlu0 %4464 }
 0x761   : > { %v4497_v38 = vmul.f32 %v5175_v62, %v4489_v31  ;;  %v4480_v61 = vmul.f32 %v5177_v19, %v4457_v42  ;;  %5184 = vrcp.f32 %v4465_v6 }
 0x763   : > { %v4505_v40 = vmul.f32 %v5159_v53, %v4497_v38  ;;  %v4488_v57 = vsub.f32 2.0, %v4480_v61 }
 0x764   : > { %v5179_v27 = vpop.eup %5178 }
 0x765   : > { %4513 = vst [vmem:[%s5802_s19 + $0x8] sm:$0xff] %v4505_v40  ;;  %v4496_v49 = vmul.f32 %v5177_v19, %v4488_v57  ;;  %v4483_v3 = vmul.f32 %v5179_v27, %v4463_v17 }
 0x766   : > { %v4471_v52 = vpop.xlane.xlu1 %4470 }
 0x767   : > { %v4504_v7 = vmul.f32 %v5161_v55, %v4496_v49  ;;  %v4491_v5 = vsub.f32 2.0, %v4483_v3  ;;  %5186 = vrcp.f32 %v4471_v52 }
 0x768   : > { %v5181_v22 = vpop.eup %5180  ;;  %v4469_v20 = vpop.xlane.xlu0 %4468 }
 0x769   : > { %4512 = vst [vmem:[%s5802_s19] sm:$0xff] %v4504_v7  ;;  %v4499_v13 = vmul.f32 %v5179_v27, %v4491_v5  ;;  %v4482_v18 = vmul.f32 %v5181_v22, %v4461_v2  ;;  %5188 = vrcp.f32 %v4469_v20 }
 0x76b   : > { %v4507_v9 = vmul.f32 %v5163_v30, %v4499_v13  ;;  %v4490_v23 = vsub.f32 2.0, %v4482_v18 }
 0x76c   : > { %v5183_v48 = vpop.eup %5182 }
 0x76d   : > { %4515 = vst [vmem:[%s5802_s19 + $0x18] sm:$0xff] %v4507_v9  ;;  %v4498_v10 = vmul.f32 %v5181_v22, %v4490_v23  ;;  %v4485_v11 = vmul.f32 %v5183_v48, %v4467_v37 }
 0x76e   : > { %v5185_v24 = vpop.eup %5184 }
 0x76f   : > { %v4506_v54 = vmul.f32 %v5165_v15, %v4498_v10  ;;  %v4493_v1 = vsub.f32 2.0, %v4485_v11  ;;  %v4484_v8 = vmul.f32 %v5185_v24, %v4465_v6 }
 0x771   : > { %4514 = vst [vmem:[%s5802_s19 + $0x10] sm:$0xff] %v4506_v54  ;;  %v4501_v44 = vmul.f32 %v5183_v48, %v4493_v1  ;;  %v4492_v36 = vsub.f32 2.0, %v4484_v8 }
 0x773   : > { %v4509_v46 = vmul.f32 %v5167_v45, %v4501_v44  ;;  %v4500_v0 = vmul.f32 %v5185_v24, %v4492_v36 }
 0x774   : > { %v5187_v25 = vpop.eup %5186 }
 0x775   : > { %4517 = vst [vmem:[%s5802_s19 + $0x28] sm:$0xff] %v4509_v46  ;;  %v4508_v29 = vmul.f32 %v5169_v33, %v4500_v0  ;;  %v4487_v35 = vmul.f32 %v5187_v25, %v4471_v52 }
 0x776   : > { %v5189_v58 = vpop.eup %5188 }
 0x777   : > { %4516 = vst [vmem:[%s5802_s19 + $0x20] sm:$0xff] %v4508_v29  ;;  %v4495_v32 = vsub.f32 2.0, %v4487_v35  ;;  %v4486_v34 = vmul.f32 %v5189_v58, %v4469_v20 }
 0x779   : > { %v4503_v14 = vmul.f32 %v5187_v25, %v4495_v32  ;;  %v4494_v43 = vsub.f32 2.0, %v4486_v34 }
 0x77b   : > { %v4511_v39 = vmul.f32 %v7795_v28, %v4503_v14  ;;  %v4502_v53 = vmul.f32 %v5189_v58, %v4494_v43 }
 0x77d   : > { %4519 = vst [vmem:[%s5802_s19 + $0x38] sm:$0xff] %v4511_v39  ;;  %v4510_v56 = vmul.f32 %v7798_v41, %v4502_v53 }
 0x77f   : > { %4518 = vst [vmem:[%s5802_s19 + $0x30] sm:$0xff] %v4510_v56 }
 0x780 PF: > { %s28_s25 = sadd.s32 1, %s5530_s25   ;;  %s7894_s21 = smov %s5522_s23 }
 0x781   : > { %p25_p9 = scmp.ge.s32.totalorder %s28_s25, 6   ;;  %s7895_s22 = smov %s5526_s24 }
 0x782   : > { %s7896_s23 = smov %s7899_s3  ;;  %s7897_s24 = smov %s7903_s17 }
 0x783   :  { %27 = sbr.rel (!%p25_p9) target bundleno = 13 (0xd), region = 159 }
 0x788   :  { %4545 = vsyncpa [#allocation7], 1 }
 0x789   :  { %4547 = vsyncpa [#allocation7 + $0x1], 1 }
 0x78a   :  { %4548 = vsyncpa [#allocation9], 1 }
 0x78b   :  { %4549 = vsyncpa [#allocation12], 1 }
 0x78c   :  { %4550 = vsyncpa [#allocation15], 1 }
 0x78d   :  { %4551 = vsyncpa [#allocation18], 1 }
 0x78e   :  { %4552 = vsyncpa [#allocation21], 1 }

</bundles_post_ra>
